<compile_context>
chip_gen: v7x
topology: tpu7x:2x2x1
jax: 0.10.0
libtpu: 0.0.40
codegen_flags: <defaults>
</compile_context>

<pallas_src>
import functools

import jax
import jax.numpy as jnp
from jax.experimental import pallas as pl
from jax.experimental.pallas import tpu as pltpu


LN_EPS = 1e-5
FUSED_MAX_NODES = 2048   # A (bf16, double-buffered) stays well under 32 MiB VMEM


def _round_up(x, m):
    return ((x + m - 1) // m) * m


def _pad2(a, rows, cols):
    return jnp.pad(a, ((0, rows - a.shape[0]), (0, cols - a.shape[1])))


def _full_spec(arr):
    """Full-array BlockSpec for a 1-point grid (resident in VMEM)."""
    nd = arr.ndim
    return pl.BlockSpec(arr.shape, lambda i: (0,) * nd)


# ----------------------------------------------------------------------------
# Shared epilogue math: GIN MLP (Linear -> ReLU -> Linear), LayerNorm, ReLU.
# Inputs: agg (f32), bf16 weights, f32 biases / gamma / beta. Returns f32.
# Padded hidden lanes stay exactly 0 (zero-padded weights/bias/gamma/beta).
# ----------------------------------------------------------------------------
def _gin_mlp_ln_relu(agg, w1, b1, w2, b2, gam, bet, hidden_dim):
    h = jnp.dot(agg.astype(jnp.bfloat16), w1,
                preferred_element_type=jnp.float32) + b1
    h = jnp.maximum(h, 0.0)
    h = jnp.dot(h.astype(jnp.bfloat16), w2,
                preferred_element_type=jnp.float32) + b2
    inv_h = 1.0 / hidden_dim
    mean = jnp.sum(h, axis=-1, keepdims=True) * inv_h
    var = jnp.maximum(jnp.sum(h * h, axis=-1, keepdims=True) * inv_h - mean * mean,
                      0.0)
    hn = (h - mean) * jax.lax.rsqrt(var + LN_EPS)
    hn = hn * gam + bet                      # padded lanes -> 0 (gamma,beta pad=0)
    return jnp.maximum(hn, 0.0)


# ----------------------------------------------------------------------------
# Kernel A: fully fused model (A resident in VMEM), for n_pad <= FUSED_MAX_NODES
# ----------------------------------------------------------------------------
def gin_fused_kernel(a_ref, x_ref,
                     w11, b11, w12, b12, g1, be1,
                     w21, b21, w22, b22, g2, be2,
                     w31, b31, w32, b32, g3, be3,
                     p_ref, attr_ref, fw1a, fw1b, fb1, fw2, fb2,
                     o_ref, *, hidden_dim):
    a = a_ref[...]                                       # (n_pad, n_pad) bf16

    def gin_block(h, w1, b1, w2, b2, gam, bet):
        agg = jnp.dot(a, h, preferred_element_type=jnp.float32)   # (A+I) @ h
        hn = _gin_mlp_ln_relu(agg, w1[...], b1[...], w2[...], b2[...],
                              gam[...], bet[...], hidden_dim)
        return hn.astype(jnp.bfloat16)

    h = x_ref[...]
    h = gin_block(h, w11, b11, w12, b12, g1, be1)
    h = gin_block(h, w21, b21, w22, b22, g2, be2)
    h = gin_block(h, w31, b31, w32, b32, g3, be3)

    # Global mean pool (P is pre-divided by |V_g|), then fc1(cat(pool, attr)), fc2.
    pooled = jnp.dot(p_ref[...], h, preferred_element_type=jnp.float32)
    z = (jnp.dot(pooled, fw1a[...], preferred_element_type=jnp.float32)
         + jnp.dot(attr_ref[...], fw1b[...], preferred_element_type=jnp.float32)
         + fb1[...])
    z = jnp.maximum(z, 0.0)
    o_ref[...] = jnp.dot(z, fw2[...], preferred_element_type=jnp.float32) + fb2[...]


def gin_fused(adj, x, c1, c2, c3, pool_mat, graph_attr,
              fw1a, fw1b, fb1, fw2, fb2, *, hidden_dim):
    args = [adj, x, *c1, *c2, *c3, pool_mat, graph_attr, fw1a, fw1b, fb1, fw2, fb2]
    n_pad = adj.shape[0]
    f_pad = x.shape[1]
    h_pad = fw1a.shape[0]
    g = pool_mat.shape[0]
    out_dim = fw2.shape[1]

    flops = (2 * n_pad * n_pad * (f_pad + 2 * h_pad)           # 3x aggregation
             + 2 * n_pad * h_pad * (f_pad + 5 * h_pad)          # 3x GIN MLP
             + 2 * g * n_pad * h_pad)                           # pooling
    bytes_accessed = (n_pad * n_pad * 2 + n_pad * f_pad * 2
                      + (f_pad * h_pad + 5 * h_pad * h_pad) * 2
                      + g * (n_pad + out_dim) * 4)

    kernel = functools.partial(gin_fused_kernel, hidden_dim=hidden_dim)
    return pl.pallas_call(
        kernel,
        out_shape=jax.ShapeDtypeStruct((g, out_dim), jnp.float32),
        grid_spec=pltpu.PrefetchScalarGridSpec(
            num_scalar_prefetch=0,
            grid=(1,),
            in_specs=[_full_spec(a) for a in args],
            out_specs=pl.BlockSpec((g, out_dim), lambda i: (0, 0)),
        ),
        compiler_params=pltpu.CompilerParams(
            dimension_semantics=("arbitrary",),
            vmem_limit_bytes=32 * 1024 * 1024),
        cost_estimate=pl.CostEstimate(flops=int(flops),
                                      transcendentals=int(3 * n_pad),
                                      bytes_accessed=int(bytes_accessed)),
    )(*args)


# ----------------------------------------------------------------------------
# Kernel B: one tiled GIN layer (layers 1 & 2 of the large-graph path)
#   agg = (A + I) @ x   (accumulated over column tiles, x resident in VMEM)
#   out = ReLU(LayerNorm(MLP(agg)))
# ----------------------------------------------------------------------------
def gin_layer_kernel(a_ref, x_ref, w1_ref, b1_ref, w2_ref, b2_ref,
                     gam_ref, bet_ref, o_ref, acc_ref, *, hidden_dim, tk):
    k = pl.program_id(1)

    @pl.when(k == 0)
    def _init():
        acc_ref[...] = jnp.zeros_like(acc_ref)

    # x is resident (full-array block); slice the K-chunk in-kernel.
    xk = x_ref[pl.ds(pl.multiple_of(k * tk, tk), tk), :]
    acc_ref[...] += jnp.dot(a_ref[...], xk, preferred_element_type=jnp.float32)

    @pl.when(k == pl.num_programs(1) - 1)
    def _epilogue():
        hn = _gin_mlp_ln_relu(acc_ref[...], w1_ref[...], b1_ref[...],
                              w2_ref[...], b2_ref[...],
                              gam_ref[...], bet_ref[...], hidden_dim)
        o_ref[...] = hn.astype(o_ref.dtype)


def gin_layer(adj, x, w1, b1, w2, b2, gamma, beta, *, hidden_dim, tm, tk):
    n_pad = adj.shape[0]
    fin_pad = x.shape[1]
    h_pad = w1.shape[1]
    grid = (n_pad // tm, n_pad // tk)

    flops = (2 * n_pad * n_pad * fin_pad
             + 2 * n_pad * fin_pad * h_pad + 2 * n_pad * h_pad * h_pad)
    bytes_accessed = (n_pad * n_pad * 2            # A (bf16)
                      + n_pad * fin_pad * 2        # x read once (resident)
                      + n_pad * h_pad * 2          # out (bf16)
                      + (fin_pad * h_pad + h_pad * h_pad) * 2
                      + 4 * h_pad * 4)

    kernel = functools.partial(gin_layer_kernel, hidden_dim=hidden_dim, tk=tk)
    return pl.pallas_call(
        kernel,
        out_shape=jax.ShapeDtypeStruct((n_pad, h_pad), jnp.bfloat16),
        grid_spec=pltpu.PrefetchScalarGridSpec(
            num_scalar_prefetch=0,
            grid=grid,
            in_specs=[
                pl.BlockSpec((tm, tk), lambda i, k: (i, k)),           # A tile
                pl.BlockSpec((n_pad, fin_pad), lambda i, k: (0, 0)),   # x resident
                pl.BlockSpec((fin_pad, h_pad), lambda i, k: (0, 0)),   # W1 (bf16)
                pl.BlockSpec((1, h_pad), lambda i, k: (0, 0)),         # b1
                pl.BlockSpec((h_pad, h_pad), lambda i, k: (0, 0)),     # W2 (bf16)
                pl.BlockSpec((1, h_pad), lambda i, k: (0, 0)),         # b2
                pl.BlockSpec((1, h_pad), lambda i, k: (0, 0)),         # gamma
                pl.BlockSpec((1, h_pad), lambda i, k: (0, 0)),         # beta
            ],
            out_specs=pl.BlockSpec((tm, h_pad), lambda i, k: (i, 0)),
            scratch_shapes=[pltpu.VMEM((tm, fin_pad), jnp.float32)],
        ),
        compiler_params=pltpu.CompilerParams(
            dimension_semantics=("parallel", "arbitrary"),
            vmem_limit_bytes=32 * 1024 * 1024),
        cost_estimate=pl.CostEstimate(flops=int(flops),
                                      transcendentals=int(n_pad),
                                      bytes_accessed=int(bytes_accessed)),
    )(adj, x, w1, b1, w2, b2, gamma, beta)


# ----------------------------------------------------------------------------
# Kernel C: tiled layer 3 with the global mean pool + fc head folded into the
# epilogue (no extra HBM round trip of h3, no separate head launch).
# ----------------------------------------------------------------------------
def gin_final_kernel(a_ref, x_ref, w1_ref, b1_ref, w2_ref, b2_ref,
                     gam_ref, bet_ref, p_ref, attr_ref,
                     fw1a_ref, fw1b_ref, fb1_ref, fw2_ref, fb2_ref,
                     o_ref, acc_ref, pool_acc, *, hidden_dim, tk):
    i = pl.program_id(0)
    k = pl.program_id(1)

    @pl.when((i == 0) & (k == 0))
    def _init_pool():
        pool_acc[...] = jnp.zeros_like(pool_acc)

    @pl.when(k == 0)
    def _init_acc():
        acc_ref[...] = jnp.zeros_like(acc_ref)

    xk = x_ref[pl.ds(pl.multiple_of(k * tk, tk), tk), :]
    acc_ref[...] += jnp.dot(a_ref[...], xk, preferred_element_type=jnp.float32)

    @pl.when(k == pl.num_programs(1) - 1)
    def _epilogue():
        hn = _gin_mlp_ln_relu(acc_ref[...], w1_ref[...], b1_ref[...],
                              w2_ref[...], b2_ref[...],
                              gam_ref[...], bet_ref[...], hidden_dim)
        # fold this row tile into the pooled accumulator:  pool += P[:, tile] @ h
        pool_acc[...] += jnp.dot(p_ref[...], hn.astype(jnp.bfloat16),
                                 preferred_element_type=jnp.float32)

        @pl.when(i == pl.num_programs(0) - 1)
        def _head():
            pooled = pool_acc[...]
            z = (jnp.dot(pooled, fw1a_ref[...], preferred_element_type=jnp.float32)
                 + jnp.dot(attr_ref[...], fw1b_ref[...],
                           preferred_element_type=jnp.float32)
                 + fb1_ref[...])
            z = jnp.maximum(z, 0.0)
            o_ref[...] = (jnp.dot(z, fw2_ref[...],
                                  preferred_element_type=jnp.float32) + fb2_ref[...])


def gin_final_layer(adj, x, w1, b1, w2, b2, gamma, beta,
                    pool_mat, graph_attr, fw1a, fw1b, fb1, fw2, fb2,
                    *, hidden_dim, tm, tk):
    n_pad = adj.shape[0]
    fin_pad = x.shape[1]
    h_pad = w1.shape[1]
    g = pool_mat.shape[0]
    a_dim = graph_attr.shape[1]
    out_dim = fw2.shape[1]
    grid = (n_pad // tm, n_pad // tk)

    kernel = functools.partial(gin_final_kernel, hidden_dim=hidden_dim, tk=tk)
    return pl.pallas_call(
        kernel,
        out_shape=jax.ShapeDtypeStruct((g, out_dim), jnp.float32),
        grid_spec=pltpu.PrefetchScalarGridSpec(
            num_scalar_prefetch=0,
            grid=grid,
            in_specs=[
                pl.BlockSpec((tm, tk), lambda i, k: (i, k)),           # A tile
                pl.BlockSpec((n_pad, fin_pad), lambda i, k: (0, 0)),   # x resident
                pl.BlockSpec((fin_pad, h_pad), lambda i, k: (0, 0)),   # W1
                pl.BlockSpec((1, h_pad), lambda i, k: (0, 0)),         # b1
                pl.BlockSpec((h_pad, h_pad), lambda i, k: (0, 0)),     # W2
                pl.BlockSpec((1, h_pad), lambda i, k: (0, 0)),         # b2
                pl.BlockSpec((1, h_pad), lambda i, k: (0, 0)),         # gamma
                pl.BlockSpec((1, h_pad), lambda i, k: (0, 0)),         # beta
                pl.BlockSpec((g, tm), lambda i, k: (0, i)),            # P row tile
                pl.BlockSpec((g, a_dim), lambda i, k: (0, 0)),         # graph attrs
                pl.BlockSpec((h_pad, h_pad), lambda i, k: (0, 0)),     # fc1 (pool)
                pl.BlockSpec((a_dim, h_pad), lambda i, k: (0, 0)),     # fc1 (attr)
                pl.BlockSpec((1, h_pad), lambda i, k: (0, 0)),         # fc1 bias
                pl.BlockSpec((h_pad, out_dim), lambda i, k: (0, 0)),   # fc2 weight
                pl.BlockSpec((1, out_dim), lambda i, k: (0, 0)),       # fc2 bias
            ],
            out_specs=pl.BlockSpec((g, out_dim), lambda i, k: (0, 0)),
            scratch_shapes=[pltpu.VMEM((tm, fin_pad), jnp.float32),
                            pltpu.VMEM((g, h_pad), jnp.float32)],
        ),
        compiler_params=pltpu.CompilerParams(
            # pooled accumulation crosses row tiles -> row axis must stay sequential
            dimension_semantics=("arbitrary", "arbitrary"),
            vmem_limit_bytes=32 * 1024 * 1024),
    )(adj, x, w1, b1, w2, b2, gamma, beta, pool_mat, graph_attr,
      fw1a, fw1b, fb1, fw2, fb2)


# ----------------------------------------------------------------------------
# Parameters (synthetic init; layout mirrors the PyTorch module, W as (in,out))
# ----------------------------------------------------------------------------
def init_params(key, num_node_features, num_graph_attributes, output_dim, hidden_dim):
    keys = jax.random.split(key, 16)
    k = iter(keys)

    def linear(key, fan_in, fan_out):
        kw, kb = jax.random.split(key)
        w = jax.random.normal(kw, (fan_in, fan_out), jnp.float32) * (1.0 / jnp.sqrt(fan_in))
        b = jax.random.normal(kb, (1, fan_out), jnp.float32) * 0.01
        return w, b

    params = {}
    dims_in = [num_node_features, hidden_dim, hidden_dim]
    for i in range(3):
        w1, b1 = linear(next(k), dims_in[i], hidden_dim)
        w2, b2 = linear(next(k), hidden_dim, hidden_dim)
        params[f"conv{i+1}"] = dict(w1=w1, b1=b1, w2=w2, b2=b2)
        params[f"norm{i+1}"] = dict(gamma=jnp.ones((1, hidden_dim), jnp.float32),
                                    beta=jnp.zeros((1, hidden_dim), jnp.float32))
    fc1_w, fc1_b = linear(next(k), hidden_dim + num_graph_attributes, hidden_dim)
    fc2_w, fc2_b = linear(next(k), hidden_dim, output_dim)
    params["fc1"] = dict(w=fc1_w, b=fc1_b)
    params["fc2"] = dict(w=fc2_w, b=fc2_b)
    return params


# ----------------------------------------------------------------------------
# Full model forward (plain-JAX glue: padding, dense adjacency, pool matrix)
# ----------------------------------------------------------------------------
@functools.partial(jax.jit, static_argnames=("num_graphs", "force_tiled", "tile_cap"))
def gin_model_forward(params, x, edge_index, batch, graph_attr, num_graphs,
                      force_tiled=False, tile_cap=1024):
    assert tile_cap % 128 == 0
    n, f_in = x.shape
    hidden_dim = params["conv1"]["w2"].shape[1]
    f_pad = _round_up(f_in, 128)
    h_pad = _round_up(hidden_dim, 128)
    n_pad = _round_up(n, 128)

    use_fused = (not force_tiled) and n_pad <= FUSED_MAX_NODES
    tm = tk = n_pad
    if not use_fused and n_pad > tile_cap:
        n_pad = _round_up(n_pad, tile_cap)
        tm = tk = tile_cap
    elif not use_fused:
        tm = tk = n_pad

    # Dense adjacency with self-loops appended as extra (i,i) edges
    # ((1+eps)*x_i with eps=0).  Single scatter-add straight into bf16
    # (edge multiplicities are small integers -> exact in bf16).
    self_loops = jnp.arange(n, dtype=edge_index.dtype)
    src = jnp.concatenate([edge_index[0], self_loops])
    dst = jnp.concatenate([edge_index[1], self_loops])
    adj = jnp.zeros((n_pad, n_pad), jnp.bfloat16).at[dst, src].add(1.0)

    # Mean-pool matrix P[g, node] = 1/|V_g|; padded nodes match no graph.
    batch_p = jnp.concatenate(
        [batch.astype(jnp.int32),
         jnp.full((n_pad - n,), num_graphs, jnp.int32)])
    onehot = (batch_p[None, :] == jnp.arange(num_graphs)[:, None]).astype(jnp.float32)
    counts = jnp.maximum(onehot.sum(axis=1, keepdims=True), 1.0)
    pool_mat = (onehot / counts).astype(jnp.bfloat16)

    # Node features: pad to (n_pad, f_pad) and cast to bf16.
    h0 = _pad2(x, n_pad, f_pad).astype(jnp.bfloat16)

    def conv_w(idx, in_pad):
        c = params[f"conv{idx}"]
        nm = params[f"norm{idx}"]
        return (_pad2(c["w1"], in_pad, h_pad).astype(jnp.bfloat16),
                _pad2(c["b1"], 1, h_pad),
                _pad2(c["w2"], h_pad, h_pad).astype(jnp.bfloat16),
                _pad2(c["b2"], 1, h_pad),
                _pad2(nm["gamma"], 1, h_pad),
                _pad2(nm["beta"], 1, h_pad))

    # fc1(cat(pooled, attr)) == pooled @ W1[:H] + attr @ W1[H:]
    num_attr = graph_attr.shape[1]
    fw = params["fc1"]["w"]
    fw1a = _pad2(fw[:hidden_dim, :], h_pad, h_pad)
    fw1b = _pad2(fw[hidden_dim:, :], num_attr, h_pad)
    fb1 = _pad2(params["fc1"]["b"], 1, h_pad)
    fw2 = _pad2(params["fc2"]["w"], h_pad, params["fc2"]["w"].shape[1])
    fb2 = params["fc2"]["b"]
    attr = graph_attr.astype(jnp.float32)

    if use_fused:
        out = gin_fused(adj, h0, conv_w(1, f_pad), conv_w(2, h_pad), conv_w(3, h_pad),
                        pool_mat, attr, fw1a, fw1b, fb1, fw2, fb2,
                        hidden_dim=hidden_dim)
    else:
        h = gin_layer(adj, h0, *conv_w(1, f_pad), hidden_dim=hidden_dim, tm=tm, tk=tk)
        h = gin_layer(adj, h, *conv_w(2, h_pad), hidden_dim=hidden_dim, tm=tm, tk=tk)
        out = gin_final_layer(adj, h, *conv_w(3, h_pad),
                              pool_mat, attr, fw1a, fw1b, fb1, fw2, fb2,
                              hidden_dim=hidden_dim, tm=tm, tk=tk)
    return out


# ----------------------------------------------------------------------------
# Pure-JAX f32 reference (for correctness check against the bf16 kernels)
# ----------------------------------------------------------------------------
def reference_forward(params, x, edge_index, batch, graph_attr, num_graphs):
    n = x.shape[0]
    src, dst = edge_index[0], edge_index[1]
    adj = jnp.zeros((n, n), jnp.float32).at[dst, src].add(1.0) + jnp.eye(n)
    h = x
    for i in range(3):
        c = params[f"conv{i+1}"]
        nm = params[f"norm{i+1}"]
        agg = adj @ h
        t = jnp.maximum(agg @ c["w1"] + c["b1"], 0.0)
        t = t @ c["w2"] + c["b2"]
        mean = t.mean(-1, keepdims=True)
        var = ((t - mean) ** 2).mean(-1, keepdims=True)
        t = (t - mean) / jnp.sqrt(var + LN_EPS) * nm["gamma"] + nm["beta"]
        h = jnp.maximum(t, 0.0)
    onehot = (batch[None, :] == jnp.arange(num_graphs)[:, None]).astype(jnp.float32)
    pooled = (onehot @ h) / jnp.maximum(onehot.sum(1, keepdims=True), 1.0)
    z = jnp.concatenate([pooled, graph_attr], axis=1)
    z = jnp.maximum(z @ params["fc1"]["w"] + params["fc1"]["b"], 0.0)
    return z @ params["fc2"]["w"] + params["fc2"]["b"]


if __name__ == "__main__":
    num_node_features = 8
    num_graph_attributes = 4
    output_dim = 3
    hidden_dim = 32
    num_nodes = 16
    num_edges = 40
    num_graphs = 2

    key = jax.random.PRNGKey(0)
    k_par, k_x, k_e, k_a, k_big = jax.random.split(key, 5)

    params = init_params(k_par, num_node_features, num_graph_attributes,
                         output_dim, hidden_dim)

    # --- small test graph (exercises the fused path) ---
    x = jax.random.normal(k_x, (num_nodes, num_node_features), jnp.float32)
    ks, kd = jax.random.split(k_e)
    half = num_edges // 2
    src0 = jax.random.randint(ks, (half,), 0, num_nodes // 2)
    dst0 = jax.random.randint(kd, (half,), 0, num_nodes // 2)
    src1 = jax.random.randint(ks, (num_edges - half,), num_nodes // 2, num_nodes)
    dst1 = jax.random.randint(kd, (num_edges - half,), num_nodes // 2, num_nodes)
    edge_index = jnp.stack([jnp.concatenate([src0, src1]),
                            jnp.concatenate([dst0, dst1])], axis=0)
    batch = jnp.concatenate([jnp.zeros(num_nodes // 2, jnp.int32),
                             jnp.ones(num_nodes - num_nodes // 2, jnp.int32)])
    graph_attr = jax.random.normal(k_a, (num_graphs, num_graph_attributes), jnp.float32)

    out_fused = gin_model_forward(params, x, edge_index, batch, graph_attr,
                                  num_graphs=num_graphs)
    out_tiled = gin_model_forward(params, x, edge_index, batch, graph_attr,
                                  num_graphs=num_graphs, force_tiled=True,
                                  tile_cap=128)
    jax.block_until_ready((out_fused, out_tiled))
    ref = reference_forward(params, x, edge_index, batch, graph_attr, num_graphs)

    assert out_fused.shape == (num_graphs, output_dim)
    assert out_tiled.shape == (num_graphs, output_dim)
    assert bool(jnp.all(jnp.isfinite(out_fused)))
    assert bool(jnp.all(jnp.isfinite(out_tiled)))
    assert float(jnp.max(jnp.abs(out_fused - out_tiled))) < 1e-2
    assert float(jnp.max(jnp.abs(out_fused - ref))) < 0.25       # bf16 vs f32 ref

    # --- larger test graph (exercises the multi-tile path: 3x3 grid,
    #     resident-x slicing, cross-row-tile pool accumulation) ---
    n2, e2 = 300, 800
    kb1, kb2, kb3, kb4, kb5, kb6 = jax.random.split(k_big, 6)
    half_n = n2 // 2
    src_a = jax.random.randint(kb1, (e2 // 2,), 0, half_n)
    dst_a = jax.random.randint(kb2, (e2 // 2,), 0, half_n)
    src_b = jax.random.randint(kb3, (e2 - e2 // 2,), half_n, n2)
    dst_b = jax.random.randint(kb4, (e2 - e2 // 2,), half_n, n2)
    edge_index2 = jnp.stack([jnp.concatenate([src_a, src_b]),
                             jnp.concatenate([dst_a, dst_b])], axis=0)
    batch2 = jnp.concatenate([jnp.zeros(half_n, jnp.int32),
                              jnp.ones(n2 - half_n, jnp.int32)])
    x2 = jax.random.normal(kb5, (n2, num_node_features), jnp.float32)
    attr2 = jax.random.normal(kb6, (num_graphs, num_graph_attributes), jnp.float32)

    out2 = gin_model_forward(params, x2, edge_index2, batch2, attr2,
                             num_graphs=num_graphs, force_tiled=True, tile_cap=128)
    jax.block_until_ready(out2)
    ref2 = reference_forward(params, x2, edge_index2, batch2, attr2, num_graphs)
    assert out2.shape == (num_graphs, output_dim)
    assert bool(jnp.all(jnp.isfinite(out2)))
    assert float(jnp.max(jnp.abs(out2 - ref2))) < 0.25

    print("KERNEL_OK")
</pallas_src>

<mosaic_0001>
module attributes {stable_mosaic.version = 11 : i64} {
  func.func @gin_fused_kernel(%arg0: i32, %arg1: memref<128x128xbf16, #tpu.memory_space<vmem>>, %arg2: memref<128x128xbf16, #tpu.memory_space<vmem>>, %arg3: memref<128x128xbf16, #tpu.memory_space<vmem>>, %arg4: memref<1x128xf32, #tpu.memory_space<vmem>>, %arg5: memref<128x128xbf16, #tpu.memory_space<vmem>>, %arg6: memref<1x128xf32, #tpu.memory_space<vmem>>, %arg7: memref<1x128xf32, #tpu.memory_space<vmem>>, %arg8: memref<1x128xf32, #tpu.memory_space<vmem>>, %arg9: memref<128x128xbf16, #tpu.memory_space<vmem>>, %arg10: memref<1x128xf32, #tpu.memory_space<vmem>>, %arg11: memref<128x128xbf16, #tpu.memory_space<vmem>>, %arg12: memref<1x128xf32, #tpu.memory_space<vmem>>, %arg13: memref<1x128xf32, #tpu.memory_space<vmem>>, %arg14: memref<1x128xf32, #tpu.memory_space<vmem>>, %arg15: memref<128x128xbf16, #tpu.memory_space<vmem>>, %arg16: memref<1x128xf32, #tpu.memory_space<vmem>>, %arg17: memref<128x128xbf16, #tpu.memory_space<vmem>>, %arg18: memref<1x128xf32, #tpu.memory_space<vmem>>, %arg19: memref<1x128xf32, #tpu.memory_space<vmem>>, %arg20: memref<1x128xf32, #tpu.memory_space<vmem>>, %arg21: memref<2x128xbf16, #tpu.memory_space<vmem>>, %arg22: memref<2x4xf32, #tpu.memory_space<vmem>>, %arg23: memref<128x128xf32, #tpu.memory_space<vmem>>, %arg24: memref<4x128xf32, #tpu.memory_space<vmem>>, %arg25: memref<1x128xf32, #tpu.memory_space<vmem>>, %arg26: memref<128x3xf32, #tpu.memory_space<vmem>>, %arg27: memref<1x3xf32, #tpu.memory_space<vmem>>, %arg28: memref<2x3xf32, #tpu.memory_space<vmem>>) attributes {dimension_semantics = [#tpu.dimension_semantics<arbitrary>], iteration_bounds = array<i64: 1>, scalar_prefetch = 0 : i64, scratch_operands = 0 : i64, tpu.core_type = #tpu.core_type<tc>, window_params = [{pipeline_mode = #tpu.pipeline_mode<synchronous>, transform_indices = @transform_0, window_bounds = array<i64: 128, 128>}, {pipeline_mode = #tpu.pipeline_mode<synchronous>, transform_indices = @transform_1, window_bounds = array<i64: 128, 128>}, {pipeline_mode = #tpu.pipeline_mode<synchronous>, transform_indices = @transform_2, window_bounds = array<i64: 128, 128>}, {pipeline_mode = #tpu.pipeline_mode<synchronous>, transform_indices = @transform_3, window_bounds = array<i64: 1, 128>}, {pipeline_mode = #tpu.pipeline_mode<synchronous>, transform_indices = @transform_4, window_bounds = array<i64: 128, 128>}, {pipeline_mode = #tpu.pipeline_mode<synchronous>, transform_indices = @transform_5, window_bounds = array<i64: 1, 128>}, {pipeline_mode = #tpu.pipeline_mode<synchronous>, transform_indices = @transform_6, window_bounds = array<i64: 1, 128>}, {pipeline_mode = #tpu.pipeline_mode<synchronous>, transform_indices = @transform_7, window_bounds = array<i64: 1, 128>}, {pipeline_mode = #tpu.pipeline_mode<synchronous>, transform_indices = @transform_8, window_bounds = array<i64: 128, 128>}, {pipeline_mode = #tpu.pipeline_mode<synchronous>, transform_indices = @transform_9, window_bounds = array<i64: 1, 128>}, {pipeline_mode = #tpu.pipeline_mode<synchronous>, transform_indices = @transform_10, window_bounds = array<i64: 128, 128>}, {pipeline_mode = #tpu.pipeline_mode<synchronous>, transform_indices = @transform_11, window_bounds = array<i64: 1, 128>}, {pipeline_mode = #tpu.pipeline_mode<synchronous>, transform_indices = @transform_12, window_bounds = array<i64: 1, 128>}, {pipeline_mode = #tpu.pipeline_mode<synchronous>, transform_indices = @transform_13, window_bounds = array<i64: 1, 128>}, {pipeline_mode = #tpu.pipeline_mode<synchronous>, transform_indices = @transform_14, window_bounds = array<i64: 128, 128>}, {pipeline_mode = #tpu.pipeline_mode<synchronous>, transform_indices = @transform_15, window_bounds = array<i64: 1, 128>}, {pipeline_mode = #tpu.pipeline_mode<synchronous>, transform_indices = @transform_16, window_bounds = array<i64: 128, 128>}, {pipeline_mode = #tpu.pipeline_mode<synchronous>, transform_indices = @transform_17, window_bounds = array<i64: 1, 128>}, {pipeline_mode = #tpu.pipeline_mode<synchronous>, transform_indices = @transform_18, window_bounds = array<i64: 1, 128>}, {pipeline_mode = #tpu.pipeline_mode<synchronous>, transform_indices = @transform_19, window_bounds = array<i64: 1, 128>}, {pipeline_mode = #tpu.pipeline_mode<synchronous>, transform_indices = @transform_20, window_bounds = array<i64: 2, 128>}, {pipeline_mode = #tpu.pipeline_mode<synchronous>, transform_indices = @transform_21, window_bounds = array<i64: 2, 4>}, {pipeline_mode = #tpu.pipeline_mode<synchronous>, transform_indices = @transform_22, window_bounds = array<i64: 128, 128>}, {pipeline_mode = #tpu.pipeline_mode<synchronous>, transform_indices = @transform_23, window_bounds = array<i64: 4, 128>}, {pipeline_mode = #tpu.pipeline_mode<synchronous>, transform_indices = @transform_24, window_bounds = array<i64: 1, 128>}, {pipeline_mode = #tpu.pipeline_mode<synchronous>, transform_indices = @transform_25, window_bounds = array<i64: 128, 3>}, {pipeline_mode = #tpu.pipeline_mode<synchronous>, transform_indices = @transform_26, window_bounds = array<i64: 1, 3>}, {pipeline_mode = #tpu.pipeline_mode<synchronous>, transform_indices = @transform_27, window_bounds = array<i64: 2, 3>}]} {
    %c0 = arith.constant 0 : index
    %c0_0 = arith.constant 0 : index
    %0 = vector.load %arg1[%c0, %c0_0] : memref<128x128xbf16, #tpu.memory_space<vmem>>, vector<128x128xbf16>
    %c0_1 = arith.constant 0 : index
    %c0_2 = arith.constant 0 : index
    %1 = vector.load %arg2[%c0_1, %c0_2] : memref<128x128xbf16, #tpu.memory_space<vmem>>, vector<128x128xbf16>
    %cst = arith.constant dense<0.000000e+00> : vector<128x128xf32>
    %2 = tpu.matmul %0, %1, %cst {dimension_numbers = #tpu.dot_dimension_numbers<[1], [0], [0], [1], [0, 0, 1, 1], [], []>} : vector<128x128xbf16>, vector<128x128xbf16>, vector<128x128xf32> -> vector<128x128xf32>
    %c0_3 = arith.constant 0 : index
    %c0_4 = arith.constant 0 : index
    %3 = vector.load %arg3[%c0_3, %c0_4] : memref<128x128xbf16, #tpu.memory_space<vmem>>, vector<128x128xbf16>
    %c0_5 = arith.constant 0 : index
    %c0_6 = arith.constant 0 : index
    %4 = vector.load %arg4[%c0_5, %c0_6] : memref<1x128xf32, #tpu.memory_space<vmem>>, vector<1x128xf32>
    %c0_7 = arith.constant 0 : index
    %c0_8 = arith.constant 0 : index
    %5 = vector.load %arg5[%c0_7, %c0_8] : memref<128x128xbf16, #tpu.memory_space<vmem>>, vector<128x128xbf16>
    %c0_9 = arith.constant 0 : index
    %c0_10 = arith.constant 0 : index
    %6 = vector.load %arg6[%c0_9, %c0_10] : memref<1x128xf32, #tpu.memory_space<vmem>>, vector<1x128xf32>
    %c0_11 = arith.constant 0 : index
    %c0_12 = arith.constant 0 : index
    %7 = vector.load %arg7[%c0_11, %c0_12] : memref<1x128xf32, #tpu.memory_space<vmem>>, vector<1x128xf32>
    %c0_13 = arith.constant 0 : index
    %c0_14 = arith.constant 0 : index
    %8 = vector.load %arg8[%c0_13, %c0_14] : memref<1x128xf32, #tpu.memory_space<vmem>>, vector<1x128xf32>
    %9 = arith.truncf %2 : vector<128x128xf32> to vector<128x128xbf16>
    %cst_15 = arith.constant dense<0.000000e+00> : vector<128x128xf32>
    %10 = tpu.matmul %9, %3, %cst_15 {dimension_numbers = #tpu.dot_dimension_numbers<[1], [0], [0], [1], [0, 0, 1, 1], [], []>} : vector<128x128xbf16>, vector<128x128xbf16>, vector<128x128xf32> -> vector<128x128xf32>
    %11 = vector.broadcast %4 : vector<1x128xf32> to vector<128x128xf32>
    %12 = arith.addf %10, %11 : vector<128x128xf32>
    %cst_16 = arith.constant 0.000000e+00 : f32
    %13 = vector.broadcast %cst_16 : f32 to vector<128x128xf32>
    %14 = arith.maximumf %12, %13 : vector<128x128xf32>
    %15 = arith.truncf %14 : vector<128x128xf32> to vector<128x128xbf16>
    %cst_17 = arith.constant dense<0.000000e+00> : vector<128x128xf32>
    %16 = tpu.matmul %15, %5, %cst_17 {dimension_numbers = #tpu.dot_dimension_numbers<[1], [0], [0], [1], [0, 0, 1, 1], [], []>} : vector<128x128xbf16>, vector<128x128xbf16>, vector<128x128xf32> -> vector<128x128xf32>
    %17 = vector.broadcast %6 : vector<1x128xf32> to vector<128x128xf32>
    %18 = arith.addf %16, %17 : vector<128x128xf32>
    %cst_18 = arith.constant dense<0.000000e+00> : vector<128xf32>
    %19 = vector.multi_reduction <add>, %18, %cst_18 [1] : vector<128x128xf32> to vector<128xf32>
    %20 = vector.shape_cast %19 : vector<128xf32> to vector<128x1xf32>
    %cst_19 = arith.constant 3.125000e-02 : f32
    %21 = vector.broadcast %cst_19 : f32 to vector<128x1xf32>
    %22 = arith.mulf %20, %21 : vector<128x1xf32>
    %23 = arith.mulf %18, %18 : vector<128x128xf32>
    %cst_20 = arith.constant dense<0.000000e+00> : vector<128xf32>
    %24 = vector.multi_reduction <add>, %23, %cst_20 [1] : vector<128x128xf32> to vector<128xf32>
    %25 = vector.shape_cast %24 : vector<128xf32> to vector<128x1xf32>
    %cst_21 = arith.constant 3.125000e-02 : f32
    %26 = vector.broadcast %cst_21 : f32 to vector<128x1xf32>
    %27 = arith.mulf %25, %26 : vector<128x1xf32>
    %28 = arith.mulf %22, %22 : vector<128x1xf32>
    %29 = arith.subf %27, %28 : vector<128x1xf32>
    %cst_22 = arith.constant 0.000000e+00 : f32
    %30 = vector.broadcast %cst_22 : f32 to vector<128x1xf32>
    %31 = arith.maximumf %29, %30 : vector<128x1xf32>
    %32 = vector.broadcast %22 : vector<128x1xf32> to vector<128x128xf32>
    %33 = arith.subf %18, %32 : vector<128x128xf32>
    %cst_23 = arith.constant 9.99999974E-6 : f32
    %34 = vector.broadcast %cst_23 : f32 to vector<128x1xf32>
    %35 = arith.addf %31, %34 : vector<128x1xf32>
    %36 = math.rsqrt %35 : vector<128x1xf32>
    %37 = vector.broadcast %36 : vector<128x1xf32> to vector<128x128xf32>
    %38 = arith.mulf %33, %37 : vector<128x128xf32>
    %39 = vector.broadcast %7 : vector<1x128xf32> to vector<128x128xf32>
    %40 = arith.mulf %38, %39 : vector<128x128xf32>
    %41 = vector.broadcast %8 : vector<1x128xf32> to vector<128x128xf32>
    %42 = arith.addf %40, %41 : vector<128x128xf32>
    %cst_24 = arith.constant 0.000000e+00 : f32
    %43 = vector.broadcast %cst_24 : f32 to vector<128x128xf32>
    %44 = arith.maximumf %42, %43 : vector<128x128xf32>
    %45 = arith.truncf %44 : vector<128x128xf32> to vector<128x128xbf16>
    %cst_25 = arith.constant dense<0.000000e+00> : vector<128x128xf32>
    %46 = tpu.matmul %0, %45, %cst_25 {dimension_numbers = #tpu.dot_dimension_numbers<[1], [0], [0], [1], [0, 0, 1, 1], [], []>} : vector<128x128xbf16>, vector<128x128xbf16>, vector<128x128xf32> -> vector<128x128xf32>
    %c0_26 = arith.constant 0 : index
    %c0_27 = arith.constant 0 : index
    %47 = vector.load %arg9[%c0_26, %c0_27] : memref<128x128xbf16, #tpu.memory_space<vmem>>, vector<128x128xbf16>
    %c0_28 = arith.constant 0 : index
    %c0_29 = arith.constant 0 : index
    %48 = vector.load %arg10[%c0_28, %c0_29] : memref<1x128xf32, #tpu.memory_space<vmem>>, vector<1x128xf32>
    %c0_30 = arith.constant 0 : index
    %c0_31 = arith.constant 0 : index
    %49 = vector.load %arg11[%c0_30, %c0_31] : memref<128x128xbf16, #tpu.memory_space<vmem>>, vector<128x128xbf16>
    %c0_32 = arith.constant 0 : index
    %c0_33 = arith.constant 0 : index
    %50 = vector.load %arg12[%c0_32, %c0_33] : memref<1x128xf32, #tpu.memory_space<vmem>>, vector<1x128xf32>
    %c0_34 = arith.constant 0 : index
    %c0_35 = arith.constant 0 : index
    %51 = vector.load %arg13[%c0_34, %c0_35] : memref<1x128xf32, #tpu.memory_space<vmem>>, vector<1x128xf32>
    %c0_36 = arith.constant 0 : index
    %c0_37 = arith.constant 0 : index
    %52 = vector.load %arg14[%c0_36, %c0_37] : memref<1x128xf32, #tpu.memory_space<vmem>>, vector<1x128xf32>
    %53 = arith.truncf %46 : vector<128x128xf32> to vector<128x128xbf16>
    %cst_38 = arith.constant dense<0.000000e+00> : vector<128x128xf32>
    %54 = tpu.matmul %53, %47, %cst_38 {dimension_numbers = #tpu.dot_dimension_numbers<[1], [0], [0], [1], [0, 0, 1, 1], [], []>} : vector<128x128xbf16>, vector<128x128xbf16>, vector<128x128xf32> -> vector<128x128xf32>
    %55 = vector.broadcast %48 : vector<1x128xf32> to vector<128x128xf32>
    %56 = arith.addf %54, %55 : vector<128x128xf32>
    %cst_39 = arith.constant 0.000000e+00 : f32
    %57 = vector.broadcast %cst_39 : f32 to vector<128x128xf32>
    %58 = arith.maximumf %56, %57 : vector<128x128xf32>
    %59 = arith.truncf %58 : vector<128x128xf32> to vector<128x128xbf16>
    %cst_40 = arith.constant dense<0.000000e+00> : vector<128x128xf32>
    %60 = tpu.matmul %59, %49, %cst_40 {dimension_numbers = #tpu.dot_dimension_numbers<[1], [0], [0], [1], [0, 0, 1, 1], [], []>} : vector<128x128xbf16>, vector<128x128xbf16>, vector<128x128xf32> -> vector<128x128xf32>
    %61 = vector.broadcast %50 : vector<1x128xf32> to vector<128x128xf32>
    %62 = arith.addf %60, %61 : vector<128x128xf32>
    %cst_41 = arith.constant dense<0.000000e+00> : vector<128xf32>
    %63 = vector.multi_reduction <add>, %62, %cst_41 [1] : vector<128x128xf32> to vector<128xf32>
    %64 = vector.shape_cast %63 : vector<128xf32> to vector<128x1xf32>
    %cst_42 = arith.constant 3.125000e-02 : f32
    %65 = vector.broadcast %cst_42 : f32 to vector<128x1xf32>
    %66 = arith.mulf %64, %65 : vector<128x1xf32>
    %67 = arith.mulf %62, %62 : vector<128x128xf32>
    %cst_43 = arith.constant dense<0.000000e+00> : vector<128xf32>
    %68 = vector.multi_reduction <add>, %67, %cst_43 [1] : vector<128x128xf32> to vector<128xf32>
    %69 = vector.shape_cast %68 : vector<128xf32> to vector<128x1xf32>
    %cst_44 = arith.constant 3.125000e-02 : f32
    %70 = vector.broadcast %cst_44 : f32 to vector<128x1xf32>
    %71 = arith.mulf %69, %70 : vector<128x1xf32>
    %72 = arith.mulf %66, %66 : vector<128x1xf32>
    %73 = arith.subf %71, %72 : vector<128x1xf32>
    %cst_45 = arith.constant 0.000000e+00 : f32
    %74 = vector.broadcast %cst_45 : f32 to vector<128x1xf32>
    %75 = arith.maximumf %73, %74 : vector<128x1xf32>
    %76 = vector.broadcast %66 : vector<128x1xf32> to vector<128x128xf32>
    %77 = arith.subf %62, %76 : vector<128x128xf32>
    %cst_46 = arith.constant 9.99999974E-6 : f32
    %78 = vector.broadcast %cst_46 : f32 to vector<128x1xf32>
    %79 = arith.addf %75, %78 : vector<128x1xf32>
    %80 = math.rsqrt %79 : vector<128x1xf32>
    %81 = vector.broadcast %80 : vector<128x1xf32> to vector<128x128xf32>
    %82 = arith.mulf %77, %81 : vector<128x128xf32>
    %83 = vector.broadcast %51 : vector<1x128xf32> to vector<128x128xf32>
    %84 = arith.mulf %82, %83 : vector<128x128xf32>
    %85 = vector.broadcast %52 : vector<1x128xf32> to vector<128x128xf32>
    %86 = arith.addf %84, %85 : vector<128x128xf32>
    %cst_47 = arith.constant 0.000000e+00 : f32
    %87 = vector.broadcast %cst_47 : f32 to vector<128x128xf32>
    %88 = arith.maximumf %86, %87 : vector<128x128xf32>
    %89 = arith.truncf %88 : vector<128x128xf32> to vector<128x128xbf16>
    %cst_48 = arith.constant dense<0.000000e+00> : vector<128x128xf32>
    %90 = tpu.matmul %0, %89, %cst_48 {dimension_numbers = #tpu.dot_dimension_numbers<[1], [0], [0], [1], [0, 0, 1, 1], [], []>} : vector<128x128xbf16>, vector<128x128xbf16>, vector<128x128xf32> -> vector<128x128xf32>
    %c0_49 = arith.constant 0 : index
    %c0_50 = arith.constant 0 : index
    %91 = vector.load %arg15[%c0_49, %c0_50] : memref<128x128xbf16, #tpu.memory_space<vmem>>, vector<128x128xbf16>
    %c0_51 = arith.constant 0 : index
    %c0_52 = arith.constant 0 : index
    %92 = vector.load %arg16[%c0_51, %c0_52] : memref<1x128xf32, #tpu.memory_space<vmem>>, vector<1x128xf32>
    %c0_53 = arith.constant 0 : index
    %c0_54 = arith.constant 0 : index
    %93 = vector.load %arg17[%c0_53, %c0_54] : memref<128x128xbf16, #tpu.memory_space<vmem>>, vector<128x128xbf16>
    %c0_55 = arith.constant 0 : index
    %c0_56 = arith.constant 0 : index
    %94 = vector.load %arg18[%c0_55, %c0_56] : memref<1x128xf32, #tpu.memory_space<vmem>>, vector<1x128xf32>
    %c0_57 = arith.constant 0 : index
    %c0_58 = arith.constant 0 : index
    %95 = vector.load %arg19[%c0_57, %c0_58] : memref<1x128xf32, #tpu.memory_space<vmem>>, vector<1x128xf32>
    %c0_59 = arith.constant 0 : index
    %c0_60 = arith.constant 0 : index
    %96 = vector.load %arg20[%c0_59, %c0_60] : memref<1x128xf32, #tpu.memory_space<vmem>>, vector<1x128xf32>
    %97 = arith.truncf %90 : vector<128x128xf32> to vector<128x128xbf16>
    %cst_61 = arith.constant dense<0.000000e+00> : vector<128x128xf32>
    %98 = tpu.matmul %97, %91, %cst_61 {dimension_numbers = #tpu.dot_dimension_numbers<[1], [0], [0], [1], [0, 0, 1, 1], [], []>} : vector<128x128xbf16>, vector<128x128xbf16>, vector<128x128xf32> -> vector<128x128xf32>
    %99 = vector.broadcast %92 : vector<1x128xf32> to vector<128x128xf32>
    %100 = arith.addf %98, %99 : vector<128x128xf32>
    %cst_62 = arith.constant 0.000000e+00 : f32
    %101 = vector.broadcast %cst_62 : f32 to vector<128x128xf32>
    %102 = arith.maximumf %100, %101 : vector<128x128xf32>
    %103 = arith.truncf %102 : vector<128x128xf32> to vector<128x128xbf16>
    %cst_63 = arith.constant dense<0.000000e+00> : vector<128x128xf32>
    %104 = tpu.matmul %103, %93, %cst_63 {dimension_numbers = #tpu.dot_dimension_numbers<[1], [0], [0], [1], [0, 0, 1, 1], [], []>} : vector<128x128xbf16>, vector<128x128xbf16>, vector<128x128xf32> -> vector<128x128xf32>
    %105 = vector.broadcast %94 : vector<1x128xf32> to vector<128x128xf32>
    %106 = arith.addf %104, %105 : vector<128x128xf32>
    %cst_64 = arith.constant dense<0.000000e+00> : vector<128xf32>
    %107 = vector.multi_reduction <add>, %106, %cst_64 [1] : vector<128x128xf32> to vector<128xf32>
    %108 = vector.shape_cast %107 : vector<128xf32> to vector<128x1xf32>
    %cst_65 = arith.constant 3.125000e-02 : f32
    %109 = vector.broadcast %cst_65 : f32 to vector<128x1xf32>
    %110 = arith.mulf %108, %109 : vector<128x1xf32>
    %111 = arith.mulf %106, %106 : vector<128x128xf32>
    %cst_66 = arith.constant dense<0.000000e+00> : vector<128xf32>
    %112 = vector.multi_reduction <add>, %111, %cst_66 [1] : vector<128x128xf32> to vector<128xf32>
    %113 = vector.shape_cast %112 : vector<128xf32> to vector<128x1xf32>
    %cst_67 = arith.constant 3.125000e-02 : f32
    %114 = vector.broadcast %cst_67 : f32 to vector<128x1xf32>
    %115 = arith.mulf %113, %114 : vector<128x1xf32>
    %116 = arith.mulf %110, %110 : vector<128x1xf32>
    %117 = arith.subf %115, %116 : vector<128x1xf32>
    %cst_68 = arith.constant 0.000000e+00 : f32
    %118 = vector.broadcast %cst_68 : f32 to vector<128x1xf32>
    %119 = arith.maximumf %117, %118 : vector<128x1xf32>
    %120 = vector.broadcast %110 : vector<128x1xf32> to vector<128x128xf32>
    %121 = arith.subf %106, %120 : vector<128x128xf32>
    %cst_69 = arith.constant 9.99999974E-6 : f32
    %122 = vector.broadcast %cst_69 : f32 to vector<128x1xf32>
    %123 = arith.addf %119, %122 : vector<128x1xf32>
    %124 = math.rsqrt %123 : vector<128x1xf32>
    %125 = vector.broadcast %124 : vector<128x1xf32> to vector<128x128xf32>
    %126 = arith.mulf %121, %125 : vector<128x128xf32>
    %127 = vector.broadcast %95 : vector<1x128xf32> to vector<128x128xf32>
    %128 = arith.mulf %126, %127 : vector<128x128xf32>
    %129 = vector.broadcast %96 : vector<1x128xf32> to vector<128x128xf32>
    %130 = arith.addf %128, %129 : vector<128x128xf32>
    %cst_70 = arith.constant 0.000000e+00 : f32
    %131 = vector.broadcast %cst_70 : f32 to vector<128x128xf32>
    %132 = arith.maximumf %130, %131 : vector<128x128xf32>
    %133 = arith.truncf %132 : vector<128x128xf32> to vector<128x128xbf16>
    %c0_71 = arith.constant 0 : index
    %c0_72 = arith.constant 0 : index
    %134 = vector.load %arg21[%c0_71, %c0_72] : memref<2x128xbf16, #tpu.memory_space<vmem>>, vector<2x128xbf16>
    %cst_73 = arith.constant dense<0.000000e+00> : vector<2x128xf32>
    %135 = tpu.matmul %134, %133, %cst_73 {dimension_numbers = #tpu.dot_dimension_numbers<[1], [0], [0], [1], [0, 0, 1, 1], [], []>} : vector<2x128xbf16>, vector<128x128xbf16>, vector<2x128xf32> -> vector<2x128xf32>
    %c0_74 = arith.constant 0 : index
    %c0_75 = arith.constant 0 : index
    %136 = vector.load %arg23[%c0_74, %c0_75] : memref<128x128xf32, #tpu.memory_space<vmem>>, vector<128x128xf32>
    %cst_76 = arith.constant dense<0.000000e+00> : vector<2x128xf32>
    %137 = tpu.matmul %135, %136, %cst_76 {dimension_numbers = #tpu.dot_dimension_numbers<[1], [0], [0], [1], [0, 0, 1, 1], [], []>} : vector<2x128xf32>, vector<128x128xf32>, vector<2x128xf32> -> vector<2x128xf32>
    %c0_77 = arith.constant 0 : index
    %c0_78 = arith.constant 0 : index
    %138 = vector.load %arg22[%c0_77, %c0_78] : memref<2x4xf32, #tpu.memory_space<vmem>>, vector<2x4xf32>
    %c0_79 = arith.constant 0 : index
    %c0_80 = arith.constant 0 : index
    %139 = vector.load %arg24[%c0_79, %c0_80] : memref<4x128xf32, #tpu.memory_space<vmem>>, vector<4x128xf32>
    %cst_81 = arith.constant dense<0.000000e+00> : vector<2x128xf32>
    %140 = tpu.matmul %138, %139, %cst_81 {dimension_numbers = #tpu.dot_dimension_numbers<[1], [0], [0], [1], [0, 0, 1, 1], [], []>} : vector<2x4xf32>, vector<4x128xf32>, vector<2x128xf32> -> vector<2x128xf32>
    %141 = arith.addf %137, %140 : vector<2x128xf32>
    %c0_82 = arith.constant 0 : index
    %c0_83 = arith.constant 0 : index
    %142 = vector.load %arg25[%c0_82, %c0_83] : memref<1x128xf32, #tpu.memory_space<vmem>>, vector<1x128xf32>
    %143 = vector.broadcast %142 : vector<1x128xf32> to vector<2x128xf32>
    %144 = arith.addf %141, %143 : vector<2x128xf32>
    %cst_84 = arith.constant 0.000000e+00 : f32
    %145 = vector.broadcast %cst_84 : f32 to vector<2x128xf32>
    %146 = arith.maximumf %144, %145 : vector<2x128xf32>
    %c0_85 = arith.constant 0 : index
    %c0_86 = arith.constant 0 : index
    %147 = vector.load %arg26[%c0_85, %c0_86] : memref<128x3xf32, #tpu.memory_space<vmem>>, vector<128x3xf32>
    %cst_87 = arith.constant dense<0.000000e+00> : vector<2x3xf32>
    %148 = tpu.matmul %146, %147, %cst_87 {dimension_numbers = #tpu.dot_dimension_numbers<[1], [0], [0], [1], [0, 0, 1, 1], [], []>} : vector<2x128xf32>, vector<128x3xf32>, vector<2x3xf32> -> vector<2x3xf32>
    %c0_88 = arith.constant 0 : index
    %c0_89 = arith.constant 0 : index
    %149 = vector.load %arg27[%c0_88, %c0_89] : memref<1x3xf32, #tpu.memory_space<vmem>>, vector<1x3xf32>
    %150 = vector.broadcast %149 : vector<1x3xf32> to vector<2x3xf32>
    %151 = arith.addf %148, %150 : vector<2x3xf32>
    %c0_90 = arith.constant 0 : index
    %c0_91 = arith.constant 0 : index
    %152 = vector.load %arg28[%c0_90, %c0_91] : memref<2x3xf32, #tpu.memory_space<vmem>>, vector<2x3xf32>
    tpu.vector_store %arg28[%c0_90, %c0_91], %151 {strides = array<i32>} : memref<2x3xf32, #tpu.memory_space<vmem>>, vector<2x3xf32>,
    return
  }
  func.func @transform_0(%arg0: i32) -> (i32, i32) {
    %c0_i32 = arith.constant 0 : i32
    %c0_i32_0 = arith.constant 0 : i32
    %c0_i32_1 = arith.constant 0 : i32
    return %c0_i32, %c0_i32_0 : i32, i32
  }
  func.func @transform_1(%arg0: i32) -> (i32, i32) {
    %c0_i32 = arith.constant 0 : i32
    %c0_i32_0 = arith.constant 0 : i32
    %c0_i32_1 = arith.constant 0 : i32
    return %c0_i32, %c0_i32_0 : i32, i32
  }
  func.func @transform_2(%arg0: i32) -> (i32, i32) {
    %c0_i32 = arith.constant 0 : i32
    %c0_i32_0 = arith.constant 0 : i32
    %c0_i32_1 = arith.constant 0 : i32
    return %c0_i32, %c0_i32_0 : i32, i32
  }
  func.func @transform_3(%arg0: i32) -> (i32, i32) {
    %c0_i32 = arith.constant 0 : i32
    %c0_i32_0 = arith.constant 0 : i32
    %c0_i32_1 = arith.constant 0 : i32
    return %c0_i32, %c0_i32_0 : i32, i32
  }
  func.func @transform_4(%arg0: i32) -> (i32, i32) {
    %c0_i32 = arith.constant 0 : i32
    %c0_i32_0 = arith.constant 0 : i32
    %c0_i32_1 = arith.constant 0 : i32
    return %c0_i32, %c0_i32_0 : i32, i32
  }
  func.func @transform_5(%arg0: i32) -> (i32, i32) {
    %c0_i32 = arith.constant 0 : i32
    %c0_i32_0 = arith.constant 0 : i32
    %c0_i32_1 = arith.constant 0 : i32
    return %c0_i32, %c0_i32_0 : i32, i32
  }
  func.func @transform_6(%arg0: i32) -> (i32, i32) {
    %c0_i32 = arith.constant 0 : i32
    %c0_i32_0 = arith.constant 0 : i32
    %c0_i32_1 = arith.constant 0 : i32
    return %c0_i32, %c0_i32_0 : i32, i32
  }
  func.func @transform_7(%arg0: i32) -> (i32, i32) {
    %c0_i32 = arith.constant 0 : i32
    %c0_i32_0 = arith.constant 0 : i32
    %c0_i32_1 = arith.constant 0 : i32
    return %c0_i32, %c0_i32_0 : i32, i32
  }
  func.func @transform_8(%arg0: i32) -> (i32, i32) {
    %c0_i32 = arith.constant 0 : i32
    %c0_i32_0 = arith.constant 0 : i32
    %c0_i32_1 = arith.constant 0 : i32
    return %c0_i32, %c0_i32_0 : i32, i32
  }
  func.func @transform_9(%arg0: i32) -> (i32, i32) {
    %c0_i32 = arith.constant 0 : i32
    %c0_i32_0 = arith.constant 0 : i32
    %c0_i32_1 = arith.constant 0 : i32
    return %c0_i32, %c0_i32_0 : i32, i32
  }
  func.func @transform_10(%arg0: i32) -> (i32, i32) {
    %c0_i32 = arith.constant 0 : i32
    %c0_i32_0 = arith.constant 0 : i32
    %c0_i32_1 = arith.constant 0 : i32
    return %c0_i32, %c0_i32_0 : i32, i32
  }
  func.func @transform_11(%arg0: i32) -> (i32, i32) {
    %c0_i32 = arith.constant 0 : i32
    %c0_i32_0 = arith.constant 0 : i32
    %c0_i32_1 = arith.constant 0 : i32
    return %c0_i32, %c0_i32_0 : i32, i32
  }
  func.func @transform_12(%arg0: i32) -> (i32, i32) {
    %c0_i32 = arith.constant 0 : i32
    %c0_i32_0 = arith.constant 0 : i32
    %c0_i32_1 = arith.constant 0 : i32
    return %c0_i32, %c0_i32_0 : i32, i32
  }
  func.func @transform_13(%arg0: i32) -> (i32, i32) {
    %c0_i32 = arith.constant 0 : i32
    %c0_i32_0 = arith.constant 0 : i32
    %c0_i32_1 = arith.constant 0 : i32
    return %c0_i32, %c0_i32_0 : i32, i32
  }
  func.func @transform_14(%arg0: i32) -> (i32, i32) {
    %c0_i32 = arith.constant 0 : i32
    %c0_i32_0 = arith.constant 0 : i32
    %c0_i32_1 = arith.constant 0 : i32
    return %c0_i32, %c0_i32_0 : i32, i32
  }
  func.func @transform_15(%arg0: i32) -> (i32, i32) {
    %c0_i32 = arith.constant 0 : i32
    %c0_i32_0 = arith.constant 0 : i32
    %c0_i32_1 = arith.constant 0 : i32
    return %c0_i32, %c0_i32_0 : i32, i32
  }
  func.func @transform_16(%arg0: i32) -> (i32, i32) {
    %c0_i32 = arith.constant 0 : i32
    %c0_i32_0 = arith.constant 0 : i32
    %c0_i32_1 = arith.constant 0 : i32
    return %c0_i32, %c0_i32_0 : i32, i32
  }
  func.func @transform_17(%arg0: i32) -> (i32, i32) {
    %c0_i32 = arith.constant 0 : i32
    %c0_i32_0 = arith.constant 0 : i32
    %c0_i32_1 = arith.constant 0 : i32
    return %c0_i32, %c0_i32_0 : i32, i32
  }
  func.func @transform_18(%arg0: i32) -> (i32, i32) {
    %c0_i32 = arith.constant 0 : i32
    %c0_i32_0 = arith.constant 0 : i32
    %c0_i32_1 = arith.constant 0 : i32
    return %c0_i32, %c0_i32_0 : i32, i32
  }
  func.func @transform_19(%arg0: i32) -> (i32, i32) {
    %c0_i32 = arith.constant 0 : i32
    %c0_i32_0 = arith.constant 0 : i32
    %c0_i32_1 = arith.constant 0 : i32
    return %c0_i32, %c0_i32_0 : i32, i32
  }
  func.func @transform_20(%arg0: i32) -> (i32, i32) {
    %c0_i32 = arith.constant 0 : i32
    %c0_i32_0 = arith.constant 0 : i32
    %c0_i32_1 = arith.constant 0 : i32
    return %c0_i32, %c0_i32_0 : i32, i32
  }
  func.func @transform_21(%arg0: i32) -> (i32, i32) {
    %c0_i32 = arith.constant 0 : i32
    %c0_i32_0 = arith.constant 0 : i32
    %c0_i32_1 = arith.constant 0 : i32
    return %c0_i32, %c0_i32_0 : i32, i32
  }
  func.func @transform_22(%arg0: i32) -> (i32, i32) {
    %c0_i32 = arith.constant 0 : i32
    %c0_i32_0 = arith.constant 0 : i32
    %c0_i32_1 = arith.constant 0 : i32
    return %c0_i32, %c0_i32_0 : i32, i32
  }
  func.func @transform_23(%arg0: i32) -> (i32, i32) {
    %c0_i32 = arith.constant 0 : i32
    %c0_i32_0 = arith.constant 0 : i32
    %c0_i32_1 = arith.constant 0 : i32
    return %c0_i32, %c0_i32_0 : i32, i32
  }
  func.func @transform_24(%arg0: i32) -> (i32, i32) {
    %c0_i32 = arith.constant 0 : i32
    %c0_i32_0 = arith.constant 0 : i32
    %c0_i32_1 = arith.constant 0 : i32
    return %c0_i32, %c0_i32_0 : i32, i32
  }
  func.func @transform_25(%arg0: i32) -> (i32, i32) {
    %c0_i32 = arith.constant 0 : i32
    %c0_i32_0 = arith.constant 0 : i32
    %c0_i32_1 = arith.constant 0 : i32
    return %c0_i32, %c0_i32_0 : i32, i32
  }
  func.func @transform_26(%arg0: i32) -> (i32, i32) {
    %c0_i32 = arith.constant 0 : i32
    %c0_i32_0 = arith.constant 0 : i32
    %c0_i32_1 = arith.constant 0 : i32
    return %c0_i32, %c0_i32_0 : i32, i32
  }
  func.func @transform_27(%arg0: i32) -> (i32, i32) {
    %c0_i32 = arith.constant 0 : i32
    %c0_i32_0 = arith.constant 0 : i32
    %c0_i32_1 = arith.constant 0 : i32
    return %c0_i32, %c0_i32_0 : i32, i32
  }
}

</mosaic_0001>

<bundles_post_ra>
// kernel: gin_model_forward.1
= control target key start
LH: loop header
LB: loop body
LE: loop exit
PB: predicated region body
PF: predicated region fallthrough
CT: control target
= control target key end

     0   :  { %s4983_s0 = inlined_call_operand.vmem [shape: bf16[128,128], index: 0, kind: input, shape index: {}]   ;;  %s4984_s1 = inlined_call_operand.vmem [shape: bf16[128,128], index: 1, kind: input, shape index: {}]   ;;  %s4985_s2 = inlined_call_operand.vmem [shape: bf16[128,128], index: 2, kind: input, shape index: {}]   ;;  %s4986_s3 = inlined_call_operand.vmem [shape: f32[1,128], index: 3, kind: input, shape index: {}]   ;;  %s4987_s4 = inlined_call_operand.vmem [shape: bf16[128,128], index: 4, kind: input, shape index: {}]   ;;  %s4988_s5 = inlined_call_operand.vmem [shape: f32[1,128], index: 5, kind: input, shape index: {}]   ;;  %s4989_s6 = inlined_call_operand.vmem [shape: f32[1,128], index: 6, kind: input, shape index: {}]   ;;  %s4990_s7 = inlined_call_operand.vmem [shape: f32[1,128], index: 7, kind: input, shape index: {}]   ;;  %s4991_s8 = inlined_call_operand.vmem [shape: bf16[128,128], index: 8, kind: input, shape index: {}]   ;;  %s4992_s9 = inlined_call_operand.vmem [shape: f32[1,128], index: 9, kind: input, shape index: {}]   ;;  %s4993_s10 = inlined_call_operand.vmem [shape: bf16[128,128], index: 10, kind: input, shape index: {}]   ;;  %s4994_s11 = inlined_call_operand.vmem [shape: f32[1,128], index: 11, kind: input, shape index: {}]   ;;  %s4995_s12 = inlined_call_operand.vmem [shape: f32[1,128], index: 12, kind: input, shape index: {}]   ;;  %s4996_s13 = inlined_call_operand.vmem [shape: f32[1,128], index: 13, kind: input, shape index: {}]   ;;  %s4997_s14 = inlined_call_operand.vmem [shape: bf16[128,128], index: 14, kind: input, shape index: {}]   ;;  %s4998_s15 = inlined_call_operand.vmem [shape: f32[1,128], index: 15, kind: input, shape index: {}]   ;;  %s4999_s16 = inlined_call_operand.vmem [shape: bf16[128,128], index: 16, kind: input, shape index: {}]   ;;  %s5000_s17 = inlined_call_operand.vmem [shape: f32[1,128], index: 17, kind: input, shape index: {}]   ;;  %s5001_s18 = inlined_call_operand.vmem [shape: f32[1,128], index: 18, kind: input, shape index: {}]   ;;  %s5002_s19 = inlined_call_operand.vmem [shape: f32[1,128], index: 19, kind: input, shape index: {}]   ;;  %s5003_s20 = inlined_call_operand.vmem [shape: bf16[2,128], index: 20, kind: input, shape index: {}]   ;;  %s5004_s21 = inlined_call_operand.vmem [shape: f32[2,4], index: 21, kind: input, shape index: {}]   ;;  %s5005_s22 = inlined_call_operand.vmem [shape: f32[128,128], index: 22, kind: input, shape index: {}]   ;;  %s5006_s23 = inlined_call_operand.vmem [shape: f32[4,128], index: 23, kind: input, shape index: {}]   ;;  %s5007_s24 = inlined_call_operand.vmem [shape: f32[1,128], index: 24, kind: input, shape index: {}]   ;;  %s5008_s25 = inlined_call_operand.vmem [shape: f32[128,3], index: 25, kind: input, shape index: {}]   ;;  %s5009_s26 = inlined_call_operand.vmem [shape: f32[1,3], index: 26, kind: input, shape index: {}]   ;;  %s5010_s27 = inlined_call_operand.hbm [shape: f32[2,3], index: 27, kind: output, shape index: {}]  }
   0x1   :  { %5017 = sst [smem:[#allocation5_spill]] %s4983_s0 }
   0x2   :  { %5018 = sst [smem:[#allocation6_spill]] %s4984_s1 }
   0x3   :  { %5019 = sst [smem:[#allocation7_spill]] %s4985_s2 }
   0x4   :  { %5020 = sst [smem:[#allocation8_spill]] %s4986_s3 }
   0x5   :  { %5021 = sst [smem:[#allocation9_spill]] %s4987_s4 }
   0x6   :  { %5022 = sst [smem:[#allocation10_spill]] %s4988_s5 }
   0x7   :  { %5023 = sst [smem:[#allocation11_spill]] %s4989_s6 }
   0x8   :  { %5024 = sst [smem:[#allocation12_spill]] %s4990_s7 }
   0x9   :  { %5025 = sst [smem:[#allocation13_spill]] %s4991_s8 }
   0xa   :  { %5026 = sst [smem:[#allocation14_spill]] %s4992_s9 }
   0xb   :  { %5027 = sst [smem:[#allocation15_spill]] %s4993_s10 }
   0xc   :  { %5028 = sst [smem:[#allocation16_spill]] %s4994_s11 }
   0xd   :  { %s5029_s8 = sld [smem:[#allocation6_spill]]  ;;  %s5030_s6 = sld [smem:[#allocation5_spill]] }
   0xe   :  { %s5031_s9 = sld [smem:[#allocation7_spill]] }
  0x13   :  { %v3522_v0 = vld [vmem:[%s5029_s8] sm:$0xff]   ;;  %v3523_v1 = vld [vmem:[%s5029_s8 + $0x8] sm:$0xff]   ;;  %v3524_v2 = vld [vmem:[%s5029_s8 + $0x10] sm:$0xff]  }
  0x14   :  { %3087 = vmatprep.subr.bf16.mxu0 %v3522_v0  ;;  %v3525_v3 = vld [vmem:[%s5029_s8 + $0x18] sm:$0xff]   ;;  %v3873_v4 = vld [vmem:[%s5030_s6] sm:$0xff]   ;;  %v3527_v6 = vld [vmem:[%s5029_s8 + $0x28] sm:$0xff]  }
  0x15   :  { %3088 = vmatpush3.bf16.msra.mxu0 %v3522_v0  ;;  %3103 = vmatprep.mubr.bf16.mxu0 %v3873_v4  ;;  %v3526_v5 = vld [vmem:[%s5029_s8 + $0x20] sm:$0xff]   ;;  %v3539_v8 = vld [vmem:[%s5031_s9 + $0x8] sm:$0xff]   ;;  %v3528_v9 = vld [vmem:[%s5029_s8 + $0x30] sm:$0xff]  }
  0x16   :  { %3089 = vmatprep.subr.bf16.mxu0 %v3523_v1  ;;  %v3538_v7 = vld [vmem:[%s5031_s9] sm:$0xff]   ;;  %v3540_v10 = vld [vmem:[%s5031_s9 + $0x10] sm:$0xff]   ;;  %v3529_v11 = vld [vmem:[%s5029_s8 + $0x38] sm:$0xff]  }
  0x17   :  { %3119 = vmatprep.subr.bf16.mxu1 %v3538_v7  ;;  %v3541_v12 = vld [vmem:[%s5031_s9 + $0x18] sm:$0xff]   ;;  %v3542_v13 = vld [vmem:[%s5031_s9 + $0x20] sm:$0xff]   ;;  %v3531_v14 = vld [vmem:[%s5030_s6 + $0x8] sm:$0xff]  }
  0x18   :  { %3120 = vmatpush3.bf16.msra.mxu1 %v3538_v7  ;;  %v3532_v15 = vld [vmem:[%s5030_s6 + $0x10] sm:$0xff]   ;;  %v3543_v16 = vld [vmem:[%s5031_s9 + $0x28] sm:$0xff]   ;;  %v3533_v18 = vld [vmem:[%s5030_s6 + $0x18] sm:$0xff]  }
  0x19   :  { %3090 = vmatpush3.bf16.msra.mxu0 %v3523_v1  ;;  %3121 = vmatprep.subr.bf16.mxu1 %v3539_v8  ;;  %v3544_v17 = vld [vmem:[%s5031_s9 + $0x30] sm:$0xff]   ;;  %v3534_v19 = vld [vmem:[%s5030_s6 + $0x20] sm:$0xff]   ;;  %v3535_v20 = vld [vmem:[%s5030_s6 + $0x28] sm:$0xff]  }
  0x1a   :  { %3091 = vmatprep.subr.bf16.mxu0 %v3524_v2  ;;  %v3536_v21 = vld [vmem:[%s5030_s6 + $0x30] sm:$0xff]  }
  0x1c   :  { %3122 = vmatpush3.bf16.msra.mxu1 %v3539_v8 }
  0x1d   :  { %3092 = vmatpush3.bf16.msra.mxu0 %v3524_v2  ;;  %3123 = vmatprep.subr.bf16.mxu1 %v3540_v10 }
  0x1e   :  { %3093 = vmatprep.subr.bf16.mxu0 %v3525_v3 }
  0x20   :  { %3124 = vmatpush3.bf16.msra.mxu1 %v3540_v10 }
  0x21   :  { %3094 = vmatpush3.bf16.msra.mxu0 %v3525_v3  ;;  %3125 = vmatprep.subr.bf16.mxu1 %v3541_v12 }
  0x22   :  { %3095 = vmatprep.subr.bf16.mxu0 %v3526_v5 }
  0x24   :  { %3126 = vmatpush3.bf16.msra.mxu1 %v3541_v12 }
  0x25   :  { %3096 = vmatpush3.bf16.msra.mxu0 %v3526_v5  ;;  %3127 = vmatprep.subr.bf16.mxu1 %v3542_v13 }
  0x26   :  { %3097 = vmatprep.subr.bf16.mxu0 %v3527_v6 }
  0x28   :  { %3128 = vmatpush3.bf16.msra.mxu1 %v3542_v13 }
  0x29   :  { %3098 = vmatpush3.bf16.msra.mxu0 %v3527_v6  ;;  %3129 = vmatprep.subr.bf16.mxu1 %v3543_v16 }
  0x2a   :  { %3099 = vmatprep.subr.bf16.mxu0 %v3528_v9 }
  0x2c   :  { %3130 = vmatpush3.bf16.msra.mxu1 %v3543_v16 }
  0x2d   :  { %3100 = vmatpush3.bf16.msra.mxu0 %v3528_v9  ;;  %3131 = vmatprep.subr.bf16.mxu1 %v3544_v17 }
  0x2e   :  { %3101 = vmatprep.subr.bf16.mxu0 %v3529_v11 }
  0x30   :  { %3132 = vmatpush3.bf16.msra.mxu1 %v3544_v17 }
  0x31   :  { %3102 = vmatpush3.bf16.msra.mxu0 %v3529_v11 }
  0x34   :  { %3104 = vmatmul.mubr.bf16.vlgmr.msra.gmra.mrb[0].mxu0 %v3531_v14 }
  0x35   :  { %3107 = vmatprep.mubr.bf16.mxu0 %v3532_v15 }
  0x3c   :  { %3108 = vmatmul.mubr.bf16.gmra.mrb[4].mxu0 %v3533_v18 }
  0x3d   :  { %3111 = vmatprep.mubr.bf16.mxu0 %v3534_v19 }
  0x44   :  { %3112 = vmatmul.mubr.bf16.gmra.mrb[8].mxu0 %v3535_v20 }
  0x45   :  { %32 = vsyncpa [#allocation3], 0  ;;  %3115 = vmatprep.mubr.bf16.mxu0 %v3536_v21  ;;  %v3930_v22 = vld [vmem:[%s5030_s6 + $0x38] sm:$0xff]   ;;  %s5032_s3 = sld [smem:[#allocation9_spill]]  ;;  %s5033_s5 = sld [smem:[#allocation8_spill]]  ;;  %vm3715_vm0 = vmmov 0  }
  0x46   :  { %v3545_v23 = vld [vmem:[%s5031_s9 + $0x38] sm:$0xff]   ;;  %s5034_s28 = sld [smem:[#allocation10_spill]]  ;;  %s5035_s10 = sld [smem:[#allocation13_spill]]  ;;  %vm2556_vm1 = vcmask 1043456   ;;  %vm2552_vm2 = vcmask 31744   ;;  %vm2802_vm3 = vcmask 17408  }
  0x47   :  { %3133 = vmatprep.subr.bf16.mxu1 %v3545_v23  ;;  %s5036_s1 = sld [smem:[#allocation11_spill]]  ;;  %s5037_s7 = sld [smem:[#allocation12_spill]] }
  0x48   :  { %3134 = vmatpush3.bf16.msra.mxu1 %v3545_v23  ;;  %s5039_s29 = sld [smem:[#allocation14_spill]]  ;;  %s5040_s11 = sld [smem:[#allocation16_spill]] }
  0x49   :  { %s3717_s0 = smov [#allocation2]  }
  0x4b   :  { %v3546_v24 = vld [vmem:[%s5032_s3] sm:$0xff]   ;;  %v3547_v25 = vld [vmem:[%s5032_s3 + $0x8] sm:$0xff]   ;;  %v3548_v26 = vld [vmem:[%s5032_s3 + $0x10] sm:$0xff]  }
  0x4c   :  { %3116 = vmatmul.mubr.bf16.gmra.mrb[12].mxu0 %v3930_v22  ;;  %3151 = vmatprep.subr.bf16.mxu0 %v3546_v24  ;;  %v3549_v27 = vld [vmem:[%s5032_s3 + $0x18] sm:$0xff]   ;;  %v3550_v28 = vld [vmem:[%s5032_s3 + $0x20] sm:$0xff]   ;;  %v3551_v29 = vld [vmem:[%s5032_s3 + $0x28] sm:$0xff]  }
  0x4d   :  { %3152 = vmatpush3.bf16.msra.mxu0 %v3546_v24  ;;  %v3552_v54 = vld [vmem:[%s5032_s3 + $0x30] sm:$0xff]   ;;  %v3553_v55 = vld [vmem:[%s5032_s3 + $0x38] sm:$0xff]   ;;  %v2834_v56 = vld [vmem:[%s5033_s5] ss:$0 sm:$0xff]  ;;  %s5038_s3 = sld [smem:[#allocation15_spill]] }
  0x4e   :  { %3153 = vmatprep.subr.bf16.mxu0 %v3547_v25 }
  0x51   :  { %3154 = vmatpush3.bf16.msra.mxu0 %v3547_v25 }
  0x52   :  { %3155 = vmatprep.subr.bf16.mxu0 %v3548_v26 }
  0x55   :  { %3156 = vmatpush3.bf16.msra.mxu0 %v3548_v26 }
  0x56   :  { %3157 = vmatprep.subr.bf16.mxu0 %v3549_v27 }
  0x59   :  { %3158 = vmatpush3.bf16.msra.mxu0 %v3549_v27 }
  0x5a   :  { %3159 = vmatprep.subr.bf16.mxu0 %v3550_v28 }
  0x5d   :  { %3160 = vmatpush3.bf16.msra.mxu0 %v3550_v28 }
  0x5e   :  { %3161 = vmatprep.subr.bf16.mxu0 %v3551_v29 }
  0x61   :  { %3162 = vmatpush3.bf16.msra.mxu0 %v3551_v29 }
  0x62   :  { %3163 = vmatprep.subr.bf16.mxu0 %v3552_v54 }
  0x65   :  { %3164 = vmatpush3.bf16.msra.mxu0 %v3552_v54 }
  0x66   :  { %3165 = vmatprep.subr.bf16.mxu0 %v3553_v55 }
  0x69   :  { %3166 = vmatpush3.bf16.msra.mxu0 %v3553_v55 }
 0x107   :  { %v3105_v30 = vpop.f32.mrb[0].mxu0 }
 0x108   :  { %v250_v31 = vpop.f32.mrb[1].mxu0 }
 0x109   :  { %v3106_v32 = vpop.f32.mrb[2].mxu0 }
 0x10a   :  { %v350_v33 = vpack.c.bf16 %v3106_v32, %v3105_v30  ;;  %v253_v34 = vpop.f32.mrb[3].mxu0 }
 0x10b   :  { %v349_v35 = vpack.c.bf16 %v253_v34, %v250_v31 }
 0x10d   :  { %3135 = vmatprep.mubr.bf16.mxu1 %v349_v35 }
 0x10e   :  { %3136 = vmatmul.mubr.bf16.vlgmr.msra.gmra.mrb[0].mxu1 %v350_v33 }
 0x10f   :  { %v3109_v36 = vpop.f32.mrb[4].mxu0 }
 0x110   :  { %v266_v37 = vpop.f32.mrb[5].mxu0 }
 0x111   :  { %v3110_v38 = vpop.f32.mrb[6].mxu0 }
 0x112   :  { %v352_v39 = vpack.c.bf16 %v3110_v38, %v3109_v36  ;;  %v269_v40 = vpop.f32.mrb[7].mxu0 }
 0x113   :  { %v351_v41 = vpack.c.bf16 %v269_v40, %v266_v37 }
 0x115   :  { %3139 = vmatprep.mubr.bf16.mxu1 %v351_v41 }
 0x116   :  { %3140 = vmatmul.mubr.bf16.gmra.mrb[4].mxu1 %v352_v39 }
 0x117   :  { %v3113_v42 = vpop.f32.mrb[8].mxu0 }
 0x118   :  { %v282_v43 = vpop.f32.mrb[9].mxu0 }
 0x119   :  { %v3114_v44 = vpop.f32.mrb[10].mxu0 }
 0x11a   :  { %v354_v45 = vpack.c.bf16 %v3114_v44, %v3113_v42  ;;  %v285_v46 = vpop.f32.mrb[11].mxu0 }
 0x11b   :  { %v353_v47 = vpack.c.bf16 %v285_v46, %v282_v43 }
 0x11d   :  { %3143 = vmatprep.mubr.bf16.mxu1 %v353_v47 }
 0x11e   :  { %3144 = vmatmul.mubr.bf16.gmra.mrb[8].mxu1 %v354_v45 }
 0x11f   :  { %v3117_v48 = vpop.f32.mrb[12].mxu0 }
 0x120   :  { %v298_v49 = vpop.f32.mrb[13].mxu0 }
 0x121   :  { %v3118_v50 = vpop.f32.mrb[14].mxu0 }
 0x122   :  { %v356_v51 = vpack.c.bf16 %v3118_v50, %v3117_v48  ;;  %v301_v52 = vpop.f32.mrb[15].mxu0  ;;  %v3967_v50 = vld [vmem:[%s5034_s28] ss:$0 sm:$0xff] }
 0x123   :  { %v355_v53 = vpack.c.bf16 %v301_v52, %v298_v49 }
 0x125   :  { %3147 = vmatprep.mubr.bf16.mxu1 %v355_v53 }
 0x126   :  { %3148 = vmatmul.mubr.bf16.gmra.mrb[12].mxu1 %v356_v51 }
 0x127   :  { %3199 = vmatprep.mubr.bf16.mxu1 %v3873_v4 }
 0x1e1   :  { %v3137_v57 = vpop.f32.mrb[0].mxu1 }
 0x1e2   :  { %v454_v58 = vadd.f32 %v3137_v57, %v2834_v56  ;;  %v445_v59 = vpop.f32.mrb[1].mxu1 }
 0x1e3   :  { %v446_v60 = vadd.f32 %v2834_v56, %v445_v59  ;;  %v3138_v61 = vpop.f32.mrb[2].mxu1 }
 0x1e4   :  { %v457_v62 = vadd.f32 %v3138_v61, %v2834_v56  ;;  %v448_v63 = vpop.f32.mrb[3].mxu1  ;;  %v510_v1 = vmax.f32 %v454_v58, 0.0 }
 0x1e5   :  { %v449_v0 = vadd.f32 %v2834_v56, %v448_v63  ;;  %v508_v3 = vmax.f32 %v446_v60, 0.0 }
 0x1e6   :  { %v511_v2 = vmax.f32 %v457_v62, 0.0 }
 0x1e7   :  { %v509_v4 = vmax.f32 %v449_v0, 0.0 }
 0x1e8   :  { %v525_v5 = vpack.c.bf16 %v511_v2, %v510_v1 }
 0x1e9   :  { %v524_v6 = vpack.c.bf16 %v509_v4, %v508_v3  ;;  %v3141_v7 = vpop.f32.mrb[4].mxu1 }
 0x1ea   :  { %v470_v8 = vadd.f32 %v3141_v7, %v2834_v56  ;;  %v461_v9 = vpop.f32.mrb[5].mxu1 }
 0x1eb   :  { %v462_v10 = vadd.f32 %v2834_v56, %v461_v9  ;;  %v3142_v11 = vpop.f32.mrb[6].mxu1  ;;  %3167 = vmatprep.mubr.bf16.mxu0 %v524_v6 }
 0x1ec   :  { %v514_v12 = vmax.f32 %v470_v8, 0.0  ;;  %v473_v13 = vadd.f32 %v3142_v11, %v2834_v56  ;;  %v464_v14 = vpop.f32.mrb[7].mxu1  ;;  %3168 = vmatmul.mubr.bf16.vlgmr.msra.gmra.mrb[16].mxu0 %v525_v5 }
 0x1ed   :  { %v512_v15 = vmax.f32 %v462_v10, 0.0  ;;  %v465_v16 = vadd.f32 %v2834_v56, %v464_v14 }
 0x1ee   :  { %v515_v17 = vmax.f32 %v473_v13, 0.0 }
 0x1ef   :  { %v513_v18 = vmax.f32 %v465_v16, 0.0 }
 0x1f0   :  { %v527_v19 = vpack.c.bf16 %v515_v17, %v514_v12 }
 0x1f1   :  { %v526_v20 = vpack.c.bf16 %v513_v18, %v512_v15  ;;  %v3145_v21 = vpop.f32.mrb[8].mxu1 }
 0x1f2   :  { %v486_v23 = vadd.f32 %v3145_v21, %v2834_v56  ;;  %v477_v24 = vpop.f32.mrb[9].mxu1 }
 0x1f3   :  { %3171 = vmatprep.mubr.bf16.mxu0 %v526_v20  ;;  %v478_v25 = vadd.f32 %v2834_v56, %v477_v24  ;;  %v3146_v26 = vpop.f32.mrb[10].mxu1 }
 0x1f4   :  { %3172 = vmatmul.mubr.bf16.gmra.mrb[20].mxu0 %v527_v19  ;;  %v518_v27 = vmax.f32 %v486_v23, 0.0  ;;  %v489_v28 = vadd.f32 %v3146_v26, %v2834_v56  ;;  %v480_v29 = vpop.f32.mrb[11].mxu1 }
 0x1f5   :  { %v516_v30 = vmax.f32 %v478_v25, 0.0  ;;  %v481_v31 = vadd.f32 %v2834_v56, %v480_v29 }
 0x1f6   :  { %v519_v32 = vmax.f32 %v489_v28, 0.0 }
 0x1f7   :  { %v517_v33 = vmax.f32 %v481_v31, 0.0 }
 0x1f8   :  { %v529_v34 = vpack.c.bf16 %v519_v32, %v518_v27 }
 0x1f9   :  { %v528_v35 = vpack.c.bf16 %v517_v33, %v516_v30  ;;  %v3149_v36 = vpop.f32.mrb[12].mxu1 }
 0x1fa   :  { %v502_v37 = vadd.f32 %v3149_v36, %v2834_v56  ;;  %v493_v38 = vpop.f32.mrb[13].mxu1  ;;  %v3554_v36 = vld [vmem:[%s5035_s10] sm:$0xff]  }
 0x1fb   :  { %3175 = vmatprep.mubr.bf16.mxu0 %v528_v35  ;;  %v494_v39 = vadd.f32 %v2834_v56, %v493_v38  ;;  %v3150_v40 = vpop.f32.mrb[14].mxu1  ;;  %3215 = vmatprep.subr.bf16.mxu0 %v3554_v36  ;;  %v3556_v38 = vld [vmem:[%s5035_s10 + $0x10] sm:$0xff]  }
 0x1fc   :  { %3176 = vmatmul.mubr.bf16.gmra.mrb[24].mxu0 %v529_v34  ;;  %v522_v41 = vmax.f32 %v502_v37, 0.0  ;;  %v505_v42 = vadd.f32 %v3150_v40, %v2834_v56  ;;  %v496_v43 = vpop.f32.mrb[15].mxu1  ;;  %v3555_v37 = vld [vmem:[%s5035_s10 + $0x8] sm:$0xff]   ;;  %v3557_v40 = vld [vmem:[%s5035_s10 + $0x18] sm:$0xff]  }
 0x1fd   :  { %v520_v44 = vmax.f32 %v494_v39, 0.0  ;;  %v497_v45 = vadd.f32 %v2834_v56, %v496_v43  ;;  %3216 = vmatpush3.bf16.msra.mxu0 %v3554_v36  ;;  %v3558_v43 = vld [vmem:[%s5035_s10 + $0x20] sm:$0xff]  }
 0x1fe   :  { %v523_v46 = vmax.f32 %v505_v42, 0.0  ;;  %3217 = vmatprep.subr.bf16.mxu0 %v3555_v37 }
 0x1ff   :  { %v521_v47 = vmax.f32 %v497_v45, 0.0 }
 0x200   :  { %v531_v48 = vpack.c.bf16 %v523_v46, %v522_v41 }
 0x201   :  { %v530_v49 = vpack.c.bf16 %v521_v47, %v520_v44  ;;  %3218 = vmatpush3.bf16.msra.mxu0 %v3555_v37 }
 0x202   :  { %3219 = vmatprep.subr.bf16.mxu0 %v3556_v38 }
 0x203   :  { %3179 = vmatprep.mubr.bf16.mxu0 %v530_v49 }
 0x204   :  { %3180 = vmatmul.mubr.bf16.gmra.mrb[28].mxu0 %v531_v48 }
 0x205   :  { %3220 = vmatpush3.bf16.msra.mxu0 %v3556_v38 }
 0x206   :  { %3221 = vmatprep.subr.bf16.mxu0 %v3557_v40 }
 0x209   :  { %3222 = vmatpush3.bf16.msra.mxu0 %v3557_v40 }
 0x20a   :  { %3223 = vmatprep.subr.bf16.mxu0 %v3558_v43 }
 0x20d   :  { %3224 = vmatpush3.bf16.msra.mxu0 %v3558_v43 }
 0x2bf   :  { %v3169_v51 = vpop.f32.mrb[16].mxu0 }
 0x2c0   :  { %v3970_v52 = vadd.f32 %v3169_v51, %v3967_v50  ;;  %v620_v53 = vpop.f32.mrb[17].mxu0  ;;  %v3559_v51 = vld [vmem:[%s5035_s10 + $0x28] sm:$0xff]  }
 0x2c1   :  { %v3170_v54 = vpop.f32.mrb[18].mxu0  ;;  %v3973_v55 = vadd.f32 %v3967_v50, %v620_v53  ;;  %3225 = vmatprep.subr.bf16.mxu0 %v3559_v51 }
 0x2c2   :  { %v3976_v56 = vadd.f32 %v3170_v54, %v3967_v50  ;;  %687 = vadd.xlane.f32.xlu0 %v3970_v52  ;;  %v623_v57 = vpop.f32.mrb[19].mxu0  ;;  %v733_v61 = vmul.f32 %v3970_v52, %v3970_v52  ;;  %3226 = vmatpush3.bf16.msra.mxu0 %v3559_v51 }
 0x2c3   :  { %v731_v58 = vmul.f32 %v3973_v55, %v3973_v55  ;;  %v3986_v63 = vadd.f32 %v3967_v50, %v623_v57 }
 0x2c4   :  { %689 = vadd.xlane.f32.xlu1 %v3976_v56  ;;  %v734_v1 = vmul.f32 %v3976_v56, %v3976_v56 }
 0x2c5   :  { %v732_v2 = vmul.f32 %v3986_v63, %v3986_v63 }
 0x2c6   :  { %683 = vadd.xlane.f32.xlu0 %v3973_v55 }
 0x2c7   :  { %v3173_v59 = vpop.f32.mrb[20].mxu0 }
 0x2c8   :  { %v636_v60 = vpop.f32.mrb[21].mxu0  ;;  %747 = vadd.xlane.f32.xlu1 %v731_v58  ;;  %v3994_v4 = vadd.f32 %v3173_v59, %v3967_v50 }
 0x2c9   :  { %v3174_v62 = vpop.f32.mrb[22].mxu0  ;;  %v4001_v9 = vadd.f32 %v3967_v50, %v636_v60 }
 0x2ca   :  { %v639_v0 = vpop.f32.mrb[23].mxu0  ;;  %751 = vadd.xlane.f32.xlu0 %v733_v61  ;;  %v3997_v7 = vadd.f32 %v3174_v62, %v3967_v50  ;;  %v737_v12 = vmul.f32 %v3994_v4, %v3994_v4 }
 0x2cb   :  { %v4005_v10 = vadd.f32 %v3967_v50, %v639_v0  ;;  %v735_v17 = vmul.f32 %v4001_v9, %v4001_v9 }
 0x2cc   :  { %753 = vadd.xlane.f32.xlu1 %v734_v1  ;;  %v738_v15 = vmul.f32 %v3997_v7, %v3997_v7  ;;  %v3560_v1 = vld [vmem:[%s5035_s10 + $0x30] sm:$0xff]  }
 0x2cd   :  { %v736_v18 = vmul.f32 %v4005_v10, %v4005_v10  ;;  %3227 = vmatprep.subr.bf16.mxu0 %v3560_v1 }
 0x2ce   :  { %685 = vadd.xlane.f32.xlu0 %v3986_v63  ;;  %3228 = vmatpush3.bf16.msra.mxu0 %v3560_v1  ;;  %v4127_v1 = vld [vmem:[%s5036_s1] ss:$0 sm:$0xff] }
 0x2cf   :  { %v3177_v3 = vpop.f32.mrb[24].mxu0 }
 0x2d0   :  { %749 = vadd.xlane.f32.xlu1 %v732_v2  ;;  %v652_v5 = vpop.f32.mrb[25].mxu0  ;;  %v4018_v19 = vadd.f32 %v3177_v3, %v3967_v50 }
 0x2d1   :  { %v3178_v6 = vpop.f32.mrb[26].mxu0  ;;  %v4025_v21 = vadd.f32 %v3967_v50, %v652_v5 }
 0x2d2   :  { %695 = vadd.xlane.f32.xlu0 %v3994_v4  ;;  %v655_v8 = vpop.f32.mrb[27].mxu0  ;;  %v4021_v20 = vadd.f32 %v3178_v6, %v3967_v50  ;;  %v741_v24 = vmul.f32 %v4018_v19, %v4018_v19 }
 0x2d3   :  { %v4029_v23 = vadd.f32 %v3967_v50, %v655_v8  ;;  %v739_v26 = vmul.f32 %v4025_v21, %v4025_v21 }
 0x2d4   :  { %697 = vadd.xlane.f32.xlu1 %v3997_v7  ;;  %v742_v25 = vmul.f32 %v4021_v20, %v4021_v20 }
 0x2d5   :  { %v740_v27 = vmul.f32 %v4029_v23, %v4029_v23 }
 0x2d6   :  { %691 = vadd.xlane.f32.xlu0 %v4001_v9 }
 0x2d7   :  { %v3181_v11 = vpop.f32.mrb[28].mxu0 }
 0x2d8   :  { %693 = vadd.xlane.f32.xlu1 %v4005_v10  ;;  %v668_v13 = vpop.f32.mrb[29].mxu0  ;;  %v4042_v28 = vadd.f32 %v3181_v11, %v3967_v50 }
 0x2d9   :  { %v3182_v14 = vpop.f32.mrb[30].mxu0  ;;  %v4049_v30 = vadd.f32 %v3967_v50, %v668_v13 }
 0x2da   :  { %759 = vadd.xlane.f32.xlu0 %v737_v12  ;;  %v671_v16 = vpop.f32.mrb[31].mxu0  ;;  %v4045_v29 = vadd.f32 %v3182_v14, %v3967_v50  ;;  %v745_v34 = vmul.f32 %v4042_v28, %v4042_v28 }
 0x2db   :  { %v4053_v31 = vadd.f32 %v3967_v50, %v671_v16  ;;  %v743_v32 = vmul.f32 %v4049_v30, %v4049_v30 }
 0x2dc   :  { %761 = vadd.xlane.f32.xlu1 %v738_v15  ;;  %v746_v35 = vmul.f32 %v4045_v29, %v4045_v29 }
 0x2dd   :  { %v744_v33 = vmul.f32 %v4053_v31, %v4053_v31 }
 0x2de   :  { %755 = vadd.xlane.f32.xlu0 %v735_v17 }
 0x2e0   :  { %757 = vadd.xlane.f32.xlu1 %v736_v18 }
 0x2e2   :  { %703 = vadd.xlane.f32.xlu0 %v4018_v19 }
 0x2e4   :  { %705 = vadd.xlane.f32.xlu1 %v4021_v20 }
 0x2e6   :  { %699 = vadd.xlane.f32.xlu0 %v4025_v21 }
 0x2e8   :  { %701 = vadd.xlane.f32.xlu1 %v4029_v23 }
 0x2ea   :  { %767 = vadd.xlane.f32.xlu0 %v741_v24 }
 0x2ec   :  { %769 = vadd.xlane.f32.xlu1 %v742_v25 }
 0x2ee   :  { %763 = vadd.xlane.f32.xlu0 %v739_v26 }
 0x2f0   :  { %765 = vadd.xlane.f32.xlu1 %v740_v27 }
 0x2f2   :  { %711 = vadd.xlane.f32.xlu0 %v4042_v28 }
 0x2f4   :  { %713 = vadd.xlane.f32.xlu1 %v4045_v29 }
 0x2f6   :  { %707 = vadd.xlane.f32.xlu0 %v4049_v30 }
 0x2f8   :  { %709 = vadd.xlane.f32.xlu1 %v4053_v31 }
 0x2fa   :  { %771 = vadd.xlane.f32.xlu0 %v743_v32 }
 0x2fc   :  { %773 = vadd.xlane.f32.xlu1 %v744_v33 }
 0x2fe   :  { %775 = vadd.xlane.f32.xlu0 %v745_v34 }
 0x300   :  { %777 = vadd.xlane.f32.xlu1 %v746_v35 }
 0x34f   :  { %v688_v39 = vpop.xlane.xlu0 %687 }
 0x350   :  { %v4080_v44 = vmul.f32 0.03125, %v688_v39 }
 0x351   :  { %v690_v41 = vpop.xlane.xlu1 %689 }
 0x352   :  { %v4084_v47 = vmul.f32 0.03125, %v690_v41  ;;  %v797_v53 = vmul.f32 %v4080_v44, %v4080_v44 }
 0x353   :  { %v684_v42 = vpop.xlane.xlu0 %683 }
 0x354   :  { %v4082_v45 = vmul.f32 0.03125, %v684_v42  ;;  %v798_v59 = vmul.f32 %v4084_v47, %v4084_v47 }
 0x355   :  { %v748_v46 = vpop.xlane.xlu1 %747 }
 0x356   :  { %v795_v48 = vmul.f32 %v4082_v45, %v4082_v45  ;;  %v779_v49 = vmul.f32 0.03125, %v748_v46 }
 0x357   :  { %v752_v50 = vpop.xlane.xlu0 %751 }
 0x358   :  { %v811_v54 = vsub.f32 %v779_v49, %v795_v48  ;;  %v781_v57 = vmul.f32 0.03125, %v752_v50  ;;  %v846_v48 = vsub.f32 %v3976_v56, %v4084_v47  ;;  %v843_v49 = vsub.f32 %v3973_v55, %v4082_v45 }
 0x359   :  { %v754_v58 = vpop.xlane.xlu1 %753 }
 0x35a   :  { %v827_v60 = vmax.f32 %v811_v54, 0.0  ;;  %v813_v61 = vsub.f32 %v781_v57, %v797_v53  ;;  %v782_v62 = vmul.f32 0.03125, %v754_v58 }
 0x35b   :  { %v686_v0 = vpop.xlane.xlu0 %685 }
 0x35c   :  { %v859_v2 = vadd.f32 1e-05, %v827_v60  ;;  %v829_v3 = vmax.f32 %v813_v61, 0.0  ;;  %v814_v5 = vsub.f32 %v782_v62, %v798_v59  ;;  %v4098_v6 = vmul.f32 0.03125, %v686_v0 }
 0x35d   :  { %v750_v8 = vpop.xlane.xlu1 %749  ;;  %v845_v59 = vsub.f32 %v3970_v52, %v4080_v44 }
 0x35e   :  { %v861_v11 = vadd.f32 1e-05, %v829_v3  ;;  %v830_v12 = vmax.f32 %v814_v5, 0.0  ;;  %v796_v13 = vmul.f32 %v4098_v6, %v4098_v6  ;;  %v780_v14 = vmul.f32 0.03125, %v750_v8 }
 0x35f   :  { %v696_v15 = vpop.xlane.xlu0 %695  ;;  %3586 = vrsqrt.f32 %v859_v2 }
 0x360   :  { %v862_v16 = vadd.f32 1e-05, %v830_v12  ;;  %3588 = vrsqrt.f32 %v861_v11  ;;  %v812_v17 = vsub.f32 %v780_v14, %v796_v13  ;;  %v4102_v26 = vmul.f32 0.03125, %v696_v15 }
 0x361   :  { %v698_v18 = vpop.xlane.xlu1 %697  ;;  %v844_v11 = vsub.f32 %v3986_v63, %v4098_v6 }
 0x362   :  { %3590 = vrsqrt.f32 %v862_v16  ;;  %v828_v24 = vmax.f32 %v812_v17, 0.0  ;;  %v4104_v33 = vmul.f32 0.03125, %v698_v18  ;;  %v801_v35 = vmul.f32 %v4102_v26, %v4102_v26  ;;  %v4136_v17 = vld [vmem:[%s5037_s7] ss:$0 sm:$0xff] }
 0x363   :  { %v692_v25 = vpop.xlane.xlu0 %691 }
 0x364   :  { %v860_v27 = vadd.f32 1e-05, %v828_v24  ;;  %v4108_v36 = vmul.f32 0.03125, %v692_v25  ;;  %v802_v41 = vmul.f32 %v4104_v33, %v4104_v33 }
 0x365   :  { %v694_v32 = vpop.xlane.xlu1 %693 }
 0x366   :  { %3592 = vrsqrt.f32 %v860_v27  ;;  %v4110_v38 = vmul.f32 0.03125, %v694_v32  ;;  %v799_v53 = vmul.f32 %v4108_v36, %v4108_v36 }
 0x367   :  { %v760_v34 = vpop.xlane.xlu0 %759 }
 0x368   :  { %v785_v37 = vmul.f32 0.03125, %v760_v34  ;;  %v800_v60 = vmul.f32 %v4110_v38, %v4110_v38 }
 0x369   :  { %v762_v39 = vpop.xlane.xlu1 %761  ;;  %v3587_v40 = vpop.eup %3586 }
 0x36a   :  { %v817_v42 = vsub.f32 %v785_v37, %v801_v35  ;;  %v786_v43 = vmul.f32 0.03125, %v762_v39  ;;  %v3589_v46 = vpop.eup %3588  ;;  %v891_v62 = vmul.f32 %v3587_v40, %v843_v49 }
 0x36b   :  { %v756_v50 = vpop.xlane.xlu0 %755  ;;  %v893_v3 = vmul.f32 %v3589_v46, %v845_v59 }
 0x36c   :  { %v3591_v51 = vpop.eup %3590  ;;  %v833_v54 = vmax.f32 %v817_v42, 0.0  ;;  %v818_v57 = vsub.f32 %v786_v43, %v802_v41  ;;  %v783_v58 = vmul.f32 0.03125, %v756_v50  ;;  %v913_v13 = vmul.f32 %v4127_v1, %v891_v62 }
 0x36d   :  { %v758_v61 = vpop.xlane.xlu1 %757  ;;  %v894_v56 = vmul.f32 %v3591_v51, %v846_v48  ;;  %v915_v25 = vmul.f32 %v4127_v1, %v893_v3  ;;  %v847_v62 = vsub.f32 %v4001_v9, %v4108_v36 }
 0x36e   :  { %v865_v47 = vadd.f32 1e-05, %v833_v54  ;;  %v834_v0 = vmax.f32 %v818_v57, 0.0  ;;  %v815_v55 = vsub.f32 %v783_v58, %v799_v53  ;;  %v784_v45 = vmul.f32 0.03125, %v758_v61 }
 0x36f   :  { %v704_v2 = vpop.xlane.xlu0 %703  ;;  %v916_v14 = vmul.f32 %v4127_v1, %v894_v56  ;;  %v935_v34 = vadd.f32 %v4136_v17, %v913_v13  ;;  %v937_v41 = vadd.f32 %v4136_v17, %v915_v25  ;;  %v849_v57 = vsub.f32 %v3994_v4, %v4102_v26 }
 0x370   :  { %3594 = vrsqrt.f32 %v865_v47  ;;  %v866_v5 = vadd.f32 1e-05, %v834_v0  ;;  %v831_v52 = vmax.f32 %v815_v55, 0.0  ;;  %v816_v44 = vsub.f32 %v784_v45, %v800_v60  ;;  %v3593_v8 = vpop.eup %3592 }
 0x371   :  { %v706_v12 = vpop.xlane.xlu1 %705  ;;  %v892_v24 = vmul.f32 %v3593_v8, %v844_v11  ;;  %v4139_v63 = vmul.f32 0.03125, %v704_v2  ;;  %v938_v35 = vadd.f32 %v4136_v17, %v916_v14  ;;  %v951_v50 = vmax.f32 %v935_v34, 0.0 }
 0x372   :  { %3596 = vrsqrt.f32 %v866_v5  ;;  %v863_v15 = vadd.f32 1e-05, %v831_v52  ;;  %v832_v16 = vmax.f32 %v816_v44, 0.0  ;;  %v4144_v37 = vmul.f32 0.03125, %v706_v12 }
 0x373   :  { %v700_v18 = vpop.xlane.xlu0 %699  ;;  %v914_v32 = vmul.f32 %v4127_v1, %v892_v24  ;;  %v805_v42 = vmul.f32 %v4139_v63, %v4139_v63  ;;  %v954_v53 = vmax.f32 %v938_v35, 0.0  ;;  %v850_v61 = vsub.f32 %v3997_v7, %v4104_v33 }
 0x374   :  { %3598 = vrsqrt.f32 %v863_v15  ;;  %v864_v27 = vadd.f32 1e-05, %v832_v16  ;;  %v4150_v43 = vmul.f32 0.03125, %v700_v18  ;;  %v806_v58 = vmul.f32 %v4144_v37, %v4144_v37 }
 0x375   :  { %v702_v6 = vpop.xlane.xlu1 %701  ;;  %v936_v40 = vadd.f32 %v4136_v17, %v914_v32  ;;  %v953_v0 = vmax.f32 %v937_v41, 0.0  ;;  %v848_v12 = vsub.f32 %v4005_v10, %v4110_v38 }
 0x376   :  { %3600 = vrsqrt.f32 %v864_v27  ;;  %v4152_v48 = vmul.f32 0.03125, %v702_v6  ;;  %v803_v45 = vmul.f32 %v4150_v43, %v4150_v43 }
 0x377   :  { %v768_v39 = vpop.xlane.xlu0 %767  ;;  %v952_v51 = vmax.f32 %v936_v40, 0.0  ;;  %v968_v5 = vpack.c.bf16 %v954_v53, %v953_v0 }
 0x378   :  { %v789_v46 = vmul.f32 0.03125, %v768_v39  ;;  %v804_v3 = vmul.f32 %v4152_v48, %v4152_v48 }
 0x379   :  { %v770_v49 = vpop.xlane.xlu1 %769  ;;  %v967_v47 = vpack.c.bf16 %v952_v51, %v951_v50 }
 0x37a   :  { %v3595_v54 = vpop.eup %3594  ;;  %v821_v59 = vsub.f32 %v789_v46, %v805_v42  ;;  %v790_v60 = vmul.f32 0.03125, %v770_v49 }
 0x37b   :  { %v764_v56 = vpop.xlane.xlu0 %763  ;;  %3183 = vmatprep.subr.bf16.mxu1 %v967_v47  ;;  %v897_v7 = vmul.f32 %v3595_v54, %v849_v57 }
 0x37c   :  { %v3597_v55 = vpop.eup %3596  ;;  %v837_v2 = vmax.f32 %v821_v59, 0.0  ;;  %v822_v4 = vsub.f32 %v790_v60, %v806_v58  ;;  %v787_v26 = vmul.f32 0.03125, %v764_v56  ;;  %3184 = vmatpush3.bf16.msra.mxu1 %v967_v47 }
 0x37d   :  { %v766_v52 = vpop.xlane.xlu1 %765  ;;  %v898_v33 = vmul.f32 %v3597_v55, %v850_v61  ;;  %3185 = vmatprep.subr.bf16.mxu1 %v968_v5  ;;  %v919_v34 = vmul.f32 %v4127_v1, %v897_v7 }
 0x37e   :  { %v3599_v44 = vpop.eup %3598  ;;  %v869_v9 = vadd.f32 1e-05, %v837_v2  ;;  %v838_v36 = vmax.f32 %v822_v4, 0.0  ;;  %v819_v8 = vsub.f32 %v787_v26, %v803_v45  ;;  %v788_v11 = vmul.f32 0.03125, %v766_v52 }
 0x37f   :  { %v712_v13 = vpop.xlane.xlu0 %711  ;;  %v895_v14 = vmul.f32 %v3599_v44, %v847_v62  ;;  %v920_v15 = vmul.f32 %v4127_v1, %v898_v33  ;;  %v941_v51 = vadd.f32 %v4136_v17, %v919_v34 }
 0x380   :  { %v3601_v16 = vpop.eup %3600  ;;  %3602 = vrsqrt.f32 %v869_v9  ;;  %v870_v18 = vadd.f32 1e-05, %v838_v36  ;;  %v835_v24 = vmax.f32 %v819_v8, 0.0  ;;  %v820_v25 = vsub.f32 %v788_v11, %v804_v3  ;;  %3186 = vmatpush3.bf16.msra.mxu1 %v968_v5 }
 0x381   :  { %v714_v27 = vpop.xlane.xlu1 %713  ;;  %v896_v6 = vmul.f32 %v3601_v16, %v848_v12  ;;  %v917_v32 = vmul.f32 %v4127_v1, %v895_v14  ;;  %v942_v41 = vadd.f32 %v4136_v17, %v920_v15  ;;  %v4180_v60 = vmul.f32 0.03125, %v712_v13 }
 0x382   :  { %3604 = vrsqrt.f32 %v870_v18  ;;  %v867_v35 = vadd.f32 1e-05, %v835_v24  ;;  %v836_v39 = vmax.f32 %v820_v25, 0.0  ;;  %v4184_v56 = vmul.f32 0.03125, %v714_v27 }
 0x383   :  { %v708_v10 = vpop.xlane.xlu0 %707  ;;  %v918_v38 = vmul.f32 %v4127_v1, %v896_v6  ;;  %v939_v40 = vadd.f32 %v4136_v17, %v917_v32  ;;  %v958_v59 = vmax.f32 %v942_v41, 0.0  ;;  %v957_v55 = vmax.f32 %v941_v51, 0.0 }
 0x384   :  { %3606 = vrsqrt.f32 %v867_v35  ;;  %v868_v42 = vadd.f32 1e-05, %v836_v39  ;;  %v4174_v46 = vmul.f32 0.03125, %v708_v10  ;;  %v853_v3 = vsub.f32 %v4018_v19, %v4139_v63 }
 0x385   :  { %v710_v49 = vpop.xlane.xlu1 %709  ;;  %v940_v50 = vadd.f32 %v4136_v17, %v918_v38  ;;  %v955_v57 = vmax.f32 %v939_v40, 0.0  ;;  %v854_v5 = vsub.f32 %v4021_v20, %v4144_v37  ;;  %v970_v7 = vpack.c.bf16 %v958_v59, %v957_v55 }
 0x386   :  { %3608 = vrsqrt.f32 %v868_v42  ;;  %v4178_v53 = vmul.f32 0.03125, %v710_v49  ;;  %v807_v61 = vmul.f32 %v4174_v46, %v4174_v46  ;;  %v809_v44 = vmul.f32 %v4180_v60, %v4180_v60 }
 0x387   :  { %v772_v54 = vpop.xlane.xlu0 %771  ;;  %v956_v58 = vmax.f32 %v940_v50, 0.0  ;;  %v851_v11 = vsub.f32 %v4025_v21, %v4150_v43  ;;  %v810_v19 = vmul.f32 %v4184_v56, %v4184_v56  ;;  %v852_v18 = vsub.f32 %v4029_v23, %v4152_v48 }
 0x388   :  { %v791_v62 = vmul.f32 0.03125, %v772_v54  ;;  %v808_v2 = vmul.f32 %v4178_v53, %v4178_v53  ;;  %v855_v54 = vsub.f32 %v4049_v30, %v4174_v46  ;;  %v857_v55 = vsub.f32 %v4042_v28, %v4180_v60 }
 0x389   :  { %v774_v47 = vpop.xlane.xlu1 %773  ;;  %v969_v0 = vpack.c.bf16 %v956_v58, %v955_v57  ;;  %v858_v30 = vsub.f32 %v4045_v29, %v4184_v56 }
 0x38a   :  { %v3603_v45 = vpop.eup %3602  ;;  %v823_v4 = vsub.f32 %v791_v62, %v807_v61  ;;  %v792_v26 = vmul.f32 0.03125, %v774_v47  ;;  %v856_v61 = vsub.f32 %v4053_v31, %v4178_v53 }
 0x38b   :  { %3187 = vmatprep.subr.bf16.mxu1 %v969_v0  ;;  %v776_v52 = vpop.xlane.xlu0 %775  ;;  %v901_v20 = vmul.f32 %v3603_v45, %v853_v3 }
 0x38c   :  { %v3605_v33 = vpop.eup %3604  ;;  %v839_v9 = vmax.f32 %v823_v4, 0.0  ;;  %v824_v36 = vsub.f32 %v792_v26, %v808_v2  ;;  %v793_v8 = vmul.f32 0.03125, %v776_v52  ;;  %3188 = vmatpush3.bf16.msra.mxu1 %v969_v0 }
 0x38d   :  { %3189 = vmatprep.subr.bf16.mxu1 %v970_v7  ;;  %v778_v63 = vpop.xlane.xlu1 %777  ;;  %v902_v37 = vmul.f32 %v3605_v33, %v854_v5  ;;  %v923_v35 = vmul.f32 %v4127_v1, %v901_v20  ;;  %v3561_v20 = vld [vmem:[%s5035_s10 + $0x38] sm:$0xff]   ;;  %s2810_s10 = sshll.u32 %s3717_s0, 4  ;;  %s2811_s10 = int_to_ptr.vmem [resolvable:$true] %s2810_s10 }
 0x38e   :  { %v3607_v12 = vpop.eup %3606  ;;  %v871_v13 = vadd.f32 1e-05, %v839_v9  ;;  %v840_v14 = vmax.f32 %v824_v36, 0.0  ;;  %v825_v15 = vsub.f32 %v793_v8, %v809_v44  ;;  %v794_v16 = vmul.f32 0.03125, %v778_v63  ;;  %v4227_v8 = vld [vmem:[%s5030_s6 + $0x8] sm:$0xff]   ;;  %v4257_v63 = vld [vmem:[%s5030_s6 + $0x30] sm:$0xff]   ;;  %3229 = vmatprep.subr.bf16.mxu0 %v3561_v20  ;;  %p3695_p1 = scmp.lt.s32.totalorder %s2811_s10, %s2811_s10 }
 0x38f   :  { %v899_v24 = vmul.f32 %v3607_v12, %v851_v11  ;;  %v924_v25 = vmul.f32 %v4127_v1, %v902_v37  ;;  %v945_v42 = vadd.f32 %v4136_v17, %v923_v35  ;;  %v4245_v11 = vld [vmem:[%s5030_s6 + $0x20] sm:$0xff]   ;;  %3230 = vmatpush3.bf16.msra.mxu0 %v3561_v20  ;;  %v3563_v12 = vld [vmem:[%s5038_s3 + $0x8] sm:$0xff]  }
 0x390   :  { %v3609_v27 = vpop.eup %3608  ;;  %3610 = vrsqrt.f32 %v871_v13  ;;  %v872_v21 = vadd.f32 1e-05, %v840_v14  ;;  %v841_v43 = vmax.f32 %v825_v15, 0.0  ;;  %v826_v6 = vsub.f32 %v794_v16, %v810_v19  ;;  %3190 = vmatpush3.bf16.msra.mxu1 %v970_v7  ;;  %v4251_v19 = vld [vmem:[%s5030_s6 + $0x28] sm:$0xff]   ;;  %v3562_v37 = vld [vmem:[%s5038_s3] sm:$0xff]   ;;  %v3565_v13 = vld [vmem:[%s5038_s3 + $0x18] sm:$0xff]  }
 0x391   :  { %v900_v32 = vmul.f32 %v3609_v27, %v852_v18  ;;  %v921_v34 = vmul.f32 %v4127_v1, %v899_v24  ;;  %v946_v48 = vadd.f32 %v4136_v17, %v924_v25  ;;  %v961_v58 = vmax.f32 %v945_v42, 0.0  ;;  %v3566_v14 = vld [vmem:[%s5038_s3 + $0x20] sm:$0xff]   ;;  %v3567_v15 = vld [vmem:[%s5038_s3 + $0x28] sm:$0xff]  }
 0x392   :  { %3612 = vrsqrt.f32 %v872_v21  ;;  %v873_v39 = vadd.f32 1e-05, %v841_v43  ;;  %v842_v10 = vmax.f32 %v826_v6, 0.0 }
 0x393   :  { %v922_v38 = vmul.f32 %v4127_v1, %v900_v32  ;;  %v943_v23 = vadd.f32 %v4136_v17, %v921_v34  ;;  %v962_v51 = vmax.f32 %v946_v48, 0.0 }
 0x394   :  { %3614 = vrsqrt.f32 %v873_v39  ;;  %v874_v40 = vadd.f32 1e-05, %v842_v10 }
 0x395   :  { %v944_v41 = vadd.f32 %v4136_v17, %v922_v38  ;;  %v959_v49 = vmax.f32 %v943_v23, 0.0  ;;  %v972_v62 = vpack.c.bf16 %v962_v51, %v961_v58  ;;  %v3688_v58 = vld [vmem:[%s5030_s6] sm:$0xff]  }
 0x396   :  { %3616 = vrsqrt.f32 %v874_v40 }
 0x397   :  { %v960_v50 = vmax.f32 %v944_v41, 0.0 }
 0x399   :  { %v971_v57 = vpack.c.bf16 %v960_v50, %v959_v49 }
 0x39a   :  { %v3611_v59 = vpop.eup %3610 }
 0x39b   :  { %3191 = vmatprep.subr.bf16.mxu1 %v971_v57  ;;  %v903_v47 = vmul.f32 %v3611_v59, %v855_v54  ;;  %v3568_v59 = vld [vmem:[%s5038_s3 + $0x30] sm:$0xff]  }
 0x39c   :  { %v3613_v0 = vpop.eup %3612  ;;  %3192 = vmatpush3.bf16.msra.mxu1 %v971_v57 }
 0x39d   :  { %3193 = vmatprep.subr.bf16.mxu1 %v972_v62  ;;  %v904_v45 = vmul.f32 %v3613_v0, %v856_v61  ;;  %v925_v2 = vmul.f32 %v4127_v1, %v903_v47  ;;  %v3569_v61 = vld [vmem:[%s5038_s3 + $0x38] sm:$0xff]  }
 0x39e   :  { %v3615_v4 = vpop.eup %3614 }
 0x39f   :  { %v926_v46 = vmul.f32 %v4127_v1, %v904_v45  ;;  %v947_v31 = vadd.f32 %v4136_v17, %v925_v2  ;;  %v905_v53 = vmul.f32 %v3615_v4, %v857_v55 }
 0x3a0   :  { %v3617_v26 = vpop.eup %3616  ;;  %3194 = vmatpush3.bf16.msra.mxu1 %v972_v62  ;;  %v2854_v62 = vld [vmem:[%s5039_s29] ss:$0 sm:$0xff] }
 0x3a1   :  { %v948_v3 = vadd.f32 %v4136_v17, %v926_v46  ;;  %v906_v5 = vmul.f32 %v3617_v26, %v858_v30  ;;  %v927_v28 = vmul.f32 %v4127_v1, %v905_v53  ;;  %v963_v60 = vmax.f32 %v947_v31, 0.0 }
 0x3a3   :  { %v964_v52 = vmax.f32 %v948_v3, 0.0  ;;  %v928_v7 = vmul.f32 %v4127_v1, %v906_v5  ;;  %v949_v33 = vadd.f32 %v4136_v17, %v927_v28  ;;  %v4233_v1 = vld [vmem:[%s5030_s6 + $0x10] sm:$0xff]  }
 0x3a5   :  { %v973_v44 = vpack.c.bf16 %v964_v52, %v963_v60  ;;  %v950_v29 = vadd.f32 %v4136_v17, %v928_v7  ;;  %v965_v56 = vmax.f32 %v949_v33, 0.0  ;;  %v4239_v17 = vld [vmem:[%s5030_s6 + $0x18] sm:$0xff]  }
 0x3a7   :  { %3195 = vmatprep.subr.bf16.mxu1 %v973_v44  ;;  %v966_v9 = vmax.f32 %v950_v29, 0.0 }
 0x3a8   :  { %3196 = vmatpush3.bf16.msra.mxu1 %v973_v44 }
 0x3a9   :  { %v974_v36 = vpack.c.bf16 %v966_v9, %v965_v56 }
 0x3ab   :  { %3197 = vmatprep.subr.bf16.mxu1 %v974_v36 }
 0x3ac   :  { %3198 = vmatpush3.bf16.msra.mxu1 %v974_v36 }
 0x3ad   :  { %3247 = vmatprep.subr.bf16.mxu1 %v3562_v37 }
 0x3af   :  { %3200 = vmatmul.mubr.bf16.vlgmr.msra.gmra.mrb[16].mxu1 %v4227_v8 }
 0x3b0   :  { %3203 = vmatprep.mubr.bf16.mxu1 %v4233_v1  ;;  %3248 = vmatpush3.bf16.msra.mxu1 %v3562_v37 }
 0x3b1   :  { %3249 = vmatprep.subr.bf16.mxu1 %v3563_v12 }
 0x3b4   :  { %3250 = vmatpush3.bf16.msra.mxu1 %v3563_v12 }
 0x3b7   :  { %3204 = vmatmul.mubr.bf16.gmra.mrb[20].mxu1 %v4239_v17 }
 0x3b8   :  { %3207 = vmatprep.mubr.bf16.mxu1 %v4245_v11 }
 0x3bf   :  { %3208 = vmatmul.mubr.bf16.gmra.mrb[24].mxu1 %v4251_v19 }
 0x3c0   :  { %3211 = vmatprep.mubr.bf16.mxu1 %v4257_v63 }
 0x3c7   :  { %3212 = vmatmul.mubr.bf16.gmra.mrb[28].mxu1 %v3930_v22  ;;  %v3564_v22 = vld [vmem:[%s5038_s3 + $0x10] sm:$0xff]  }
 0x3c8   :  { %3251 = vmatprep.subr.bf16.mxu1 %v3564_v22 }
 0x3c9   :  { %3252 = vmatpush3.bf16.msra.mxu1 %v3564_v22 }
 0x3ca   :  { %3253 = vmatprep.subr.bf16.mxu1 %v3565_v13 }
 0x3cd   :  { %3254 = vmatpush3.bf16.msra.mxu1 %v3565_v13 }
 0x3ce   :  { %3255 = vmatprep.subr.bf16.mxu1 %v3566_v14 }
 0x3d1   :  { %3256 = vmatpush3.bf16.msra.mxu1 %v3566_v14 }
 0x3d2   :  { %3257 = vmatprep.subr.bf16.mxu1 %v3567_v15 }
 0x3d5   :  { %3258 = vmatpush3.bf16.msra.mxu1 %v3567_v15 }
 0x3d6   :  { %3259 = vmatprep.subr.bf16.mxu1 %v3568_v59 }
 0x3d9   :  { %3260 = vmatpush3.bf16.msra.mxu1 %v3568_v59 }
 0x3da   :  { %3261 = vmatprep.subr.bf16.mxu1 %v3569_v61 }
 0x3dd   :  { %3262 = vmatpush3.bf16.msra.mxu1 %v3569_v61  ;;  %v4297_v61 = vld [vmem:[%s5040_s11] ss:$0 sm:$0xff] }
 0x482   :  { %v3201_v16 = vpop.f32.mrb[16].mxu1 }
 0x483   :  { %v1009_v18 = vpop.f32.mrb[17].mxu1 }
 0x484   :  { %v3202_v24 = vpop.f32.mrb[18].mxu1 }
 0x485   :  { %v1109_v25 = vpack.c.bf16 %v3202_v24, %v3201_v16  ;;  %v1012_v27 = vpop.f32.mrb[19].mxu1 }
 0x486   :  { %v1108_v21 = vpack.c.bf16 %v1012_v27, %v1009_v18 }
 0x488   :  { %3231 = vmatprep.mubr.bf16.mxu0 %v1108_v21 }
 0x489   :  { %3232 = vmatmul.mubr.bf16.vlgmr.msra.gmra.mrb[32].mxu0 %v1109_v25 }
 0x48a   :  { %v3205_v43 = vpop.f32.mrb[20].mxu1 }
 0x48b   :  { %v1025_v6 = vpop.f32.mrb[21].mxu1 }
 0x48c   :  { %v3206_v32 = vpop.f32.mrb[22].mxu1 }
 0x48d   :  { %v1111_v34 = vpack.c.bf16 %v3206_v32, %v3205_v43  ;;  %v1028_v35 = vpop.f32.mrb[23].mxu1 }
 0x48e   :  { %v1110_v39 = vpack.c.bf16 %v1028_v35, %v1025_v6 }
 0x490   :  { %3235 = vmatprep.mubr.bf16.mxu0 %v1110_v39 }
 0x491   :  { %3236 = vmatmul.mubr.bf16.gmra.mrb[36].mxu0 %v1111_v34 }
 0x492   :  { %v3209_v10 = vpop.f32.mrb[24].mxu1 }
 0x493   :  { %v1041_v38 = vpop.f32.mrb[25].mxu1 }
 0x494   :  { %v3210_v23 = vpop.f32.mrb[26].mxu1 }
 0x495   :  { %v1113_v48 = vpack.c.bf16 %v3210_v23, %v3209_v10  ;;  %v1044_v40 = vpop.f32.mrb[27].mxu1 }
 0x496   :  { %v1112_v41 = vpack.c.bf16 %v1044_v40, %v1041_v38 }
 0x498   :  { %3239 = vmatprep.mubr.bf16.mxu0 %v1112_v41 }
 0x499   :  { %3240 = vmatmul.mubr.bf16.gmra.mrb[40].mxu0 %v1113_v48 }
 0x49a   :  { %v3213_v42 = vpop.f32.mrb[28].mxu1 }
 0x49b   :  { %v1057_v49 = vpop.f32.mrb[29].mxu1 }
 0x49c   :  { %v3214_v50 = vpop.f32.mrb[30].mxu1 }
 0x49d   :  { %v1115_v51 = vpack.c.bf16 %v3214_v50, %v3213_v42  ;;  %v1060_v54 = vpop.f32.mrb[31].mxu1 }
 0x49e   :  { %v1114_v57 = vpack.c.bf16 %v1060_v54, %v1057_v49 }
 0x4a0   :  { %3243 = vmatprep.mubr.bf16.mxu0 %v1114_v57 }
 0x4a1   :  { %3244 = vmatmul.mubr.bf16.gmra.mrb[44].mxu0 %v1115_v51 }
 0x4a2   :  { %3295 = vmatprep.mubr.bf16.mxu0 %v3688_v58 }
 0x55c   :  { %v3233_v47 = vpop.f32.mrb[32].mxu0 }
 0x55d   :  { %v1213_v0 = vadd.f32 %v3233_v47, %v2854_v62  ;;  %v1204_v55 = vpop.f32.mrb[33].mxu0 }
 0x55e   :  { %v1205_v45 = vadd.f32 %v2854_v62, %v1204_v55  ;;  %v3234_v2 = vpop.f32.mrb[34].mxu0 }
 0x55f   :  { %v1216_v4 = vadd.f32 %v3234_v2, %v2854_v62  ;;  %v1207_v30 = vpop.f32.mrb[35].mxu0  ;;  %v1269_v31 = vmax.f32 %v1213_v0, 0.0 }
 0x560   :  { %v1208_v46 = vadd.f32 %v2854_v62, %v1207_v30  ;;  %v1267_v26 = vmax.f32 %v1205_v45, 0.0 }
 0x561   :  { %v1270_v53 = vmax.f32 %v1216_v4, 0.0 }
 0x562   :  { %v1268_v3 = vmax.f32 %v1208_v46, 0.0 }
 0x563   :  { %v1284_v5 = vpack.c.bf16 %v1270_v53, %v1269_v31 }
 0x564   :  { %v1283_v28 = vpack.c.bf16 %v1268_v3, %v1267_v26  ;;  %v3237_v60 = vpop.f32.mrb[36].mxu0 }
 0x565   :  { %v1229_v52 = vadd.f32 %v3237_v60, %v2854_v62  ;;  %v1220_v7 = vpop.f32.mrb[37].mxu0 }
 0x566   :  { %v1221_v33 = vadd.f32 %v2854_v62, %v1220_v7  ;;  %v3238_v44 = vpop.f32.mrb[38].mxu0  ;;  %3263 = vmatprep.mubr.bf16.mxu1 %v1283_v28 }
 0x567   :  { %v1273_v29 = vmax.f32 %v1229_v52, 0.0  ;;  %v1232_v56 = vadd.f32 %v3238_v44, %v2854_v62  ;;  %v1223_v9 = vpop.f32.mrb[39].mxu0  ;;  %3264 = vmatmul.mubr.bf16.vlgmr.msra.gmra.mrb[32].mxu1 %v1284_v5 }
 0x568   :  { %v1271_v36 = vmax.f32 %v1221_v33, 0.0  ;;  %v1224_v20 = vadd.f32 %v2854_v62, %v1223_v9 }
 0x569   :  { %v1274_v37 = vmax.f32 %v1232_v56, 0.0 }
 0x56a   :  { %v1272_v12 = vmax.f32 %v1224_v20, 0.0 }
 0x56b   :  { %v1286_v22 = vpack.c.bf16 %v1274_v37, %v1273_v29 }
 0x56c   :  { %v1285_v13 = vpack.c.bf16 %v1272_v12, %v1271_v36  ;;  %v3241_v14 = vpop.f32.mrb[40].mxu0 }
 0x56d   :  { %v1245_v15 = vadd.f32 %v3241_v14, %v2854_v62  ;;  %v1236_v16 = vpop.f32.mrb[41].mxu0 }
 0x56e   :  { %3267 = vmatprep.mubr.bf16.mxu1 %v1285_v13  ;;  %v1237_v18 = vadd.f32 %v2854_v62, %v1236_v16  ;;  %v3242_v24 = vpop.f32.mrb[42].mxu0 }
 0x56f   :  { %3268 = vmatmul.mubr.bf16.gmra.mrb[36].mxu1 %v1286_v22  ;;  %v1277_v25 = vmax.f32 %v1245_v15, 0.0  ;;  %v1248_v27 = vadd.f32 %v3242_v24, %v2854_v62  ;;  %v1239_v21 = vpop.f32.mrb[43].mxu0 }
 0x570   :  { %v1275_v43 = vmax.f32 %v1237_v18, 0.0  ;;  %v1240_v6 = vadd.f32 %v2854_v62, %v1239_v21 }
 0x571   :  { %v1278_v32 = vmax.f32 %v1248_v27, 0.0 }
 0x572   :  { %v1276_v34 = vmax.f32 %v1240_v6, 0.0 }
 0x573   :  { %v1288_v35 = vpack.c.bf16 %v1278_v32, %v1277_v25 }
 0x574   :  { %v1287_v39 = vpack.c.bf16 %v1276_v34, %v1275_v43  ;;  %v3245_v10 = vpop.f32.mrb[44].mxu0 }
 0x575   :  { %v1261_v38 = vadd.f32 %v3245_v10, %v2854_v62  ;;  %v1252_v23 = vpop.f32.mrb[45].mxu0 }
 0x576   :  { %3271 = vmatprep.mubr.bf16.mxu1 %v1287_v39  ;;  %v1253_v48 = vadd.f32 %v2854_v62, %v1252_v23  ;;  %v3246_v40 = vpop.f32.mrb[46].mxu0 }
 0x577   :  { %3272 = vmatmul.mubr.bf16.gmra.mrb[40].mxu1 %v1288_v35  ;;  %v1281_v41 = vmax.f32 %v1261_v38, 0.0  ;;  %v1264_v42 = vadd.f32 %v3246_v40, %v2854_v62  ;;  %v1255_v49 = vpop.f32.mrb[47].mxu0 }
 0x578   :  { %v1279_v50 = vmax.f32 %v1253_v48, 0.0  ;;  %v1256_v51 = vadd.f32 %v2854_v62, %v1255_v49  ;;  %v3572_v49 = vld [vmem:[%s4997_s14 + $0x10] sm:$0xff]  }
 0x579   :  { %v1282_v54 = vmax.f32 %v1264_v42, 0.0  ;;  %v3571_v42 = vld [vmem:[%s4997_s14 + $0x8] sm:$0xff]  }
 0x57a   :  { %v1280_v57 = vmax.f32 %v1256_v51, 0.0  ;;  %v3573_v51 = vld [vmem:[%s4997_s14 + $0x18] sm:$0xff]  }
 0x57b   :  { %v1290_v58 = vpack.c.bf16 %v1282_v54, %v1281_v41  ;;  %v3570_v41 = vld [vmem:[%s4997_s14] sm:$0xff]  }
 0x57c   :  { %v1289_v59 = vpack.c.bf16 %v1280_v57, %v1279_v50  ;;  %3311 = vmatprep.subr.bf16.mxu1 %v3570_v41 }
 0x57d   :  { %3312 = vmatpush3.bf16.msra.mxu1 %v3570_v41 }
 0x57e   :  { %3275 = vmatprep.mubr.bf16.mxu1 %v1289_v59  ;;  %3313 = vmatprep.subr.bf16.mxu1 %v3571_v42 }
 0x57f   :  { %3276 = vmatmul.mubr.bf16.gmra.mrb[44].mxu1 %v1290_v58  ;;  %v3574_v58 = vld [vmem:[%s4997_s14 + $0x20] sm:$0xff]  }
 0x581   :  { %3314 = vmatpush3.bf16.msra.mxu1 %v3571_v42 }
 0x582   :  { %3315 = vmatprep.subr.bf16.mxu1 %v3572_v49 }
 0x585   :  { %3316 = vmatpush3.bf16.msra.mxu1 %v3572_v49 }
 0x586   :  { %3317 = vmatprep.subr.bf16.mxu1 %v3573_v51 }
 0x589   :  { %3318 = vmatpush3.bf16.msra.mxu1 %v3573_v51 }
 0x58a   :  { %3319 = vmatprep.subr.bf16.mxu1 %v3574_v58 }
 0x58d   :  { %3320 = vmatpush3.bf16.msra.mxu1 %v3574_v58 }
 0x63a   :  { %v3265_v47 = vpop.f32.mrb[32].mxu1 }
 0x63b   :  { %v4300_v0 = vadd.f32 %v3265_v47, %v4297_v61  ;;  %v1379_v55 = vpop.f32.mrb[33].mxu1 }
 0x63c   :  { %v3266_v45 = vpop.f32.mrb[34].mxu1  ;;  %v4307_v4 = vadd.f32 %v4297_v61, %v1379_v55 }
 0x63d   :  { %v4303_v2 = vadd.f32 %v3266_v45, %v4297_v61  ;;  %1446 = vadd.xlane.f32.xlu0 %v4300_v0  ;;  %v1382_v62 = vpop.f32.mrb[35].mxu1  ;;  %v1492_v53 = vmul.f32 %v4300_v0, %v4300_v0  ;;  %v3575_v45 = vld [vmem:[%s4997_s14 + $0x28] sm:$0xff]  }
 0x63e   :  { %v4311_v30 = vadd.f32 %v4297_v61, %v1382_v62  ;;  %v1490_v28 = vmul.f32 %v4307_v4, %v4307_v4  ;;  %3321 = vmatprep.subr.bf16.mxu1 %v3575_v45 }
 0x63f   :  { %1448 = vadd.xlane.f32.xlu1 %v4303_v2  ;;  %v1493_v5 = vmul.f32 %v4303_v2, %v4303_v2  ;;  %3322 = vmatpush3.bf16.msra.mxu1 %v3575_v45 }
 0x640   :  { %v1491_v60 = vmul.f32 %v4311_v30, %v4311_v30 }
 0x641   :  { %1442 = vadd.xlane.f32.xlu0 %v4307_v4 }
 0x642   :  { %v3269_v46 = vpop.f32.mrb[36].mxu1 }
 0x643   :  { %v1395_v31 = vpop.f32.mrb[37].mxu1  ;;  %1444 = vadd.xlane.f32.xlu1 %v4311_v30  ;;  %v4324_v7 = vadd.f32 %v3269_v46, %v4297_v61 }
 0x644   :  { %v3270_v26 = vpop.f32.mrb[38].mxu1  ;;  %v4331_v9 = vadd.f32 %v4297_v61, %v1395_v31 }
 0x645   :  { %v1398_v3 = vpop.f32.mrb[39].mxu1  ;;  %1510 = vadd.xlane.f32.xlu0 %v1492_v53  ;;  %v4327_v29 = vadd.f32 %v3270_v26, %v4297_v61  ;;  %v1496_v37 = vmul.f32 %v4324_v7, %v4324_v7 }
 0x646   :  { %v4335_v36 = vadd.f32 %v4297_v61, %v1398_v3  ;;  %v1494_v15 = vmul.f32 %v4331_v9, %v4331_v9 }
 0x647   :  { %1512 = vadd.xlane.f32.xlu1 %v1493_v5  ;;  %v1497_v13 = vmul.f32 %v4327_v29, %v4327_v29 }
 0x648   :  { %v1495_v16 = vmul.f32 %v4335_v36, %v4335_v36 }
 0x649   :  { %1506 = vadd.xlane.f32.xlu0 %v1490_v28 }
 0x64a   :  { %v3273_v52 = vpop.f32.mrb[40].mxu1 }
 0x64b   :  { %1508 = vadd.xlane.f32.xlu1 %v1491_v60  ;;  %v1411_v33 = vpop.f32.mrb[41].mxu1  ;;  %v4348_v18 = vadd.f32 %v3273_v52, %v4297_v61  ;;  %v3576_v52 = vld [vmem:[%s4997_s14 + $0x30] sm:$0xff]  }
 0x64c   :  { %v3274_v44 = vpop.f32.mrb[42].mxu1  ;;  %v4355_v25 = vadd.f32 %v4297_v61, %v1411_v33  ;;  %3323 = vmatprep.subr.bf16.mxu1 %v3576_v52 }
 0x64d   :  { %1454 = vadd.xlane.f32.xlu0 %v4324_v7  ;;  %v1414_v56 = vpop.f32.mrb[43].mxu1  ;;  %v4351_v24 = vadd.f32 %v3274_v44, %v4297_v61  ;;  %v1500_v21 = vmul.f32 %v4348_v18, %v4348_v18  ;;  %3324 = vmatpush3.bf16.msra.mxu1 %v3576_v52 }
 0x64e   :  { %v4359_v27 = vadd.f32 %v4297_v61, %v1414_v56  ;;  %v1498_v6 = vmul.f32 %v4355_v25, %v4355_v25 }
 0x64f   :  { %1456 = vadd.xlane.f32.xlu1 %v4327_v29  ;;  %v1501_v43 = vmul.f32 %v4351_v24, %v4351_v24 }
 0x650   :  { %v1499_v32 = vmul.f32 %v4359_v27, %v4359_v27 }
 0x651   :  { %1450 = vadd.xlane.f32.xlu0 %v4331_v9 }
 0x652   :  { %v3277_v20 = vpop.f32.mrb[44].mxu1 }
 0x653   :  { %1452 = vadd.xlane.f32.xlu1 %v4335_v36  ;;  %v1427_v12 = vpop.f32.mrb[45].mxu1  ;;  %v4372_v34 = vadd.f32 %v3277_v20, %v4297_v61 }
 0x654   :  { %v3278_v22 = vpop.f32.mrb[46].mxu1  ;;  %v4379_v39 = vadd.f32 %v4297_v61, %v1427_v12 }
 0x655   :  { %1518 = vadd.xlane.f32.xlu0 %v1496_v37  ;;  %v1430_v14 = vpop.f32.mrb[47].mxu1  ;;  %v4375_v35 = vadd.f32 %v3278_v22, %v4297_v61  ;;  %v1504_v48 = vmul.f32 %v4372_v34, %v4372_v34 }
 0x656   :  { %v4383_v10 = vadd.f32 %v4297_v61, %v1430_v14  ;;  %v1502_v38 = vmul.f32 %v4379_v39, %v4379_v39 }
 0x657   :  { %1520 = vadd.xlane.f32.xlu1 %v1497_v13  ;;  %v1505_v40 = vmul.f32 %v4375_v35, %v4375_v35 }
 0x658   :  { %v1503_v23 = vmul.f32 %v4383_v10, %v4383_v10 }
 0x659   :  { %1514 = vadd.xlane.f32.xlu0 %v1494_v15 }
 0x65b   :  { %1516 = vadd.xlane.f32.xlu1 %v1495_v16 }
 0x65d   :  { %1462 = vadd.xlane.f32.xlu0 %v4348_v18 }
 0x65f   :  { %1464 = vadd.xlane.f32.xlu1 %v4351_v24 }
 0x661   :  { %1458 = vadd.xlane.f32.xlu0 %v4355_v25 }
 0x663   :  { %1460 = vadd.xlane.f32.xlu1 %v4359_v27 }
 0x665   :  { %1526 = vadd.xlane.f32.xlu0 %v1500_v21 }
 0x667   :  { %1528 = vadd.xlane.f32.xlu1 %v1501_v43 }
 0x669   :  { %1522 = vadd.xlane.f32.xlu0 %v1498_v6 }
 0x66b   :  { %1524 = vadd.xlane.f32.xlu1 %v1499_v32 }
 0x66d   :  { %1470 = vadd.xlane.f32.xlu0 %v4372_v34 }
 0x66f   :  { %1472 = vadd.xlane.f32.xlu1 %v4375_v35 }
 0x671   :  { %1466 = vadd.xlane.f32.xlu0 %v4379_v39 }
 0x673   :  { %1468 = vadd.xlane.f32.xlu1 %v4383_v10 }
 0x675   :  { %1530 = vadd.xlane.f32.xlu0 %v1502_v38 }
 0x677   :  { %1532 = vadd.xlane.f32.xlu1 %v1503_v23 }
 0x679   :  { %1534 = vadd.xlane.f32.xlu0 %v1504_v48 }
 0x67b   :  { %1536 = vadd.xlane.f32.xlu1 %v1505_v40 }
 0x6ca   :  { %v1447_v50 = vpop.xlane.xlu0 %1446 }
 0x6cb   :  { %v4410_v59 = vmul.f32 0.03125, %v1447_v50 }
 0x6cc   :  { %v1449_v54 = vpop.xlane.xlu1 %1448 }
 0x6cd   :  { %v4412_v47 = vmul.f32 0.03125, %v1449_v54  ;;  %v1556_v62 = vmul.f32 %v4410_v59, %v4410_v59 }
 0x6ce   :  { %v1443_v57 = vpop.xlane.xlu0 %1442 }
 0x6cf   :  { %v4419_v46 = vmul.f32 0.03125, %v1443_v57  ;;  %v1557_v3 = vmul.f32 %v4412_v47, %v4412_v47 }
 0x6d0   :  { %v1445_v61 = vpop.xlane.xlu1 %1444 }
 0x6d1   :  { %v4421_v53 = vmul.f32 0.03125, %v1445_v61  ;;  %v1554_v33 = vmul.f32 %v4419_v46, %v4419_v46 }
 0x6d2   :  { %v1511_v55 = vpop.xlane.xlu0 %1510 }
 0x6d3   :  { %v1540_v31 = vmul.f32 0.03125, %v1511_v55  ;;  %v1555_v37 = vmul.f32 %v4421_v53, %v4421_v53 }
 0x6d4   :  { %v1513_v26 = vpop.xlane.xlu1 %1512 }
 0x6d5   :  { %v1572_v5 = vsub.f32 %v1540_v31, %v1556_v62  ;;  %v1541_v28 = vmul.f32 0.03125, %v1513_v26  ;;  %v1604_v26 = vsub.f32 %v4300_v0, %v4410_v59 }
 0x6d6   :  { %v1507_v60 = vpop.xlane.xlu0 %1506 }
 0x6d7   :  { %v1588_v44 = vmax.f32 %v1572_v5, 0.0  ;;  %v1573_v56 = vsub.f32 %v1541_v28, %v1557_v3  ;;  %v1538_v20 = vmul.f32 0.03125, %v1507_v60  ;;  %v1605_v3 = vsub.f32 %v4303_v2, %v4412_v47 }
 0x6d8   :  { %v1509_v12 = vpop.xlane.xlu1 %1508 }
 0x6d9   :  { %v1620_v22 = vadd.f32 1e-05, %v1588_v44  ;;  %v1589_v13 = vmax.f32 %v1573_v56, 0.0  ;;  %v1570_v14 = vsub.f32 %v1538_v20, %v1554_v33  ;;  %v1539_v15 = vmul.f32 0.03125, %v1509_v12 }
 0x6da   :  { %v1455_v16 = vpop.xlane.xlu0 %1454  ;;  %v1602_v56 = vsub.f32 %v4307_v4, %v4419_v46 }
 0x6db   :  { %3618 = vrsqrt.f32 %v1620_v22  ;;  %v1621_v21 = vadd.f32 1e-05, %v1589_v13  ;;  %v1586_v43 = vmax.f32 %v1570_v14, 0.0  ;;  %v1571_v6 = vsub.f32 %v1539_v15, %v1555_v37  ;;  %v4457_v14 = vld [vmem:[%s4995_s12] ss:$0 sm:$0xff] }
 0x6dc   :  { %v1457_v32 = vpop.xlane.xlu1 %1456  ;;  %v4432_v41 = vmul.f32 0.03125, %v1455_v16  ;;  %v1603_v15 = vsub.f32 %v4311_v30, %v4421_v53  ;;  %v4467_v30 = vld [vmem:[%s4996_s13] ss:$0 sm:$0xff] }
 0x6dd   :  { %3620 = vrsqrt.f32 %v1621_v21  ;;  %v1618_v38 = vadd.f32 1e-05, %v1586_v43  ;;  %v1587_v23 = vmax.f32 %v1571_v6, 0.0  ;;  %v4434_v49 = vmul.f32 0.03125, %v1457_v32 }
 0x6de   :  { %v1451_v48 = vpop.xlane.xlu0 %1450  ;;  %v1560_v51 = vmul.f32 %v4432_v41, %v4432_v41 }
 0x6df   :  { %3622 = vrsqrt.f32 %v1618_v38  ;;  %v1619_v40 = vadd.f32 1e-05, %v1587_v23  ;;  %v4438_v54 = vmul.f32 0.03125, %v1451_v48  ;;  %v1561_v45 = vmul.f32 %v4434_v49, %v4434_v49 }
 0x6e0   :  { %v1453_v42 = vpop.xlane.xlu1 %1452 }
 0x6e1   :  { %3624 = vrsqrt.f32 %v1619_v40  ;;  %v4440_v58 = vmul.f32 0.03125, %v1453_v42  ;;  %v1558_v60 = vmul.f32 %v4438_v54, %v4438_v54 }
 0x6e2   :  { %v1519_v50 = vpop.xlane.xlu0 %1518 }
 0x6e3   :  { %v1544_v57 = vmul.f32 0.03125, %v1519_v50  ;;  %v1559_v20 = vmul.f32 %v4440_v58, %v4440_v58 }
 0x6e4   :  { %v1521_v61 = vpop.xlane.xlu1 %1520 }
 0x6e5   :  { %v3619_v55 = vpop.eup %3618  ;;  %v1576_v62 = vsub.f32 %v1544_v57, %v1560_v51  ;;  %v1545_v31 = vmul.f32 0.03125, %v1521_v61 }
 0x6e6   :  { %v1515_v5 = vpop.xlane.xlu0 %1514  ;;  %v1652_v12 = vmul.f32 %v3619_v55, %v1604_v26 }
 0x6e7   :  { %v3621_v28 = vpop.eup %3620  ;;  %v1592_v52 = vmax.f32 %v1576_v62, 0.0  ;;  %v1577_v33 = vsub.f32 %v1545_v31, %v1561_v45  ;;  %v1542_v44 = vmul.f32 0.03125, %v1515_v5 }
 0x6e8   :  { %v1517_v37 = vpop.xlane.xlu1 %1516  ;;  %v1653_v0 = vmul.f32 %v3621_v28, %v1605_v3  ;;  %v1674_v40 = vmul.f32 %v4457_v14, %v1652_v12 }
 0x6e9   :  { %v3623_v59 = vpop.eup %3622  ;;  %v1624_v22 = vadd.f32 1e-05, %v1592_v52  ;;  %v1593_v2 = vmax.f32 %v1577_v33, 0.0  ;;  %v1574_v47 = vsub.f32 %v1542_v44, %v1558_v60  ;;  %v1543_v13 = vmul.f32 0.03125, %v1517_v37 }
 0x6ea   :  { %v1463_v4 = vpop.xlane.xlu0 %1462  ;;  %v1650_v46 = vmul.f32 %v3623_v59, %v1602_v56  ;;  %v1675_v16 = vmul.f32 %v4457_v14, %v1653_v0  ;;  %v1696_v26 = vadd.f32 %v4467_v30, %v1674_v40 }
 0x6eb   :  { %v3625_v21 = vpop.eup %3624  ;;  %3626 = vrsqrt.f32 %v1624_v22  ;;  %v1625_v43 = vadd.f32 1e-05, %v1593_v2  ;;  %v1590_v6 = vmax.f32 %v1574_v47, 0.0  ;;  %v1575_v32 = vsub.f32 %v1543_v13, %v1559_v20 }
 0x6ec   :  { %v1465_v38 = vpop.xlane.xlu1 %1464  ;;  %v1651_v23 = vmul.f32 %v3625_v21, %v1603_v15  ;;  %v1672_v48 = vmul.f32 %v4457_v14, %v1650_v46  ;;  %v1697_v61 = vadd.f32 %v4467_v30, %v1675_v16  ;;  %v4472_v45 = vmul.f32 0.03125, %v1463_v4 }
 0x6ed   :  { %3628 = vrsqrt.f32 %v1625_v43  ;;  %v1622_v42 = vadd.f32 1e-05, %v1590_v6  ;;  %v1591_v50 = vmax.f32 %v1575_v32, 0.0  ;;  %v4476_v3 = vmul.f32 0.03125, %v1465_v38 }
 0x6ee   :  { %v1459_v53 = vpop.xlane.xlu0 %1458  ;;  %v1673_v51 = vmul.f32 %v4457_v14, %v1651_v23  ;;  %v1694_v57 = vadd.f32 %v4467_v30, %v1672_v48  ;;  %v1713_v52 = vmax.f32 %v1697_v61, 0.0  ;;  %v1564_v33 = vmul.f32 %v4472_v45, %v4472_v45 }
 0x6ef   :  { %3630 = vrsqrt.f32 %v1622_v42  ;;  %v1623_v55 = vadd.f32 1e-05, %v1591_v50  ;;  %v4480_v44 = vmul.f32 0.03125, %v1459_v53  ;;  %v1712_v0 = vmax.f32 %v1696_v26, 0.0 }
 0x6f0   :  { %v1461_v62 = vpop.xlane.xlu1 %1460  ;;  %v1695_v31 = vadd.f32 %v4467_v30, %v1673_v51  ;;  %v1710_v28 = vmax.f32 %v1694_v57, 0.0  ;;  %v1565_v22 = vmul.f32 %v4476_v3, %v4476_v3  ;;  %v1608_v13 = vsub.f32 %v4324_v7, %v4432_v41 }
 0x6f1   :  { %3632 = vrsqrt.f32 %v1623_v55  ;;  %v4482_v20 = vmul.f32 0.03125, %v1461_v62  ;;  %v1609_v15 = vsub.f32 %v4327_v29, %v4434_v49  ;;  %v1727_v46 = vpack.c.bf16 %v1713_v52, %v1712_v0 }
 0x6f2   :  { %v1527_v5 = vpop.xlane.xlu0 %1526  ;;  %v1711_v60 = vmax.f32 %v1695_v31, 0.0  ;;  %v1562_v21 = vmul.f32 %v4480_v44, %v4480_v44  ;;  %v1606_v38 = vsub.f32 %v4331_v9, %v4438_v54  ;;  %v1607_v53 = vsub.f32 %v4335_v36, %v4440_v58 }
 0x6f3   :  { %v1548_v56 = vmul.f32 0.03125, %v1527_v5  ;;  %v1563_v7 = vmul.f32 %v4482_v20, %v4482_v20 }
 0x6f4   :  { %v1529_v37 = vpop.xlane.xlu1 %1528  ;;  %v1726_v12 = vpack.c.bf16 %v1711_v60, %v1710_v28 }
 0x6f5   :  { %v3627_v59 = vpop.eup %3626  ;;  %v1580_v2 = vsub.f32 %v1548_v56, %v1564_v33  ;;  %v1549_v47 = vmul.f32 0.03125, %v1529_v37 }
 0x6f6   :  { %3279 = vmatprep.subr.bf16.mxu0 %v1726_v12  ;;  %v1523_v4 = vpop.xlane.xlu0 %1522  ;;  %v1656_v29 = vmul.f32 %v3627_v59, %v1608_v13 }
 0x6f7   :  { %v3629_v16 = vpop.eup %3628  ;;  %v1596_v43 = vmax.f32 %v1580_v2, 0.0  ;;  %v1581_v6 = vsub.f32 %v1549_v47, %v1565_v22  ;;  %v1546_v32 = vmul.f32 0.03125, %v1523_v4  ;;  %3280 = vmatpush3.bf16.msra.mxu0 %v1726_v12 }
 0x6f8   :  { %v1525_v41 = vpop.xlane.xlu1 %1524  ;;  %3281 = vmatprep.subr.bf16.mxu0 %v1727_v46  ;;  %v1657_v49 = vmul.f32 %v3629_v16, %v1609_v15  ;;  %v1678_v28 = vmul.f32 %v4457_v14, %v1656_v29 }
 0x6f9   :  { %v3631_v23 = vpop.eup %3630  ;;  %v1628_v48 = vadd.f32 1e-05, %v1596_v43  ;;  %v1597_v40 = vmax.f32 %v1581_v6, 0.0  ;;  %v1578_v42 = vsub.f32 %v1546_v32, %v1562_v21  ;;  %v1547_v50 = vmul.f32 0.03125, %v1525_v41 }
 0x6fa   :  { %v1471_v51 = vpop.xlane.xlu0 %1470  ;;  %v1654_v57 = vmul.f32 %v3631_v23, %v1606_v38  ;;  %v1679_v61 = vmul.f32 %v4457_v14, %v1657_v49  ;;  %v1700_v22 = vadd.f32 %v4467_v30, %v1678_v28  ;;  %v1612_v23 = vsub.f32 %v4348_v18, %v4472_v45 }
 0x6fb   :  { %v3633_v9 = vpop.eup %3632  ;;  %3634 = vrsqrt.f32 %v1628_v48  ;;  %v1629_v54 = vadd.f32 1e-05, %v1597_v40  ;;  %v1594_v55 = vmax.f32 %v1578_v42, 0.0  ;;  %v1579_v62 = vsub.f32 %v1547_v50, %v1563_v7  ;;  %3282 = vmatpush3.bf16.msra.mxu0 %v1727_v46 }
 0x6fc   :  { %v1473_v31 = vpop.xlane.xlu1 %1472  ;;  %v1655_v26 = vmul.f32 %v3633_v9, %v1607_v53  ;;  %v1676_v5 = vmul.f32 %v4457_v14, %v1654_v57  ;;  %v1701_v56 = vadd.f32 %v4467_v30, %v1679_v61  ;;  %v4510_v46 = vmul.f32 0.03125, %v1471_v51 }
 0x6fd   :  { %3636 = vrsqrt.f32 %v1629_v54  ;;  %v1626_v60 = vadd.f32 1e-05, %v1594_v55  ;;  %v1595_v52 = vmax.f32 %v1579_v62, 0.0  ;;  %v4514_v43 = vmul.f32 0.03125, %v1473_v31 }
 0x6fe   :  { %v1467_v36 = vpop.xlane.xlu0 %1466  ;;  %v1677_v58 = vmul.f32 %v4457_v14, %v1655_v26  ;;  %v1698_v33 = vadd.f32 %v4467_v30, %v1676_v5  ;;  %v1717_v4 = vmax.f32 %v1701_v56, 0.0  ;;  %v1716_v38 = vmax.f32 %v1700_v22, 0.0 }
 0x6ff   :  { %3638 = vrsqrt.f32 %v1626_v60  ;;  %v1627_v37 = vadd.f32 1e-05, %v1595_v52  ;;  %v4504_v12 = vmul.f32 0.03125, %v1467_v36  ;;  %v1613_v48 = vsub.f32 %v4351_v24, %v4476_v3 }
 0x700   :  { %v1469_v0 = vpop.xlane.xlu1 %1468  ;;  %v1699_v59 = vadd.f32 %v4467_v30, %v1677_v58  ;;  %v1714_v13 = vmax.f32 %v1698_v33, 0.0  ;;  %v1729_v42 = vpack.c.bf16 %v1717_v4, %v1716_v38  ;;  %v1568_v53 = vmul.f32 %v4510_v46, %v4510_v46 }
 0x701   :  { %3640 = vrsqrt.f32 %v1627_v37  ;;  %v4508_v2 = vmul.f32 0.03125, %v1469_v0  ;;  %v1566_v16 = vmul.f32 %v4504_v12, %v4504_v12  ;;  %v1610_v9 = vsub.f32 %v4355_v25, %v4480_v44 }
 0x702   :  { %v1531_v47 = vpop.xlane.xlu0 %1530  ;;  %v1715_v15 = vmax.f32 %v1699_v59, 0.0  ;;  %v1569_v18 = vmul.f32 %v4514_v43, %v4514_v43  ;;  %v1611_v5 = vsub.f32 %v4359_v27, %v4482_v20 }
 0x703   :  { %v1550_v21 = vmul.f32 0.03125, %v1531_v47  ;;  %v1567_v41 = vmul.f32 %v4508_v2, %v4508_v2 }
 0x704   :  { %v1533_v6 = vpop.xlane.xlu1 %1532  ;;  %v1728_v32 = vpack.c.bf16 %v1715_v15, %v1714_v13 }
 0x705   :  { %v3635_v7 = vpop.eup %3634  ;;  %v1582_v29 = vsub.f32 %v1550_v21, %v1566_v16  ;;  %v1551_v49 = vmul.f32 0.03125, %v1533_v6  ;;  %v1614_v21 = vsub.f32 %v4379_v39, %v4504_v12  ;;  %v1617_v39 = vsub.f32 %v4375_v35, %v4514_v43 }
 0x706   :  { %3283 = vmatprep.subr.bf16.mxu0 %v1728_v32  ;;  %v1535_v40 = vpop.xlane.xlu0 %1534  ;;  %v1660_v24 = vmul.f32 %v3635_v7, %v1612_v23  ;;  %v1615_v7 = vsub.f32 %v4383_v10, %v4508_v2  ;;  %v1616_v23 = vsub.f32 %v4372_v34, %v4510_v46 }
 0x707   :  { %v3637_v50 = vpop.eup %3636  ;;  %v1598_v51 = vmax.f32 %v1582_v29, 0.0  ;;  %v1583_v57 = vsub.f32 %v1551_v49, %v1567_v41  ;;  %v1552_v61 = vmul.f32 0.03125, %v1535_v40  ;;  %3284 = vmatpush3.bf16.msra.mxu0 %v1728_v32 }
 0x708   :  { %3285 = vmatprep.subr.bf16.mxu0 %v1729_v42  ;;  %v1537_v45 = vpop.xlane.xlu1 %1536  ;;  %v1661_v3 = vmul.f32 %v3637_v50, %v1613_v48  ;;  %v1682_v56 = vmul.f32 %v4457_v14, %v1660_v24 }
 0x709   :  { %v3639_v54 = vpop.eup %3638  ;;  %v1630_v55 = vadd.f32 1e-05, %v1598_v51  ;;  %v1599_v62 = vmax.f32 %v1583_v57, 0.0  ;;  %v1584_v31 = vsub.f32 %v1552_v61, %v1568_v53  ;;  %v1553_v26 = vmul.f32 0.03125, %v1537_v45 }
 0x70a   :  { %v1658_v28 = vmul.f32 %v3639_v54, %v1610_v9  ;;  %v1683_v60 = vmul.f32 %v4457_v14, %v1661_v3  ;;  %v1704_v13 = vadd.f32 %v4467_v30, %v1682_v56 }
 0x70b   :  { %v3641_v52 = vpop.eup %3640  ;;  %3642 = vrsqrt.f32 %v1630_v55  ;;  %v1631_v25 = vadd.f32 1e-05, %v1599_v62  ;;  %v1600_v44 = vmax.f32 %v1584_v31, 0.0  ;;  %v1585_v36 = vsub.f32 %v1553_v26, %v1569_v18  ;;  %3286 = vmatpush3.bf16.msra.mxu0 %v1729_v42 }
 0x70c   :  { %v1659_v58 = vmul.f32 %v3641_v52, %v1611_v5  ;;  %v1680_v33 = vmul.f32 %v4457_v14, %v1658_v28  ;;  %v1705_v20 = vadd.f32 %v4467_v30, %v1683_v60  ;;  %v1720_v32 = vmax.f32 %v1704_v13, 0.0 }
 0x70d   :  { %3644 = vrsqrt.f32 %v1631_v25  ;;  %v1632_v37 = vadd.f32 1e-05, %v1600_v44  ;;  %v1601_v0 = vmax.f32 %v1585_v36, 0.0 }
 0x70e   :  { %v1681_v59 = vmul.f32 %v4457_v14, %v1659_v58  ;;  %v1702_v27 = vadd.f32 %v4467_v30, %v1680_v33  ;;  %v1721_v16 = vmax.f32 %v1705_v20, 0.0 }
 0x70f   :  { %3646 = vrsqrt.f32 %v1632_v37  ;;  %v1633_v22 = vadd.f32 1e-05, %v1601_v0 }
 0x710   :  { %v1703_v47 = vadd.f32 %v4467_v30, %v1681_v59  ;;  %v1718_v15 = vmax.f32 %v1702_v27, 0.0  ;;  %v1731_v41 = vpack.c.bf16 %v1721_v16, %v1720_v32  ;;  %v2874_v16 = vld [vmem:[%s4998_s15] ss:$0 sm:$0xff] }
 0x711   :  { %3648 = vrsqrt.f32 %v1633_v22 }
 0x712   :  { %v1719_v4 = vmax.f32 %v1703_v47, 0.0 }
 0x714   :  { %v1730_v6 = vpack.c.bf16 %v1719_v4, %v1718_v15  ;;  %v3584_v15 = vld [vmem:[%s4999_s16 + $0x30] sm:$0xff]   ;;  %v3585_v4 = vld [vmem:[%s4999_s16 + $0x38] sm:$0xff]  }
 0x715   :  { %v3643_v38 = vpop.eup %3642 }
 0x716   :  { %3287 = vmatprep.subr.bf16.mxu0 %v1730_v6  ;;  %v1662_v29 = vmul.f32 %v3643_v38, %v1614_v21 }
 0x717   :  { %v3645_v49 = vpop.eup %3644  ;;  %3288 = vmatpush3.bf16.msra.mxu0 %v1730_v6 }
 0x718   :  { %3289 = vmatprep.subr.bf16.mxu0 %v1731_v41  ;;  %v1663_v48 = vmul.f32 %v3645_v49, %v1615_v7  ;;  %v1684_v40 = vmul.f32 %v4457_v14, %v1662_v29 }
 0x719   :  { %v3647_v42 = vpop.eup %3646 }
 0x71a   :  { %v1685_v12 = vmul.f32 %v4457_v14, %v1663_v48  ;;  %v1706_v10 = vadd.f32 %v4467_v30, %v1684_v40  ;;  %v1664_v2 = vmul.f32 %v3647_v42, %v1616_v23 }
 0x71b   :  { %v3649_v50 = vpop.eup %3648  ;;  %3290 = vmatpush3.bf16.msra.mxu0 %v1731_v41 }
 0x71c   :  { %v1707_v53 = vadd.f32 %v4467_v30, %v1685_v12  ;;  %v1665_v51 = vmul.f32 %v3649_v50, %v1617_v39  ;;  %v1686_v34 = vmul.f32 %v4457_v14, %v1664_v2  ;;  %v1722_v46 = vmax.f32 %v1706_v10, 0.0 }
 0x71e   :  { %v1723_v57 = vmax.f32 %v1707_v53, 0.0  ;;  %v1687_v61 = vmul.f32 %v4457_v14, %v1665_v51  ;;  %v1708_v9 = vadd.f32 %v4467_v30, %v1686_v34  ;;  %v3689_v14 = vld [vmem:[%s5030_s6 + $0x38] sm:$0xff]  }
 0x720   :  { %v1732_v18 = vpack.c.bf16 %v1723_v57, %v1722_v46  ;;  %v1709_v35 = vadd.f32 %v4467_v30, %v1687_v61  ;;  %v1724_v43 = vmax.f32 %v1708_v9, 0.0  ;;  %v3577_v30 = vld [vmem:[%s4997_s14 + $0x38] sm:$0xff]  }
 0x721   :  { %3325 = vmatprep.subr.bf16.mxu1 %v3577_v30 }
 0x722   :  { %3291 = vmatprep.subr.bf16.mxu0 %v1732_v18  ;;  %v1725_v45 = vmax.f32 %v1709_v35, 0.0  ;;  %3326 = vmatpush3.bf16.msra.mxu1 %v3577_v30 }
 0x723   :  { %3292 = vmatpush3.bf16.msra.mxu0 %v1732_v18 }
 0x724   :  { %v1733_v24 = vpack.c.bf16 %v1725_v45, %v1724_v43 }
 0x726   :  { %3293 = vmatprep.subr.bf16.mxu0 %v1733_v24 }
 0x727   :  { %3294 = vmatpush3.bf16.msra.mxu0 %v1733_v24 }
 0x72a   :  { %3296 = vmatmul.mubr.bf16.vlgmr.msra.gmra.mrb[48].mxu0 %v4227_v8  ;;  %v3578_v8 = vld [vmem:[%s4999_s16] sm:$0xff]  }
 0x72b   :  { %3299 = vmatprep.mubr.bf16.mxu0 %v4233_v1  ;;  %v3579_v1 = vld [vmem:[%s4999_s16 + $0x8] sm:$0xff]   ;;  %3343 = vmatprep.subr.bf16.mxu0 %v3578_v8 }
 0x72c   :  { %3344 = vmatpush3.bf16.msra.mxu0 %v3578_v8 }
 0x72d   :  { %3345 = vmatprep.subr.bf16.mxu0 %v3579_v1 }
 0x730   :  { %3346 = vmatpush3.bf16.msra.mxu0 %v3579_v1 }
 0x732   :  { %3300 = vmatmul.mubr.bf16.gmra.mrb[52].mxu0 %v4239_v17  ;;  %v3580_v17 = vld [vmem:[%s4999_s16 + $0x10] sm:$0xff]  }
 0x733   :  { %3303 = vmatprep.mubr.bf16.mxu0 %v4245_v11  ;;  %3347 = vmatprep.subr.bf16.mxu0 %v3580_v17  ;;  %v3581_v11 = vld [vmem:[%s4999_s16 + $0x18] sm:$0xff]  }
 0x734   :  { %3348 = vmatpush3.bf16.msra.mxu0 %v3580_v17 }
 0x735   :  { %3349 = vmatprep.subr.bf16.mxu0 %v3581_v11 }
 0x738   :  { %3350 = vmatpush3.bf16.msra.mxu0 %v3581_v11 }
 0x73a   :  { %3304 = vmatmul.mubr.bf16.gmra.mrb[56].mxu0 %v4251_v19  ;;  %v3582_v19 = vld [vmem:[%s4999_s16 + $0x20] sm:$0xff]  }
 0x73b   :  { %3307 = vmatprep.mubr.bf16.mxu0 %v4257_v63  ;;  %3351 = vmatprep.subr.bf16.mxu0 %v3582_v19  ;;  %v3583_v63 = vld [vmem:[%s4999_s16 + $0x28] sm:$0xff]  }
 0x73c   :  { %3352 = vmatpush3.bf16.msra.mxu0 %v3582_v19 }
 0x73d   :  { %3353 = vmatprep.subr.bf16.mxu0 %v3583_v63 }
 0x740   :  { %3354 = vmatpush3.bf16.msra.mxu0 %v3583_v63 }
 0x741   :  { %3355 = vmatprep.subr.bf16.mxu0 %v3584_v15 }
 0x742   :  { %3308 = vmatmul.mubr.bf16.gmra.mrb[60].mxu0 %v3689_v14 }
 0x744   :  { %3356 = vmatpush3.bf16.msra.mxu0 %v3584_v15 }
 0x745   :  { %3357 = vmatprep.subr.bf16.mxu0 %v3585_v4 }
 0x748   :  { %3358 = vmatpush3.bf16.msra.mxu0 %v3585_v4 }
 0x7fd   :  { %v3297_v3 = vpop.f32.mrb[48].mxu0 }
 0x7fe   :  { %v1768_v54 = vpop.f32.mrb[49].mxu0 }
 0x7ff   :  { %v3298_v55 = vpop.f32.mrb[50].mxu0 }
 0x800   :  { %v1868_v62 = vpack.c.bf16 %v3298_v55, %v3297_v3  ;;  %v1771_v31 = vpop.f32.mrb[51].mxu0 }
 0x801   :  { %v1867_v26 = vpack.c.bf16 %v1771_v31, %v1768_v54 }
 0x803   :  { %3327 = vmatprep.mubr.bf16.mxu1 %v1867_v26 }
 0x804   :  { %3328 = vmatmul.mubr.bf16.vlgmr.msra.gmra.mrb[48].mxu1 %v1868_v62 }
 0x805   :  { %v3301_v5 = vpop.f32.mrb[52].mxu0 }
 0x806   :  { %v1784_v28 = vpop.f32.mrb[53].mxu0 }
 0x807   :  { %v3302_v60 = vpop.f32.mrb[54].mxu0 }
 0x808   :  { %v1870_v52 = vpack.c.bf16 %v3302_v60, %v3301_v5  ;;  %v1787_v25 = vpop.f32.mrb[55].mxu0 }
 0x809   :  { %v1869_v44 = vpack.c.bf16 %v1787_v25, %v1784_v28 }
 0x80b   :  { %3331 = vmatprep.mubr.bf16.mxu1 %v1869_v44 }
 0x80c   :  { %3332 = vmatmul.mubr.bf16.gmra.mrb[52].mxu1 %v1870_v52 }
 0x80d   :  { %v3305_v36 = vpop.f32.mrb[56].mxu0 }
 0x80e   :  { %v1800_v58 = vpop.f32.mrb[57].mxu0 }
 0x80f   :  { %v3306_v33 = vpop.f32.mrb[58].mxu0 }
 0x810   :  { %v1872_v56 = vpack.c.bf16 %v3306_v33, %v3305_v36  ;;  %v1803_v37 = vpop.f32.mrb[59].mxu0 }
 0x811   :  { %v1871_v0 = vpack.c.bf16 %v1803_v37, %v1800_v58 }
 0x813   :  { %3335 = vmatprep.mubr.bf16.mxu1 %v1871_v0 }
 0x814   :  { %3336 = vmatmul.mubr.bf16.gmra.mrb[56].mxu1 %v1872_v56 }
 0x815   :  { %v3309_v59 = vpop.f32.mrb[60].mxu0 }
 0x816   :  { %v1816_v27 = vpop.f32.mrb[61].mxu0 }
 0x817   :  { %v3310_v20 = vpop.f32.mrb[62].mxu0 }
 0x818   :  { %v1874_v22 = vpack.c.bf16 %v3310_v20, %v3309_v59  ;;  %v1819_v47 = vpop.f32.mrb[63].mxu0 }
 0x819   :  { %v1873_v13 = vpack.c.bf16 %v1819_v47, %v1816_v27  ;;  %v4596_v27 = vld [vmem:[%s5000_s17] ss:$0 sm:$0xff] }
 0x81b   :  { %3339 = vmatprep.mubr.bf16.mxu1 %v1873_v13 }
 0x81c   :  { %3340 = vmatmul.mubr.bf16.gmra.mrb[60].mxu1 %v1874_v22 }
 0x8d7   :  { %v3329_v21 = vpop.f32.mrb[48].mxu1 }
 0x8d8   :  { %v1972_v6 = vadd.f32 %v3329_v21, %v2874_v16  ;;  %v1963_v32 = vpop.f32.mrb[49].mxu1 }
 0x8d9   :  { %v1964_v38 = vadd.f32 %v2874_v16, %v1963_v32  ;;  %v3330_v7 = vpop.f32.mrb[50].mxu1 }
 0x8da   :  { %v1975_v41 = vadd.f32 %v3330_v7, %v2874_v16  ;;  %v1966_v29 = vpop.f32.mrb[51].mxu1  ;;  %v2028_v23 = vmax.f32 %v1972_v6, 0.0 }
 0x8db   :  { %v1967_v49 = vadd.f32 %v2874_v16, %v1966_v29  ;;  %v2026_v40 = vmax.f32 %v1964_v38, 0.0 }
 0x8dc   :  { %v2029_v48 = vmax.f32 %v1975_v41, 0.0 }
 0x8dd   :  { %v2027_v42 = vmax.f32 %v1967_v49, 0.0 }
 0x8de   :  { %v2043_v39 = vpack.c.bf16 %v2029_v48, %v2028_v23 }
 0x8df   :  { %v2042_v12 = vpack.c.bf16 %v2027_v42, %v2026_v40  ;;  %v3333_v10 = vpop.f32.mrb[52].mxu1 }
 0x8e0   :  { %v1988_v2 = vadd.f32 %v3333_v10, %v2874_v16  ;;  %v1979_v50 = vpop.f32.mrb[53].mxu1 }
 0x8e1   :  { %v1980_v53 = vadd.f32 %v2874_v16, %v1979_v50  ;;  %v3334_v51 = vpop.f32.mrb[54].mxu1  ;;  %3359 = vmatprep.mubr.bf16.mxu0 %v2042_v12 }
 0x8e2   :  { %v2032_v34 = vmax.f32 %v1988_v2, 0.0  ;;  %v1991_v46 = vadd.f32 %v3334_v51, %v2874_v16  ;;  %v1982_v57 = vpop.f32.mrb[55].mxu1  ;;  %3360 = vmatmul.mubr.bf16.vlgmr.msra.gmra.mrb[64].mxu0 %v2043_v39 }
 0x8e3   :  { %v2030_v61 = vmax.f32 %v1980_v53, 0.0  ;;  %v1983_v9 = vadd.f32 %v2874_v16, %v1982_v57 }
 0x8e4   :  { %v2033_v18 = vmax.f32 %v1991_v46, 0.0 }
 0x8e5   :  { %v2031_v35 = vmax.f32 %v1983_v9, 0.0 }
 0x8e6   :  { %v2045_v43 = vpack.c.bf16 %v2033_v18, %v2032_v34 }
 0x8e7   :  { %v2044_v45 = vpack.c.bf16 %v2031_v35, %v2030_v61  ;;  %v3337_v24 = vpop.f32.mrb[56].mxu1 }
 0x8e8   :  { %v2004_v14 = vadd.f32 %v3337_v24, %v2874_v16  ;;  %v1995_v30 = vpop.f32.mrb[57].mxu1 }
 0x8e9   :  { %3363 = vmatprep.mubr.bf16.mxu0 %v2044_v45  ;;  %v1996_v8 = vadd.f32 %v2874_v16, %v1995_v30  ;;  %v3338_v1 = vpop.f32.mrb[58].mxu1 }
 0x8ea   :  { %3364 = vmatmul.mubr.bf16.gmra.mrb[68].mxu0 %v2045_v43  ;;  %v2036_v17 = vmax.f32 %v2004_v14, 0.0  ;;  %v2007_v11 = vadd.f32 %v3338_v1, %v2874_v16  ;;  %v1998_v19 = vpop.f32.mrb[59].mxu1 }
 0x8eb   :  { %v2034_v63 = vmax.f32 %v1996_v8, 0.0  ;;  %v1999_v3 = vadd.f32 %v2874_v16, %v1998_v19 }
 0x8ec   :  { %v2037_v54 = vmax.f32 %v2007_v11, 0.0 }
 0x8ed   :  { %v2035_v55 = vmax.f32 %v1999_v3, 0.0 }
 0x8ee   :  { %v2047_v62 = vpack.c.bf16 %v2037_v54, %v2036_v17 }
 0x8ef   :  { %v2046_v31 = vpack.c.bf16 %v2035_v55, %v2034_v63  ;;  %v3341_v26 = vpop.f32.mrb[60].mxu1 }
 0x8f0   :  { %v2020_v5 = vadd.f32 %v3341_v26, %v2874_v16  ;;  %v2011_v28 = vpop.f32.mrb[61].mxu1  ;;  %v2534_v26 = vld [vmem:[%s5005_s22] sm:$0xff] }
 0x8f1   :  { %3367 = vmatprep.mubr.bf16.mxu0 %v2046_v31  ;;  %v2012_v60 = vadd.f32 %v2874_v16, %v2011_v28  ;;  %v3342_v52 = vpop.f32.mrb[62].mxu1  ;;  %v3714_v31 = vmov 0.0   ;;  %v2536_v28 = vld [vmem:[%s5005_s22 + $0x10] sm:$0xff] }
 0x8f2   :  { %3368 = vmatmul.mubr.bf16.gmra.mrb[72].mxu0 %v2047_v62  ;;  %v2040_v25 = vmax.f32 %v2020_v5, 0.0  ;;  %v2023_v44 = vadd.f32 %v3342_v52, %v2874_v16  ;;  %v2014_v36 = vpop.f32.mrb[63].mxu1  ;;  %3375 = vmatprep.subr.bf16.mxu1 %v3714_v31  ;;  %v2535_v5 = vld [vmem:[%s5005_s22 + $0x8] sm:$0xff] }
 0x8f3   :  { %v2038_v58 = vmax.f32 %v2012_v60, 0.0  ;;  %v2015_v33 = vadd.f32 %v2874_v16, %v2014_v36  ;;  %3391 = vmatprep.mubr.msk.bf16.mxu1 %vm3715_vm0, %v3714_v31  ;;  %v3716_v60 = vmov 0.0|0.0   ;;  %v3471_v52 = vpack.c.bf16 %v2535_v5, %v2534_v26  ;;  %v2538_v36 = vld [vmem:[%s5005_s22 + $0x20] sm:$0xff] }
 0x8f4   :  { %v2041_v56 = vmax.f32 %v2023_v44, 0.0  ;;  %3470 = vmatprep.subr.bf16.mxu0 %v3716_v60 }
 0x8f5   :  { %v2039_v37 = vmax.f32 %v2015_v33, 0.0  ;;  %3472 = vmatpush3.bf16.msra.mxu0 %v3471_v52 }
 0x8f6   :  { %v2049_v0 = vpack.c.bf16 %v2041_v56, %v2040_v25  ;;  %v2537_v25 = vld [vmem:[%s5005_s22 + $0x18] sm:$0xff]  ;;  %3473 = vmatprep.subr.bf16.mxu0 %v3716_v60  ;;  %v2540_v56 = vld [vmem:[%s5005_s22 + $0x30] sm:$0xff] }
 0x8f7   :  { %v2048_v59 = vpack.c.bf16 %v2039_v37, %v2038_v58  ;;  %v3474_v44 = vpack.c.bf16 %v2537_v25, %v2536_v28  ;;  %v2539_v58 = vld [vmem:[%s5005_s22 + $0x28] sm:$0xff]  ;;  %v2541_v37 = vld [vmem:[%s5005_s22 + $0x38] sm:$0xff] }
 0x8f8   :  { %v3477_v33 = vpack.c.bf16 %v2539_v58, %v2538_v36 }
 0x8f9   :  { %3371 = vmatprep.mubr.bf16.mxu0 %v2048_v59  ;;  %3475 = vmatpush3.bf16.msra.mxu0 %v3474_v44  ;;  %v2542_v59 = vld [vmem:[%s5005_s22 + $0x40] sm:$0xff] }
 0x8fa   :  { %3372 = vmatmul.mubr.bf16.gmra.mrb[76].mxu0 %v2049_v0  ;;  %3476 = vmatprep.subr.bf16.mxu0 %v3716_v60  ;;  %v3480_v0 = vpack.c.bf16 %v2541_v37, %v2540_v56 }
 0x8fb   :  { %3432 = vmatprep.mubr.msk.f32.mxu0 %vm3715_vm0, %v3714_v31 }
 0x8fd   :  { %3478 = vmatpush3.bf16.msra.mxu0 %v3477_v33 }
 0x8fe   :  { %3479 = vmatprep.subr.bf16.mxu0 %v3716_v60 }
 0x901   :  { %3481 = vmatpush3.bf16.msra.mxu0 %v3480_v0 }
 0x902   :  { %3482 = vmatprep.subr.bf16.mxu0 %v3716_v60 }
 0x9b5   :  { %v3361_v20 = vpop.f32.mrb[64].mxu0 }
 0x9b6   :  { %v4599_v22 = vadd.f32 %v3361_v20, %v4596_v27  ;;  %v2138_v47 = vpop.f32.mrb[65].mxu0 }
 0x9b7   :  { %v3362_v13 = vpop.f32.mrb[66].mxu0  ;;  %v4606_v16 = vadd.f32 %v4596_v27, %v2138_v47  ;;  %v2544_v47 = vld [vmem:[%s5005_s22 + $0x50] sm:$0xff] }
 0x9b8   :  { %v4602_v15 = vadd.f32 %v3362_v13, %v4596_v27  ;;  %2205 = vadd.xlane.f32.xlu0 %v4599_v22  ;;  %v2141_v4 = vpop.f32.mrb[67].mxu0  ;;  %v2251_v38 = vmul.f32 %v4599_v22, %v4599_v22  ;;  %v2545_v13 = vld [vmem:[%s5005_s22 + $0x58] sm:$0xff] }
 0x9b9   :  { %v4610_v21 = vadd.f32 %v4596_v27, %v2141_v4  ;;  %v2249_v49 = vmul.f32 %v4606_v16, %v4606_v16  ;;  %v3486_v4 = vpack.c.bf16 %v2545_v13, %v2544_v47 }
 0x9ba   :  { %2207 = vadd.xlane.f32.xlu1 %v4602_v15  ;;  %v2252_v29 = vmul.f32 %v4602_v15, %v4602_v15 }
 0x9bb   :  { %v2250_v23 = vmul.f32 %v4610_v21, %v4610_v21 }
 0x9bc   :  { %2201 = vadd.xlane.f32.xlu0 %v4606_v16 }
 0x9bd   :  { %v3365_v6 = vpop.f32.mrb[68].mxu0 }
 0x9be   :  { %v2154_v32 = vpop.f32.mrb[69].mxu0  ;;  %2203 = vadd.xlane.f32.xlu1 %v4610_v21  ;;  %v4623_v40 = vadd.f32 %v3365_v6, %v4596_v27  ;;  %v2546_v6 = vld [vmem:[%s5005_s22 + $0x60] sm:$0xff] }
 0x9bf   :  { %v3366_v7 = vpop.f32.mrb[70].mxu0  ;;  %v4630_v2 = vadd.f32 %v4596_v27, %v2154_v32  ;;  %v2547_v32 = vld [vmem:[%s5005_s22 + $0x68] sm:$0xff] }
 0x9c0   :  { %v2157_v41 = vpop.f32.mrb[71].mxu0  ;;  %2269 = vadd.xlane.f32.xlu0 %v2251_v38  ;;  %v4626_v12 = vadd.f32 %v3366_v7, %v4596_v27  ;;  %v2255_v51 = vmul.f32 %v4623_v40, %v4623_v40  ;;  %v3489_v38 = vpack.c.bf16 %v2547_v32, %v2546_v6  ;;  %v2548_v7 = vld [vmem:[%s5005_s22 + $0x70] sm:$0xff] }
 0x9c1   :  { %v4634_v50 = vadd.f32 %v4596_v27, %v2157_v41  ;;  %v2253_v9 = vmul.f32 %v4630_v2, %v4630_v2  ;;  %v2549_v41 = vld [vmem:[%s5005_s22 + $0x78] sm:$0xff] }
 0x9c2   :  { %2271 = vadd.xlane.f32.xlu1 %v2252_v29  ;;  %v2256_v57 = vmul.f32 %v4626_v12, %v4626_v12  ;;  %v3492_v29 = vpack.c.bf16 %v2549_v41, %v2548_v7 }
 0x9c3   :  { %v2254_v18 = vmul.f32 %v4634_v50, %v4634_v50 }
 0x9c4   :  { %2265 = vadd.xlane.f32.xlu0 %v2249_v49 }
 0x9c5   :  { %v3369_v48 = vpop.f32.mrb[72].mxu0 }
 0x9c6   :  { %2267 = vadd.xlane.f32.xlu1 %v2250_v23  ;;  %v2170_v42 = vpop.f32.mrb[73].mxu0  ;;  %v4647_v35 = vadd.f32 %v3369_v48, %v4596_v27 }
 0x9c7   :  { %v3370_v39 = vpop.f32.mrb[74].mxu0  ;;  %v4654_v45 = vadd.f32 %v4596_v27, %v2170_v42 }
 0x9c8   :  { %2213 = vadd.xlane.f32.xlu0 %v4623_v40  ;;  %v2173_v10 = vpop.f32.mrb[75].mxu0  ;;  %v4650_v43 = vadd.f32 %v3370_v39, %v4596_v27  ;;  %v2259_v14 = vmul.f32 %v4647_v35, %v4647_v35 }
 0x9c9   :  { %v4658_v24 = vadd.f32 %v4596_v27, %v2173_v10  ;;  %v2257_v8 = vmul.f32 %v4654_v45, %v4654_v45 }
 0x9ca   :  { %2215 = vadd.xlane.f32.xlu1 %v4626_v12  ;;  %v2260_v30 = vmul.f32 %v4650_v43, %v4650_v43 }
 0x9cb   :  { %v2258_v1 = vmul.f32 %v4658_v24, %v4658_v24 }
 0x9cc   :  { %2209 = vadd.xlane.f32.xlu0 %v4630_v2 }
 0x9cd   :  { %v3373_v53 = vpop.f32.mrb[76].mxu0 }
 0x9ce   :  { %2211 = vadd.xlane.f32.xlu1 %v4634_v50  ;;  %v2186_v34 = vpop.f32.mrb[77].mxu0  ;;  %v4671_v17 = vadd.f32 %v3373_v53, %v4596_v27 }
 0x9cf   :  { %v3374_v46 = vpop.f32.mrb[78].mxu0  ;;  %v4678_v19 = vadd.f32 %v4596_v27, %v2186_v34 }
 0x9d0   :  { %2277 = vadd.xlane.f32.xlu0 %v2255_v51  ;;  %v2189_v61 = vpop.f32.mrb[79].mxu0  ;;  %v4674_v11 = vadd.f32 %v3374_v46, %v4596_v27  ;;  %v2263_v55 = vmul.f32 %v4671_v17, %v4671_v17 }
 0x9d1   :  { %v4682_v63 = vadd.f32 %v4596_v27, %v2189_v61  ;;  %v2261_v3 = vmul.f32 %v4678_v19, %v4678_v19  ;;  %v2543_v27 = vld [vmem:[%s5005_s22 + $0x48] sm:$0xff] }
 0x9d2   :  { %2279 = vadd.xlane.f32.xlu1 %v2256_v57  ;;  %v2264_v62 = vmul.f32 %v4674_v11, %v4674_v11  ;;  %v3483_v20 = vpack.c.bf16 %v2543_v27, %v2542_v59 }
 0x9d3   :  { %v2262_v54 = vmul.f32 %v4682_v63, %v4682_v63 }
 0x9d4   :  { %2273 = vadd.xlane.f32.xlu0 %v2253_v9  ;;  %3484 = vmatpush3.bf16.msra.mxu0 %v3483_v20 }
 0x9d5   :  { %3485 = vmatprep.subr.bf16.mxu0 %v3716_v60 }
 0x9d6   :  { %2275 = vadd.xlane.f32.xlu1 %v2254_v18 }
 0x9d8   :  { %2221 = vadd.xlane.f32.xlu0 %v4647_v35  ;;  %3487 = vmatpush3.bf16.msra.mxu0 %v3486_v4 }
 0x9d9   :  { %3488 = vmatprep.subr.bf16.mxu0 %v3716_v60 }
 0x9da   :  { %2223 = vadd.xlane.f32.xlu1 %v4650_v43 }
 0x9dc   :  { %2217 = vadd.xlane.f32.xlu0 %v4654_v45  ;;  %3490 = vmatpush3.bf16.msra.mxu0 %v3489_v38 }
 0x9dd   :  { %3491 = vmatprep.subr.bf16.mxu0 %v3716_v60 }
 0x9de   :  { %2219 = vadd.xlane.f32.xlu1 %v4658_v24 }
 0x9e0   :  { %2285 = vadd.xlane.f32.xlu0 %v2259_v14  ;;  %3493 = vmatpush3.bf16.msra.mxu0 %v3492_v29 }
 0x9e2   :  { %2287 = vadd.xlane.f32.xlu1 %v2260_v30 }
 0x9e4   :  { %2281 = vadd.xlane.f32.xlu0 %v2257_v8 }
 0x9e6   :  { %2283 = vadd.xlane.f32.xlu1 %v2258_v1 }
 0x9e8   :  { %2229 = vadd.xlane.f32.xlu0 %v4671_v17 }
 0x9ea   :  { %2231 = vadd.xlane.f32.xlu1 %v4674_v11 }
 0x9ec   :  { %2225 = vadd.xlane.f32.xlu0 %v4678_v19 }
 0x9ee   :  { %2227 = vadd.xlane.f32.xlu1 %v4682_v63 }
 0x9f0   :  { %2289 = vadd.xlane.f32.xlu0 %v2261_v3 }
 0x9f2   :  { %2291 = vadd.xlane.f32.xlu1 %v2262_v54 }
 0x9f4   :  { %2293 = vadd.xlane.f32.xlu0 %v2263_v55 }
 0x9f6   :  { %2295 = vadd.xlane.f32.xlu1 %v2264_v62 }
 0xa45   :  { %v2206_v49 = vpop.xlane.xlu0 %2205 }
 0xa46   :  { %v4755_v42 = vmul.f32 0.03125, %v2206_v49 }
 0xa47   :  { %v2208_v23 = vpop.xlane.xlu1 %2207 }
 0xa48   :  { %v2236_v10 = vmul.f32 0.03125, %v2208_v23  ;;  %v2315_v51 = vmul.f32 %v4755_v42, %v4755_v42 }
 0xa49   :  { %v2202_v48 = vpop.xlane.xlu0 %2201 }
 0xa4a   :  { %v4759_v34 = vmul.f32 0.03125, %v2202_v48  ;;  %v2316_v9 = vmul.f32 %v2236_v10, %v2236_v10  ;;  %v2364_v48 = vsub.f32 %v4602_v15, %v2236_v10 }
 0xa4b   :  { %v2204_v39 = vpop.xlane.xlu1 %2203 }
 0xa4c   :  { %v4761_v57 = vmul.f32 0.03125, %v2204_v39  ;;  %v2313_v8 = vmul.f32 %v4759_v34, %v4759_v34 }
 0xa4d   :  { %v2270_v53 = vpop.xlane.xlu0 %2269 }
 0xa4e   :  { %v2299_v46 = vmul.f32 0.03125, %v2270_v53  ;;  %v2314_v55 = vmul.f32 %v4761_v57, %v4761_v57 }
 0xa4f   :  { %v2272_v61 = vpop.xlane.xlu1 %2271 }
 0xa50   :  { %v2331_v18 = vsub.f32 %v2299_v46, %v2315_v51  ;;  %v2300_v14 = vmul.f32 0.03125, %v2272_v61 }
 0xa51   :  { %v2266_v30 = vpop.xlane.xlu0 %2265 }
 0xa52   :  { %v2347_v1 = vmax.f32 %v2331_v18, 0.0  ;;  %v2332_v3 = vsub.f32 %v2300_v14, %v2316_v9  ;;  %v2297_v54 = vmul.f32 0.03125, %v2266_v30  ;;  %v2363_v18 = vsub.f32 %v4599_v22, %v4755_v42 }
 0xa53   :  { %v2268_v62 = vpop.xlane.xlu1 %2267  ;;  %v2361_v14 = vsub.f32 %v4606_v16, %v4759_v34  ;;  %v4793_v34 = vld [vmem:[%s5001_s18] ss:$0 sm:$0xff] }
 0xa54   :  { %v2379_v26 = vadd.f32 1e-05, %v2347_v1  ;;  %v2348_v5 = vmax.f32 %v2332_v3, 0.0  ;;  %v2329_v28 = vsub.f32 %v2297_v54, %v2313_v8  ;;  %v2298_v52 = vmul.f32 0.03125, %v2268_v62 }
 0xa55   :  { %v2214_v25 = vpop.xlane.xlu0 %2213  ;;  %v2362_v62 = vsub.f32 %v4610_v21, %v4761_v57 }
 0xa56   :  { %v2380_v44 = vadd.f32 1e-05, %v2348_v5  ;;  %v2345_v36 = vmax.f32 %v2329_v28, 0.0  ;;  %v2330_v58 = vsub.f32 %v2298_v52, %v2314_v55  ;;  %3650 = vrsqrt.f32 %v2379_v26 }
 0xa57   :  { %v2216_v33 = vpop.xlane.xlu1 %2215  ;;  %v4767_v27 = vmul.f32 0.03125, %v2214_v25 }
 0xa58   :  { %3652 = vrsqrt.f32 %v2380_v44  ;;  %v2377_v56 = vadd.f32 1e-05, %v2345_v36  ;;  %v2346_v37 = vmax.f32 %v2330_v58, 0.0  ;;  %v4769_v47 = vmul.f32 0.03125, %v2216_v33  ;;  %v4800_v33 = vld [vmem:[%s5002_s19] ss:$0 sm:$0xff] }
 0xa59   :  { %v2210_v0 = vpop.xlane.xlu0 %2209  ;;  %v2319_v4 = vmul.f32 %v4767_v27, %v4767_v27 }
 0xa5a   :  { %3654 = vrsqrt.f32 %v2377_v56  ;;  %v2378_v59 = vadd.f32 1e-05, %v2346_v37  ;;  %v4773_v6 = vmul.f32 0.03125, %v2210_v0  ;;  %v2320_v41 = vmul.f32 %v4769_v47, %v4769_v47 }
 0xa5b   :  { %v2212_v20 = vpop.xlane.xlu1 %2211 }
 0xa5c   :  { %3656 = vrsqrt.f32 %v2378_v59  ;;  %v4775_v38 = vmul.f32 0.03125, %v2212_v20  ;;  %v2317_v51 = vmul.f32 %v4773_v6, %v4773_v6 }
 0xa5d   :  { %v2278_v13 = vpop.xlane.xlu0 %2277 }
 0xa5e   :  { %v2303_v32 = vmul.f32 0.03125, %v2278_v13  ;;  %v2318_v30 = vmul.f32 %v4775_v38, %v4775_v38 }
 0xa5f   :  { %v2280_v7 = vpop.xlane.xlu1 %2279 }
 0xa60   :  { %v2335_v29 = vsub.f32 %v2303_v32, %v2319_v4  ;;  %v2304_v49 = vmul.f32 0.03125, %v2280_v7  ;;  %v3651_v23 = vpop.eup %3650 }
 0xa61   :  { %v2274_v39 = vpop.xlane.xlu0 %2273  ;;  %v2411_v28 = vmul.f32 %v3651_v23, %v2363_v18 }
 0xa62   :  { %v3653_v53 = vpop.eup %3652  ;;  %v2351_v46 = vmax.f32 %v2335_v29, 0.0  ;;  %v2336_v61 = vsub.f32 %v2304_v49, %v2320_v41  ;;  %v2301_v9 = vmul.f32 0.03125, %v2274_v39 }
 0xa63   :  { %v2276_v8 = vpop.xlane.xlu1 %2275  ;;  %v2412_v1 = vmul.f32 %v3653_v53, %v2364_v48  ;;  %v2433_v59 = vmul.f32 %v4793_v34, %v2411_v28 }
 0xa64   :  { %v3655_v15 = vpop.eup %3654  ;;  %v2383_v10 = vadd.f32 1e-05, %v2351_v46  ;;  %v2352_v3 = vmax.f32 %v2336_v61, 0.0  ;;  %v2333_v54 = vsub.f32 %v2301_v9, %v2317_v51  ;;  %v2302_v55 = vmul.f32 0.03125, %v2276_v8 }
 0xa65   :  { %v2222_v26 = vpop.xlane.xlu0 %2221  ;;  %v2409_v5 = vmul.f32 %v3655_v15, %v2361_v14  ;;  %v2434_v58 = vmul.f32 %v4793_v34, %v2412_v1  ;;  %v2455_v48 = vadd.f32 %v4800_v33, %v2433_v59  ;;  %v2367_v15 = vsub.f32 %v4623_v40, %v4767_v27 }
 0xa66   :  { %v3657_v22 = vpop.eup %3656  ;;  %v2384_v42 = vadd.f32 1e-05, %v2352_v3  ;;  %v2349_v52 = vmax.f32 %v2333_v54, 0.0  ;;  %v2334_v16 = vsub.f32 %v2302_v55, %v2318_v30  ;;  %3658 = vrsqrt.f32 %v2383_v10 }
 0xa67   :  { %v2224_v25 = vpop.xlane.xlu1 %2223  ;;  %v2410_v44 = vmul.f32 %v3657_v22, %v2362_v62  ;;  %v2431_v36 = vmul.f32 %v4793_v34, %v2409_v5  ;;  %v4805_v13 = vmul.f32 0.03125, %v2222_v26  ;;  %v2456_v7 = vadd.f32 %v4800_v33, %v2434_v58 }
 0xa68   :  { %3660 = vrsqrt.f32 %v2384_v42  ;;  %v2381_v21 = vadd.f32 1e-05, %v2349_v52  ;;  %v2350_v57 = vmax.f32 %v2334_v16, 0.0  ;;  %v4809_v41 = vmul.f32 0.03125, %v2224_v25 }
 0xa69   :  { %v2218_v56 = vpop.xlane.xlu0 %2217  ;;  %v2432_v37 = vmul.f32 %v4793_v34, %v2410_v44  ;;  %v2453_v0 = vadd.f32 %v4800_v33, %v2431_v36  ;;  %v2323_v39 = vmul.f32 %v4805_v13, %v4805_v13  ;;  %v2472_v18 = vmax.f32 %v2456_v7, 0.0 }
 0xa6a   :  { %3662 = vrsqrt.f32 %v2381_v21  ;;  %v2382_v20 = vadd.f32 1e-05, %v2350_v57  ;;  %v4814_v53 = vmul.f32 0.03125, %v2218_v56  ;;  %v2324_v14 = vmul.f32 %v4809_v41, %v4809_v41 }
 0xa6b   :  { %v2220_v4 = vpop.xlane.xlu1 %2219  ;;  %v2454_v32 = vadd.f32 %v4800_v33, %v2432_v37  ;;  %v2469_v49 = vmax.f32 %v2453_v0, 0.0  ;;  %v2368_v10 = vsub.f32 %v4626_v12, %v4769_v47  ;;  %v2471_v54 = vmax.f32 %v2455_v48, 0.0 }
 0xa6c   :  { %3664 = vrsqrt.f32 %v2382_v20  ;;  %v4816_v46 = vmul.f32 0.03125, %v2220_v4  ;;  %v2321_v62 = vmul.f32 %v4814_v53, %v4814_v53  ;;  %v2365_v22 = vsub.f32 %v4630_v2, %v4773_v6 }
 0xa6d   :  { %v2286_v29 = vpop.xlane.xlu0 %2285  ;;  %v2470_v23 = vmax.f32 %v2454_v32, 0.0  ;;  %v2486_v12 = vpack.c.bf16 %v2472_v18, %v2471_v54  ;;  %v2366_v36 = vsub.f32 %v4634_v50, %v4775_v38 }
 0xa6e   :  { %v2307_v51 = vmul.f32 0.03125, %v2286_v29  ;;  %v2322_v40 = vmul.f32 %v4816_v46, %v4816_v46 }
 0xa6f   :  { %v2288_v61 = vpop.xlane.xlu1 %2287  ;;  %v2485_v9 = vpack.c.bf16 %v2470_v23, %v2469_v49 }
 0xa70   :  { %v2339_v30 = vsub.f32 %v2307_v51, %v2323_v39  ;;  %v2308_v8 = vmul.f32 0.03125, %v2288_v61  ;;  %v3659_v1 = vpop.eup %3658 }
 0xa71   :  { %3376 = vmatpush3.bf16.msra.mxu1 %v2485_v9  ;;  %v2282_v3 = vpop.xlane.xlu0 %2281  ;;  %v2415_v57 = vmul.f32 %v3659_v1, %v2367_v15 }
 0xa72   :  { %v3661_v55 = vpop.eup %3660  ;;  %v2355_v26 = vmax.f32 %v2339_v30, 0.0  ;;  %v2340_v5 = vsub.f32 %v2308_v8, %v2324_v14  ;;  %v2305_v28 = vmul.f32 0.03125, %v2282_v3  ;;  %3377 = vmatprep.subr.bf16.mxu1 %v3714_v31 }
 0xa73   :  { %v2284_v27 = vpop.xlane.xlu1 %2283  ;;  %v2416_v47 = vmul.f32 %v3661_v55, %v2368_v10  ;;  %v2437_v49 = vmul.f32 %v4793_v34, %v2415_v57 }
 0xa74   :  { %v3663_v42 = vpop.eup %3662  ;;  %v2387_v52 = vadd.f32 1e-05, %v2355_v26  ;;  %v2356_v16 = vmax.f32 %v2340_v5, 0.0  ;;  %v2337_v25 = vsub.f32 %v2305_v28, %v2321_v62  ;;  %v2306_v44 = vmul.f32 0.03125, %v2284_v27 }
 0xa75   :  { %3378 = vmatpush3.bf16.msra.mxu1 %v2486_v12  ;;  %v2230_v58 = vpop.xlane.xlu0 %2229  ;;  %v2413_v21 = vmul.f32 %v3663_v42, %v2365_v22  ;;  %v2438_v4 = vmul.f32 %v4793_v34, %v2416_v47  ;;  %v2459_v8 = vadd.f32 %v4800_v33, %v2437_v49  ;;  %v2372_v27 = vsub.f32 %v4650_v43, %v4809_v41 }
 0xa76   :  { %v3665_v56 = vpop.eup %3664  ;;  %v2388_v2 = vadd.f32 1e-05, %v2356_v16  ;;  %v2353_v6 = vmax.f32 %v2337_v25, 0.0  ;;  %v2338_v37 = vsub.f32 %v2306_v44, %v2322_v40  ;;  %3379 = vmatprep.subr.bf16.mxu1 %v3714_v31  ;;  %3666 = vrsqrt.f32 %v2387_v52 }
 0xa77   :  { %v2232_v0 = vpop.xlane.xlu1 %2231  ;;  %v2414_v59 = vmul.f32 %v3665_v56, %v2366_v36  ;;  %v2435_v20 = vmul.f32 %v4793_v34, %v2413_v21  ;;  %v2460_v61 = vadd.f32 %v4800_v33, %v2438_v4  ;;  %v4846_v1 = vmul.f32 0.03125, %v2230_v58 }
 0xa78   :  { %3668 = vrsqrt.f32 %v2388_v2  ;;  %v2385_v32 = vadd.f32 1e-05, %v2353_v6  ;;  %v2354_v50 = vmax.f32 %v2338_v37, 0.0  ;;  %v4850_v3 = vmul.f32 0.03125, %v2232_v0 }
 0xa79   :  { %v2226_v38 = vpop.xlane.xlu0 %2225  ;;  %v2436_v7 = vmul.f32 %v4793_v34, %v2414_v59  ;;  %v2457_v29 = vadd.f32 %v4800_v33, %v2435_v20  ;;  %v2476_v62 = vmax.f32 %v2460_v61, 0.0  ;;  %v2371_v40 = vsub.f32 %v4647_v35, %v4805_v13 }
 0xa7a   :  { %3670 = vrsqrt.f32 %v2385_v32  ;;  %v2386_v23 = vadd.f32 1e-05, %v2354_v50  ;;  %v4839_v48 = vmul.f32 0.03125, %v2226_v38  ;;  %v2475_v47 = vmax.f32 %v2459_v8, 0.0 }
 0xa7b   :  { %v2228_v39 = vpop.xlane.xlu1 %2227  ;;  %v2458_v51 = vadd.f32 %v4800_v33, %v2436_v7  ;;  %v2473_v14 = vmax.f32 %v2457_v29, 0.0  ;;  %v2327_v52 = vmul.f32 %v4846_v1, %v4846_v1  ;;  %v2369_v36 = vsub.f32 %v4654_v45, %v4814_v53 }
 0xa7c   :  { %3672 = vrsqrt.f32 %v2386_v23  ;;  %v4843_v9 = vmul.f32 0.03125, %v2228_v39  ;;  %v2325_v15 = vmul.f32 %v4839_v48, %v4839_v48  ;;  %v2328_v35 = vmul.f32 %v4850_v3, %v4850_v3 }
 0xa7d   :  { %v2290_v18 = vpop.xlane.xlu0 %2289  ;;  %v2474_v30 = vmax.f32 %v2458_v51, 0.0  ;;  %v2488_v43 = vpack.c.bf16 %v2476_v62, %v2475_v47  ;;  %v2370_v6 = vsub.f32 %v4658_v24, %v4816_v46 }
 0xa7e   :  { %v2309_v10 = vmul.f32 0.03125, %v2290_v18  ;;  %v2326_v26 = vmul.f32 %v4843_v9, %v4843_v9 }
 0xa7f   :  { %v2292_v54 = vpop.xlane.xlu1 %2291  ;;  %v2487_v55 = vpack.c.bf16 %v2474_v30, %v2473_v14  ;;  %v2373_v14 = vsub.f32 %v4678_v19, %v4839_v48  ;;  %v2376_v48 = vsub.f32 %v4674_v11, %v4850_v3 }
 0xa80   :  { %v2341_v5 = vsub.f32 %v2309_v10, %v2325_v15  ;;  %v2310_v28 = vmul.f32 0.03125, %v2292_v54  ;;  %v3667_v22 = vpop.eup %3666  ;;  %v2374_v10 = vsub.f32 %v4682_v63, %v4843_v9 }
 0xa81   :  { %3380 = vmatpush3.bf16.msra.mxu1 %v2487_v55  ;;  %v2294_v12 = vpop.xlane.xlu0 %2293  ;;  %v2419_v0 = vmul.f32 %v3667_v22, %v2371_v40 }
 0xa82   :  { %v3669_v42 = vpop.eup %3668  ;;  %v2357_v16 = vmax.f32 %v2341_v5, 0.0  ;;  %v2342_v25 = vsub.f32 %v2310_v28, %v2326_v26  ;;  %v2311_v44 = vmul.f32 0.03125, %v2294_v12  ;;  %3381 = vmatprep.subr.bf16.mxu1 %v3714_v31  ;;  %v2375_v26 = vsub.f32 %v4671_v17, %v4846_v1 }
 0xa83   :  { %v2296_v13 = vpop.xlane.xlu1 %2295  ;;  %v2420_v41 = vmul.f32 %v3669_v42, %v2372_v27  ;;  %v2441_v29 = vmul.f32 %v4793_v34, %v2419_v0 }
 0xa84   :  { %v3671_v58 = vpop.eup %3670  ;;  %v2389_v21 = vadd.f32 1e-05, %v2357_v16  ;;  %v2358_v57 = vmax.f32 %v2342_v25, 0.0  ;;  %v2343_v56 = vsub.f32 %v2311_v44, %v2327_v52  ;;  %v2312_v2 = vmul.f32 0.03125, %v2296_v13  ;;  %v2709_v13 = vld [vmem:[%s5008_s25] sm:$0xff] }
 0xa85   :  { %3382 = vmatpush3.bf16.msra.mxu1 %v2488_v43  ;;  %v2417_v37 = vmul.f32 %v3671_v58, %v2369_v36  ;;  %v2442_v50 = vmul.f32 %v4793_v34, %v2420_v41  ;;  %v2463_v18 = vadd.f32 %v4800_v33, %v2441_v29  ;;  %v2710_v43 = vld [vmem:[%s5008_s25 + $0x8] sm:$0xff]  ;;  %v2711_v41 = vld [vmem:[%s5008_s25 + $0x10] sm:$0xff]  ;;  %v2721_v29 = vld [vmem:[%s5008_s25 + $0x60] sm:$0xff] }
 0xa86   :  { %v3673_v59 = vpop.eup %3672  ;;  %3674 = vrsqrt.f32 %v2389_v21  ;;  %v2390_v45 = vadd.f32 1e-05, %v2358_v57  ;;  %v2359_v53 = vmax.f32 %v2343_v56, 0.0  ;;  %v2344_v20 = vsub.f32 %v2312_v2, %v2328_v35  ;;  %3383 = vmatprep.subr.bf16.mxu1 %v3714_v31  ;;  %v2493_v35 = vld [vmem:[%s5003_s20] sm:$0x1]  ;;  %v2712_v21 = vld [vmem:[%s5008_s25 + $0x18] sm:$0xff] }
 0xa87   :  { %v2418_v4 = vmul.f32 %v3673_v59, %v2370_v6  ;;  %v2439_v32 = vmul.f32 %v4793_v34, %v2417_v37  ;;  %v2464_v39 = vadd.f32 %v4800_v33, %v2442_v50  ;;  %v2479_v54 = vmax.f32 %v2463_v18, 0.0  ;;  %v2713_v56 = vld [vmem:[%s5008_s25 + $0x20] sm:$0xff]  ;;  %v2714_v2 = vld [vmem:[%s5008_s25 + $0x28] sm:$0xff]  ;;  %v2716_v37 = vld [vmem:[%s5008_s25 + $0x38] sm:$0xff] }
 0xa88   :  { %3676 = vrsqrt.f32 %v2390_v45  ;;  %v2391_v38 = vadd.f32 1e-05, %v2359_v53  ;;  %v2360_v7 = vmax.f32 %v2344_v20, 0.0  ;;  %v3495_v58 = vpack.c.bf16 %v2710_v43, %v2709_v13  ;;  %v2717_v59 = vld [vmem:[%s5008_s25 + $0x40] sm:$0xff]  ;;  %v2718_v45 = vld [vmem:[%s5008_s25 + $0x48] sm:$0xff]  ;;  %v2719_v20 = vld [vmem:[%s5008_s25 + $0x50] sm:$0xff] }
 0xa89   :  { %v2440_v24 = vmul.f32 %v4793_v34, %v2418_v4  ;;  %v2461_v46 = vadd.f32 %v4800_v33, %v2439_v32  ;;  %v2480_v8 = vmax.f32 %v2464_v39, 0.0  ;;  %v3498_v57 = vpack.c.bf16 %v2712_v21, %v2711_v41  ;;  %v2720_v4 = vld [vmem:[%s5008_s25 + $0x58] sm:$0xff] }
 0xa8a   :  { %3678 = vrsqrt.f32 %v2391_v38  ;;  %v2392_v49 = vadd.f32 1e-05, %v2360_v7  ;;  %v3501_v6 = vpack.c.bf16 %v2714_v2, %v2713_v56  ;;  %v3507_v53 = vpack.c.bf16 %v2718_v45, %v2717_v59 }
 0xa8b   :  { %v2462_v23 = vadd.f32 %v4800_v33, %v2440_v24  ;;  %v2477_v51 = vmax.f32 %v2461_v46, 0.0  ;;  %v2490_v5 = vpack.c.bf16 %v2480_v8, %v2479_v54  ;;  %v3510_v32 = vpack.c.bf16 %v2720_v4, %v2719_v20 }
 0xa8c   :  { %3680 = vrsqrt.f32 %v2392_v49  ;;  %v2722_v49 = vld [vmem:[%s5008_s25 + $0x68] sm:$0xff] }
 0xa8d   :  { %v2478_v61 = vmax.f32 %v2462_v23, 0.0  ;;  %v3513_v23 = vpack.c.bf16 %v2722_v49, %v2721_v29 }
 0xa8f   :  { %v2489_v30 = vpack.c.bf16 %v2478_v61, %v2477_v51  ;;  %v2723_v51 = vld [vmem:[%s5008_s25 + $0x70] sm:$0xff]  ;;  %v2724_v61 = vld [vmem:[%s5008_s25 + $0x78] sm:$0xff] }
 0xa90   :  { %v3675_v15 = vpop.eup %3674  ;;  %v3516_v18 = vpack.c.bf16 %v2724_v61, %v2723_v51 }
 0xa91   :  { %3384 = vmatpush3.bf16.msra.mxu1 %v2489_v30  ;;  %v2421_v55 = vmul.f32 %v3675_v15, %v2373_v14  ;;  %v2896_v30 = vld [vmem:[%s5007_s24] ss:$0 sm:$0xff] }
 0xa92   :  { %v3677_v62 = vpop.eup %3676  ;;  %3385 = vmatprep.subr.bf16.mxu1 %v3714_v31 }
 0xa93   :  { %v2422_v28 = vmul.f32 %v3677_v62, %v2374_v10  ;;  %v2443_v22 = vmul.f32 %v4793_v34, %v2421_v55 }
 0xa94   :  { %v3679_v19 = vpop.eup %3678 }
 0xa95   :  { %3386 = vmatpush3.bf16.msra.mxu1 %v2490_v5  ;;  %v2444_v63 = vmul.f32 %v4793_v34, %v2422_v28  ;;  %v2465_v9 = vadd.f32 %v4800_v33, %v2443_v22  ;;  %v2423_v40 = vmul.f32 %v3679_v19, %v2375_v26 }
 0xa96   :  { %v3681_v27 = vpop.eup %3680  ;;  %3387 = vmatprep.subr.bf16.mxu1 %v3714_v31 }
 0xa97   :  { %v2466_v12 = vadd.f32 %v4800_v33, %v2444_v63  ;;  %v2424_v17 = vmul.f32 %v3681_v27, %v2376_v48  ;;  %v2445_v1 = vmul.f32 %v4793_v34, %v2423_v40  ;;  %v2481_v47 = vmax.f32 %v2465_v9, 0.0 }
 0xa99   :  { %v2482_v42 = vmax.f32 %v2466_v12, 0.0  ;;  %v2446_v52 = vmul.f32 %v4793_v34, %v2424_v17  ;;  %v2467_v11 = vadd.f32 %v4800_v33, %v2445_v1  ;;  %v2551_v34 = vld [vmem:[%s5006_s23] sm:$0xf] }
 0xa9b   :  { %v2491_v3 = vpack.c.bf16 %v2482_v42, %v2481_v47  ;;  %v2468_v16 = vadd.f32 %v4800_v33, %v2446_v52  ;;  %v2483_v25 = vmax.f32 %v2467_v11, 0.0  ;;  %v2550_v33 = vld [vmem:[%s5004_s21] sm:$0x3] }
 0xa9d   :  { %3388 = vmatpush3.bf16.msra.mxu1 %v2491_v3  ;;  %v2484_v44 = vmax.f32 %v2468_v16, 0.0 }
 0xa9e   :  { %3389 = vmatprep.subr.bf16.mxu1 %v3714_v31 }
 0xa9f   :  { %v2492_v36 = vpack.c.bf16 %v2484_v44, %v2483_v25 }
 0xaa1   :  { %3390 = vmatpush3.bf16.msra.mxu1 %v2492_v36 }
 0xaa2   :  { %3395 = vmatprep.subr.mxu1 %v3714_v31 }
 0xaa4   :  { %3392 = vmatmul.mubr.bf16.vlgmr.msra.gmra.mrb[64].mxu1 %v2493_v35 }
 0xaa5   :  { %3396 = vmatpush3.msk.msra.mxu1 %vm2556_vm1, %v2551_v34  ;;  %3397 = vmatprep.mubr.msk.f32.mxu1 %vm3715_vm0, %v3714_v31 }
 0xaa6   :  { %3494 = vmatprep.subr.bf16.mxu1 %v3716_v60 }
 0xaac   :  { %3398 = vmatmul.mubr.msk.f32.vlgmr.msra.gmra.mrb[68].mxu1 %vm2552_vm2, %v2550_v33 }
 0xaad   :  { %3467 = vmatprep.mubr.msk.f32.mxu1 %vm3715_vm0, %v3714_v31  ;;  %3496 = vmatpush3.bf16.msra.mxu1 %v3495_v58  ;;  %v2715_v31 = vld [vmem:[%s5008_s25 + $0x30] sm:$0xff]  ;;  %s3690_s25 = scalar_lea.vmem %s2811_s10, 32 }
 0xaae   :  { %3497 = vmatprep.subr.bf16.mxu1 %v3716_v60  ;;  %v3504_v0 = vpack.c.bf16 %v2716_v37, %v2715_v31  ;;  %p3691_p0 = scmp.ne.s32.totalorder %s2811_s10, %s3690_s25  ;;  %p3696_p2 = scmp.lt.s32.totalorder %s3690_s25, %s3690_s25 }
 0xab0   :  { %p3697_p3 = por %p3696_p2, %p3695_p1 }
 0xab1   :  { %3499 = vmatpush3.bf16.msra.mxu1 %v3498_v57 }
 0xab2   :  { %3500 = vmatprep.subr.bf16.mxu1 %v3716_v60  ;;  %p3698_p4 = pnand %p3697_p3, %p3691_p0 }
 0xab5   :  { %3502 = vmatpush3.bf16.msra.mxu1 %v3501_v6 }
 0xab6   :  { %3503 = vmatprep.subr.bf16.mxu1 %v3716_v60 }
 0xab9   :  { %3505 = vmatpush3.bf16.msra.mxu1 %v3504_v0 }
 0xaba   :  { %3506 = vmatprep.subr.bf16.mxu1 %v3716_v60 }
 0xabd   :  { %3508 = vmatpush3.bf16.msra.mxu1 %v3507_v53 }
 0xabe   :  { %3509 = vmatprep.subr.bf16.mxu1 %v3716_v60 }
 0xac1   :  { %3511 = vmatpush3.bf16.msra.mxu1 %v3510_v32 }
 0xac2   :  { %3512 = vmatprep.subr.bf16.mxu1 %v3716_v60 }
 0xac5   :  { %3514 = vmatpush3.bf16.msra.mxu1 %v3513_v23 }
 0xac6   :  { %3515 = vmatprep.subr.bf16.mxu1 %v3716_v60  ;;  %v2897_v60 = vld [vmem:[%s5009_s26] ss:$0 sm:$0xff] }
 0xac9   :  { %3517 = vmatpush3.bf16.msra.mxu1 %v3516_v18 }
 0xb77   :  { %v2528_v50 = vpop.f32.mrb[64].mxu1 }
 0xb78   :  { %v3393_v38 = vpop.f32.mrb[65].mxu1  ;;  %3433 = vmatmul.mubr.f32.vlgmr.msra.gmra.mrb[80].mxu0 %v2528_v50 }
 0xb79   :  { %v2531_v7 = vpop.f32.mrb[66].mxu1 }
 0xb7a   :  { %v3394_v24 = vpop.f32.mrb[67].mxu1 }
 0xb7f   :  { %v2626_v46 = vpop.f32.mrb[68].mxu1 }
 0xb80   :  { %v3399_v39 = vpop.f32.mrb[69].mxu1 }
 0xc4b   :  { %v2696_v14 = vpop.f32.mrb[80].mxu0 }
 0xc4c   :  { %v2697_v8 = vadd.f32 %v2696_v14, %v2626_v46  ;;  %v3434_v15 = vpop.f32.mrb[81].mxu0 }
 0xc4e   :  { %v2707_v10 = vadd.f32 %v2896_v30, %v2697_v8 }
 0xc50   :  { %v2708_v54 = vmax.f32 %v2707_v10, 0.0 }
 0xc52   :  { %3468 = vmatmul.mubr.f32.vlgmr.msra.gmra.mrb[70].mxu1 %v2708_v54 }
 0xd25   :  { %v2798_v55 = vpop.f32.mrb[70].mxu1 }
 0xd26   :  { %v2799_v62 = vadd.f32 %v2897_v60, %v2798_v55  ;;  %v3469_v26 = vpop.f32.mrb[71].mxu1 }
 0xd28   :  { %2803 = vst.msk [vmem:[#allocation2] sm:$0x3] %vm2802_vm3, %v2799_v62 }
 0xd29   :  { %3701 = shalt.err (!%p3698_p4)
}
 0xd2a   :  { %s3702_s6 = scalar_lea.hbm %s5010_s27, 32 }
 0xd2b   :  { %p3703_p5 = scmp.ne.s32.totalorder %s5010_s27, %s3702_s6  ;;  %p3706_p6 = scmp.lt.u32.totalorder %s3702_s6, %s5010_s27 }
 0xd2d   :  { %p3708_p7 = pnand %p3706_p6, %p3703_p5 }
 0xd2f   :  { %3711 = shalt.err (!%p3708_p7)
}
 0xd30   :  { %2813 = dma.vmem_to_hbm [thread:$0]  %s2811_s10, 32, %s5010_s27, [#allocation3]  }
 0xd31   :  { %3712 = dma.done.wait [#allocation3], 32  }
 0xd32   :  { %3713 = vsyncadd [#allocation3], 4294967264 }
 0xd33   :  { %2817 = vsyncpa [#allocation3], 1 }

</bundles_post_ra>
